<compile_context>
chip_gen: v7x
topology: tpu7x:2x2x1
jax: 0.10.0
libtpu: 0.0.40
codegen_flags: <defaults>
</compile_context>

<pallas_src>
import jax
import jax.numpy as jnp
from jax.experimental import pallas as pl
from jax.experimental.pallas import tpu as pltpu

NEG_SLOPE = 0.2
FEA_DIM = 128

# (stride, padding) for the 5 conv layers:
#   Conv2d(3,32,5,2,2) -> Conv2d(32,64,3,2,1) -> Conv2d(64,128,3,2,1)
#   -> Conv2d(128,256,3,2,1) -> Conv2d(256,fea_dim,4)
LAYER_CFG = [(2, 2), (2, 1), (2, 1), (2, 1), (1, 0)]
LAYER_SHAPES = [(32, 3, 5, 5), (64, 32, 3, 3), (128, 64, 3, 3),
                (256, 128, 3, 3), (FEA_DIM, 256, 4, 4)]  # (Cout, Cin, kh, kw)


# ---------------------------------------------------------------------------
# Pallas kernel: fused (patches @ W) + bias + LeakyReLU(0.2)
#   x_ref: (tm, K) bf16   w_ref: (K, N) bf16   b_ref: (1, N) f32
#   o_ref: (tm, N) bf16/f32
# ---------------------------------------------------------------------------
def _conv_matmul_lrelu_kernel(x_ref, w_ref, b_ref, o_ref):
    acc = jnp.dot(x_ref[...], w_ref[...], preferred_element_type=jnp.float32)
    acc = acc + b_ref[...]
    o_ref[...] = jnp.where(acc >= 0, acc, NEG_SLOPE * acc).astype(o_ref.dtype)


def _pick_tm(m):
    # Largest row tile that divides M exactly (no padding / tail slice),
    # capped at 1024, preferring >=2 grid steps so megacore can split rows.
    for tm in (1024, 512, 256, 128, 64, 32, 16, 8):
        if m % tm == 0 and m // tm >= 2:
            return tm
    return m


def fused_matmul_bias_lrelu(x, w, b, *, out_dtype):
    """x: (M, K) bf16, w: (K, N) bf16, b: (1, N) f32 -> leaky_relu(x @ w + b)."""
    M, K = x.shape
    K2, N = w.shape
    assert K == K2
    tm = _pick_tm(M)
    flops = 2 * M * K * N
    bytes_accessed = (M * K * x.dtype.itemsize + K * N * w.dtype.itemsize
                      + N * 4 + M * N * jnp.dtype(out_dtype).itemsize)
    return pl.pallas_call(
        _conv_matmul_lrelu_kernel,
        out_shape=jax.ShapeDtypeStruct((M, N), out_dtype),
        grid=(M // tm,),
        in_specs=[
            pl.BlockSpec((tm, K), lambda i: (i, 0)),   # row tile of patches
            pl.BlockSpec((K, N), lambda i: (0, 0)),    # full weight (stays resident)
            pl.BlockSpec((1, N), lambda i: (0, 0)),    # bias row
        ],
        out_specs=pl.BlockSpec((tm, N), lambda i: (i, 0)),
        compiler_params=pltpu.CompilerParams(
            dimension_semantics=("parallel",)),
        cost_estimate=pl.CostEstimate(
            flops=flops, transcendentals=0, bytes_accessed=bytes_accessed),
    )(x, w, b)


# ---------------------------------------------------------------------------
# im2col glue (plain JAX slices, fused by XLA under jit) + per-layer conv
# ---------------------------------------------------------------------------
def _im2col(x, kh, kw, stride, pad):
    # x: (N, H, W, C)  ->  (N*OH*OW, kh*kw*C), OH, OW
    if pad:
        x = jnp.pad(x, ((0, 0), (pad, pad), (pad, pad), (0, 0)))
    n, H, W, C = x.shape
    oh = (H - kh) // stride + 1
    ow = (W - kw) // stride + 1
    if oh == 1 and ow == 1 and H == kh and W == kw:
        # Final "valid" conv whose kernel covers the whole map: pure reshape.
        return x.reshape(n, kh * kw * C), oh, ow
    cols = []
    for i in range(kh):
        for j in range(kw):
            cols.append(x[:, i:i + stride * (oh - 1) + 1:stride,
                          j:j + stride * (ow - 1) + 1:stride, :])
    p = jnp.stack(cols, axis=3)                  # (n, oh, ow, kh*kw, C)
    return p.reshape(n * oh * ow, kh * kw * C), oh, ow


def encoder_forward(obs_seq, prepped_params):
    # obs_seq: (B, S, C, H, W) NCHW per frame (PyTorch convention)
    B, S, C, H, W = obs_seq.shape
    x = obs_seq.reshape(B * S, C, H, W).transpose(0, 2, 3, 1)  # -> NHWC
    x = x.astype(jnp.bfloat16)
    n_layers = len(prepped_params)
    for li, ((w_mat, b), (stride, pad), shp) in enumerate(
            zip(prepped_params, LAYER_CFG, LAYER_SHAPES)):
        cout, _, kh, kw = shp
        cols, oh, ow = _im2col(x, kh, kw, stride, pad)
        out_dtype = jnp.float32 if li == n_layers - 1 else jnp.bfloat16
        y = fused_matmul_bias_lrelu(cols, w_mat, b, out_dtype=out_dtype)
        x = y.reshape(x.shape[0], oh, ow, cout)
    # final layer yields spatial 1x1 for 64x64 inputs -> (B, S, fea_dim)
    return x.reshape(B, S, -1)


# ---------------------------------------------------------------------------
# Parameters: PyTorch-layout weights + one-time matmul-form preparation
# ---------------------------------------------------------------------------
def init_params(key):
    params = []
    for i, shape in enumerate(LAYER_SHAPES):
        kw_ = jax.random.fold_in(key, i)
        fan_in = shape[1] * shape[2] * shape[3]
        w = jax.random.normal(kw_, shape, jnp.float32) * (2.0 / fan_in) ** 0.5
        b = jnp.zeros((shape[0],), jnp.float32)
        params.append((w, b))
    return params


def prepare_params(params):
    """One-time transform: OIHW f32 -> ((kh*kw*Cin, Cout) bf16, (1, Cout) f32)."""
    prepped = []
    for w, b in params:
        cout, cin, kh, kw = w.shape
        w_mat = jnp.transpose(w, (2, 3, 1, 0)).reshape(kh * kw * cin, cout)
        prepped.append((w_mat.astype(jnp.bfloat16),
                        b.reshape(1, cout).astype(jnp.float32)))
    return prepped


# ---------------------------------------------------------------------------
# Reference (lax.conv) mirroring the bf16-operand / f32-accumulate numerics
# ---------------------------------------------------------------------------
def encoder_ref(obs_seq, params):
    B, S, C, H, W = obs_seq.shape
    x = obs_seq.reshape(B * S, C, H, W)
    for (w, b), (stride, pad) in zip(params, LAYER_CFG):
        y = jax.lax.conv_general_dilated(
            x.astype(jnp.bfloat16), w.astype(jnp.bfloat16),
            (stride, stride), [(pad, pad), (pad, pad)],
            dimension_numbers=("NCHW", "OIHW", "NCHW"),
            preferred_element_type=jnp.float32)
        y = y + b.reshape(1, -1, 1, 1)
        x = jnp.where(y >= 0, y, NEG_SLOPE * y)
    return x.reshape(B, S, -1)


if __name__ == "__main__":
    key = jax.random.PRNGKey(0)
    k_param, k_obs = jax.random.split(key)

    params = init_params(k_param)
    prepped = prepare_params(params)          # one-time, outside the forward path

    # 64x64 images required by the architecture (4 stride-2 convs then k=4).
    B, S, C, H, W = 2, 2, 3, 64, 64
    obs_seq = jax.random.normal(k_obs, (B, S, C, H, W), jnp.float32)

    encoder_apply = jax.jit(encoder_forward)
    out = jax.block_until_ready(encoder_apply(obs_seq, prepped))

    ref = jax.block_until_ready(encoder_ref(obs_seq, params))
    assert out.shape == (B, S, FEA_DIM), out.shape
    assert jnp.allclose(out, ref, atol=5e-3, rtol=5e-3), \
        float(jnp.max(jnp.abs(out - ref)))

    print("KERNEL_OK")
</pallas_src>

<mosaic_0001>
module attributes {stable_mosaic.version = 11 : i64} {
  func.func @_conv_matmul_lrelu_kernel(%arg0: i32, %arg1: memref<1024x75xbf16, #tpu.memory_space<vmem>>, %arg2: memref<75x32xbf16, #tpu.memory_space<vmem>>, %arg3: memref<1x32xf32, #tpu.memory_space<vmem>>, %arg4: memref<1024x32xbf16, #tpu.memory_space<vmem>>) attributes {dimension_semantics = [#tpu.dimension_semantics<parallel>], iteration_bounds = array<i64: 4>, scalar_prefetch = 0 : i64, scratch_operands = 0 : i64, tpu.core_type = #tpu.core_type<tc>, window_params = [{transform_indices = @transform_0, window_bounds = array<i64: 1024, 75>}, {pipeline_mode = #tpu.pipeline_mode<synchronous>, transform_indices = @transform_1, window_bounds = array<i64: 75, 32>}, {pipeline_mode = #tpu.pipeline_mode<synchronous>, transform_indices = @transform_2, window_bounds = array<i64: 1, 32>}, {transform_indices = @transform_3, window_bounds = array<i64: 1024, 32>}]} {
    %c0 = arith.constant 0 : index
    %c0_0 = arith.constant 0 : index
    %0 = vector.load %arg1[%c0, %c0_0] : memref<1024x75xbf16, #tpu.memory_space<vmem>>, vector<1024x75xbf16>
    %c0_1 = arith.constant 0 : index
    %c0_2 = arith.constant 0 : index
    %1 = vector.load %arg2[%c0_1, %c0_2] : memref<75x32xbf16, #tpu.memory_space<vmem>>, vector<75x32xbf16>
    %cst = arith.constant dense<0.000000e+00> : vector<1024x32xf32>
    %2 = tpu.matmul %0, %1, %cst {dimension_numbers = #tpu.dot_dimension_numbers<[1], [0], [0], [1], [0, 0, 1, 1], [], []>} : vector<1024x75xbf16>, vector<75x32xbf16>, vector<1024x32xf32> -> vector<1024x32xf32>
    %c0_3 = arith.constant 0 : index
    %c0_4 = arith.constant 0 : index
    %3 = vector.load %arg3[%c0_3, %c0_4] : memref<1x32xf32, #tpu.memory_space<vmem>>, vector<1x32xf32>
    %4 = vector.broadcast %3 : vector<1x32xf32> to vector<1024x32xf32>
    %5 = arith.addf %2, %4 : vector<1024x32xf32>
    %cst_5 = arith.constant 0.000000e+00 : f32
    %6 = vector.broadcast %cst_5 : f32 to vector<1024x32xf32>
    %7 = arith.cmpf oge, %5, %6 : vector<1024x32xf32>
    %cst_6 = arith.constant 2.000000e-01 : f32
    %8 = vector.broadcast %cst_6 : f32 to vector<1024x32xf32>
    %9 = arith.mulf %8, %5 : vector<1024x32xf32>
    %10 = arith.select %7, %5, %9 : vector<1024x32xi1>, vector<1024x32xf32>
    %11 = arith.truncf %10 : vector<1024x32xf32> to vector<1024x32xbf16>
    %c0_7 = arith.constant 0 : index
    %c0_8 = arith.constant 0 : index
    %12 = vector.load %arg4[%c0_7, %c0_8] : memref<1024x32xbf16, #tpu.memory_space<vmem>>, vector<1024x32xbf16>
    tpu.vector_store %arg4[%c0_7, %c0_8], %11 {strides = array<i32>} : memref<1024x32xbf16, #tpu.memory_space<vmem>>, vector<1024x32xbf16>,
    return
  }
  func.func @transform_0(%arg0: i32) -> (i32, i32) {
    %c0_i32 = arith.constant 0 : i32
    %c0_i32_0 = arith.constant 0 : i32
    return %arg0, %c0_i32 : i32, i32
  }
  func.func @transform_1(%arg0: i32) -> (i32, i32) {
    %c0_i32 = arith.constant 0 : i32
    %c0_i32_0 = arith.constant 0 : i32
    %c0_i32_1 = arith.constant 0 : i32
    return %c0_i32, %c0_i32_0 : i32, i32
  }
  func.func @transform_2(%arg0: i32) -> (i32, i32) {
    %c0_i32 = arith.constant 0 : i32
    %c0_i32_0 = arith.constant 0 : i32
    %c0_i32_1 = arith.constant 0 : i32
    return %c0_i32, %c0_i32_0 : i32, i32
  }
  func.func @transform_3(%arg0: i32) -> (i32, i32) {
    %c0_i32 = arith.constant 0 : i32
    %c0_i32_0 = arith.constant 0 : i32
    return %arg0, %c0_i32 : i32, i32
  }
}

module attributes {stable_mosaic.version = 11 : i64} {
  func.func @_conv_matmul_lrelu_kernel(%arg0: i32, %arg1: memref<512x288xbf16, #tpu.memory_space<vmem>>, %arg2: memref<288x64xbf16, #tpu.memory_space<vmem>>, %arg3: memref<1x64xf32, #tpu.memory_space<vmem>>, %arg4: memref<512x64xbf16, #tpu.memory_space<vmem>>) attributes {dimension_semantics = [#tpu.dimension_semantics<parallel>], iteration_bounds = array<i64: 2>, scalar_prefetch = 0 : i64, scratch_operands = 0 : i64, tpu.core_type = #tpu.core_type<tc>, window_params = [{transform_indices = @transform_0, window_bounds = array<i64: 512, 288>}, {pipeline_mode = #tpu.pipeline_mode<synchronous>, transform_indices = @transform_1, window_bounds = array<i64: 288, 64>}, {pipeline_mode = #tpu.pipeline_mode<synchronous>, transform_indices = @transform_2, window_bounds = array<i64: 1, 64>}, {transform_indices = @transform_3, window_bounds = array<i64: 512, 64>}]} {
    %c0 = arith.constant 0 : index
    %c0_0 = arith.constant 0 : index
    %0 = vector.load %arg1[%c0, %c0_0] : memref<512x288xbf16, #tpu.memory_space<vmem>>, vector<512x288xbf16>
    %c0_1 = arith.constant 0 : index
    %c0_2 = arith.constant 0 : index
    %1 = vector.load %arg2[%c0_1, %c0_2] : memref<288x64xbf16, #tpu.memory_space<vmem>>, vector<288x64xbf16>
    %cst = arith.constant dense<0.000000e+00> : vector<512x64xf32>
    %2 = tpu.matmul %0, %1, %cst {dimension_numbers = #tpu.dot_dimension_numbers<[1], [0], [0], [1], [0, 0, 1, 1], [], []>} : vector<512x288xbf16>, vector<288x64xbf16>, vector<512x64xf32> -> vector<512x64xf32>
    %c0_3 = arith.constant 0 : index
    %c0_4 = arith.constant 0 : index
    %3 = vector.load %arg3[%c0_3, %c0_4] : memref<1x64xf32, #tpu.memory_space<vmem>>, vector<1x64xf32>
    %4 = vector.broadcast %3 : vector<1x64xf32> to vector<512x64xf32>
    %5 = arith.addf %2, %4 : vector<512x64xf32>
    %cst_5 = arith.constant 0.000000e+00 : f32
    %6 = vector.broadcast %cst_5 : f32 to vector<512x64xf32>
    %7 = arith.cmpf oge, %5, %6 : vector<512x64xf32>
    %cst_6 = arith.constant 2.000000e-01 : f32
    %8 = vector.broadcast %cst_6 : f32 to vector<512x64xf32>
    %9 = arith.mulf %8, %5 : vector<512x64xf32>
    %10 = arith.select %7, %5, %9 : vector<512x64xi1>, vector<512x64xf32>
    %11 = arith.truncf %10 : vector<512x64xf32> to vector<512x64xbf16>
    %c0_7 = arith.constant 0 : index
    %c0_8 = arith.constant 0 : index
    %12 = vector.load %arg4[%c0_7, %c0_8] : memref<512x64xbf16, #tpu.memory_space<vmem>>, vector<512x64xbf16>
    tpu.vector_store %arg4[%c0_7, %c0_8], %11 {strides = array<i32>} : memref<512x64xbf16, #tpu.memory_space<vmem>>, vector<512x64xbf16>,
    return
  }
  func.func @transform_0(%arg0: i32) -> (i32, i32) {
    %c0_i32 = arith.constant 0 : i32
    %c0_i32_0 = arith.constant 0 : i32
    return %arg0, %c0_i32 : i32, i32
  }
  func.func @transform_1(%arg0: i32) -> (i32, i32) {
    %c0_i32 = arith.constant 0 : i32
    %c0_i32_0 = arith.constant 0 : i32
    %c0_i32_1 = arith.constant 0 : i32
    return %c0_i32, %c0_i32_0 : i32, i32
  }
  func.func @transform_2(%arg0: i32) -> (i32, i32) {
    %c0_i32 = arith.constant 0 : i32
    %c0_i32_0 = arith.constant 0 : i32
    %c0_i32_1 = arith.constant 0 : i32
    return %c0_i32, %c0_i32_0 : i32, i32
  }
  func.func @transform_3(%arg0: i32) -> (i32, i32) {
    %c0_i32 = arith.constant 0 : i32
    %c0_i32_0 = arith.constant 0 : i32
    return %arg0, %c0_i32 : i32, i32
  }
}

module attributes {stable_mosaic.version = 11 : i64} {
  func.func @_conv_matmul_lrelu_kernel(%arg0: i32, %arg1: memref<128x576xbf16, #tpu.memory_space<vmem>>, %arg2: memref<576x128xbf16, #tpu.memory_space<vmem>>, %arg3: memref<1x128xf32, #tpu.memory_space<vmem>>, %arg4: memref<128x128xbf16, #tpu.memory_space<vmem>>) attributes {dimension_semantics = [#tpu.dimension_semantics<parallel>], iteration_bounds = array<i64: 2>, scalar_prefetch = 0 : i64, scratch_operands = 0 : i64, tpu.core_type = #tpu.core_type<tc>, window_params = [{transform_indices = @transform_0, window_bounds = array<i64: 128, 576>}, {pipeline_mode = #tpu.pipeline_mode<synchronous>, transform_indices = @transform_1, window_bounds = array<i64: 576, 128>}, {pipeline_mode = #tpu.pipeline_mode<synchronous>, transform_indices = @transform_2, window_bounds = array<i64: 1, 128>}, {transform_indices = @transform_3, window_bounds = array<i64: 128, 128>}]} {
    %c0 = arith.constant 0 : index
    %c0_0 = arith.constant 0 : index
    %0 = vector.load %arg1[%c0, %c0_0] : memref<128x576xbf16, #tpu.memory_space<vmem>>, vector<128x576xbf16>
    %c0_1 = arith.constant 0 : index
    %c0_2 = arith.constant 0 : index
    %1 = vector.load %arg2[%c0_1, %c0_2] : memref<576x128xbf16, #tpu.memory_space<vmem>>, vector<576x128xbf16>
    %cst = arith.constant dense<0.000000e+00> : vector<128x128xf32>
    %2 = tpu.matmul %0, %1, %cst {dimension_numbers = #tpu.dot_dimension_numbers<[1], [0], [0], [1], [0, 0, 1, 1], [], []>} : vector<128x576xbf16>, vector<576x128xbf16>, vector<128x128xf32> -> vector<128x128xf32>
    %c0_3 = arith.constant 0 : index
    %c0_4 = arith.constant 0 : index
    %3 = vector.load %arg3[%c0_3, %c0_4] : memref<1x128xf32, #tpu.memory_space<vmem>>, vector<1x128xf32>
    %4 = vector.broadcast %3 : vector<1x128xf32> to vector<128x128xf32>
    %5 = arith.addf %2, %4 : vector<128x128xf32>
    %cst_5 = arith.constant 0.000000e+00 : f32
    %6 = vector.broadcast %cst_5 : f32 to vector<128x128xf32>
    %7 = arith.cmpf oge, %5, %6 : vector<128x128xf32>
    %cst_6 = arith.constant 2.000000e-01 : f32
    %8 = vector.broadcast %cst_6 : f32 to vector<128x128xf32>
    %9 = arith.mulf %8, %5 : vector<128x128xf32>
    %10 = arith.select %7, %5, %9 : vector<128x128xi1>, vector<128x128xf32>
    %11 = arith.truncf %10 : vector<128x128xf32> to vector<128x128xbf16>
    %c0_7 = arith.constant 0 : index
    %c0_8 = arith.constant 0 : index
    %12 = vector.load %arg4[%c0_7, %c0_8] : memref<128x128xbf16, #tpu.memory_space<vmem>>, vector<128x128xbf16>
    tpu.vector_store %arg4[%c0_7, %c0_8], %11 {strides = array<i32>} : memref<128x128xbf16, #tpu.memory_space<vmem>>, vector<128x128xbf16>,
    return
  }
  func.func @transform_0(%arg0: i32) -> (i32, i32) {
    %c0_i32 = arith.constant 0 : i32
    %c0_i32_0 = arith.constant 0 : i32
    return %arg0, %c0_i32 : i32, i32
  }
  func.func @transform_1(%arg0: i32) -> (i32, i32) {
    %c0_i32 = arith.constant 0 : i32
    %c0_i32_0 = arith.constant 0 : i32
    %c0_i32_1 = arith.constant 0 : i32
    return %c0_i32, %c0_i32_0 : i32, i32
  }
  func.func @transform_2(%arg0: i32) -> (i32, i32) {
    %c0_i32 = arith.constant 0 : i32
    %c0_i32_0 = arith.constant 0 : i32
    %c0_i32_1 = arith.constant 0 : i32
    return %c0_i32, %c0_i32_0 : i32, i32
  }
  func.func @transform_3(%arg0: i32) -> (i32, i32) {
    %c0_i32 = arith.constant 0 : i32
    %c0_i32_0 = arith.constant 0 : i32
    return %arg0, %c0_i32 : i32, i32
  }
}

module attributes {stable_mosaic.version = 11 : i64} {
  func.func @_conv_matmul_lrelu_kernel(%arg0: i32, %arg1: memref<32x1152xbf16, #tpu.memory_space<vmem>>, %arg2: memref<1152x256xbf16, #tpu.memory_space<vmem>>, %arg3: memref<1x256xf32, #tpu.memory_space<vmem>>, %arg4: memref<32x256xbf16, #tpu.memory_space<vmem>>) attributes {dimension_semantics = [#tpu.dimension_semantics<parallel>], iteration_bounds = array<i64: 2>, scalar_prefetch = 0 : i64, scratch_operands = 0 : i64, tpu.core_type = #tpu.core_type<tc>, window_params = [{transform_indices = @transform_0, window_bounds = array<i64: 32, 1152>}, {pipeline_mode = #tpu.pipeline_mode<synchronous>, transform_indices = @transform_1, window_bounds = array<i64: 1152, 256>}, {pipeline_mode = #tpu.pipeline_mode<synchronous>, transform_indices = @transform_2, window_bounds = array<i64: 1, 256>}, {transform_indices = @transform_3, window_bounds = array<i64: 32, 256>}]} {
    %c0 = arith.constant 0 : index
    %c0_0 = arith.constant 0 : index
    %0 = vector.load %arg1[%c0, %c0_0] : memref<32x1152xbf16, #tpu.memory_space<vmem>>, vector<32x1152xbf16>
    %c0_1 = arith.constant 0 : index
    %c0_2 = arith.constant 0 : index
    %1 = vector.load %arg2[%c0_1, %c0_2] : memref<1152x256xbf16, #tpu.memory_space<vmem>>, vector<1152x256xbf16>
    %cst = arith.constant dense<0.000000e+00> : vector<32x256xf32>
    %2 = tpu.matmul %0, %1, %cst {dimension_numbers = #tpu.dot_dimension_numbers<[1], [0], [0], [1], [0, 0, 1, 1], [], []>} : vector<32x1152xbf16>, vector<1152x256xbf16>, vector<32x256xf32> -> vector<32x256xf32>
    %c0_3 = arith.constant 0 : index
    %c0_4 = arith.constant 0 : index
    %3 = vector.load %arg3[%c0_3, %c0_4] : memref<1x256xf32, #tpu.memory_space<vmem>>, vector<1x256xf32>
    %4 = vector.broadcast %3 : vector<1x256xf32> to vector<32x256xf32>
    %5 = arith.addf %2, %4 : vector<32x256xf32>
    %cst_5 = arith.constant 0.000000e+00 : f32
    %6 = vector.broadcast %cst_5 : f32 to vector<32x256xf32>
    %7 = arith.cmpf oge, %5, %6 : vector<32x256xf32>
    %cst_6 = arith.constant 2.000000e-01 : f32
    %8 = vector.broadcast %cst_6 : f32 to vector<32x256xf32>
    %9 = arith.mulf %8, %5 : vector<32x256xf32>
    %10 = arith.select %7, %5, %9 : vector<32x256xi1>, vector<32x256xf32>
    %11 = arith.truncf %10 : vector<32x256xf32> to vector<32x256xbf16>
    %c0_7 = arith.constant 0 : index
    %c0_8 = arith.constant 0 : index
    %12 = vector.load %arg4[%c0_7, %c0_8] : memref<32x256xbf16, #tpu.memory_space<vmem>>, vector<32x256xbf16>
    tpu.vector_store %arg4[%c0_7, %c0_8], %11 {strides = array<i32>} : memref<32x256xbf16, #tpu.memory_space<vmem>>, vector<32x256xbf16>,
    return
  }
  func.func @transform_0(%arg0: i32) -> (i32, i32) {
    %c0_i32 = arith.constant 0 : i32
    %c0_i32_0 = arith.constant 0 : i32
    return %arg0, %c0_i32 : i32, i32
  }
  func.func @transform_1(%arg0: i32) -> (i32, i32) {
    %c0_i32 = arith.constant 0 : i32
    %c0_i32_0 = arith.constant 0 : i32
    %c0_i32_1 = arith.constant 0 : i32
    return %c0_i32, %c0_i32_0 : i32, i32
  }
  func.func @transform_2(%arg0: i32) -> (i32, i32) {
    %c0_i32 = arith.constant 0 : i32
    %c0_i32_0 = arith.constant 0 : i32
    %c0_i32_1 = arith.constant 0 : i32
    return %c0_i32, %c0_i32_0 : i32, i32
  }
  func.func @transform_3(%arg0: i32) -> (i32, i32) {
    %c0_i32 = arith.constant 0 : i32
    %c0_i32_0 = arith.constant 0 : i32
    return %arg0, %c0_i32 : i32, i32
  }
}

module attributes {stable_mosaic.version = 11 : i64} {
  func.func @_conv_matmul_lrelu_kernel(%arg0: i32, %arg1: memref<4x4096xbf16, #tpu.memory_space<vmem>>, %arg2: memref<4096x128xbf16, #tpu.memory_space<vmem>>, %arg3: memref<1x128xf32, #tpu.memory_space<vmem>>, %arg4: memref<4x128xf32, #tpu.memory_space<vmem>>) attributes {dimension_semantics = [#tpu.dimension_semantics<parallel>], iteration_bounds = array<i64: 1>, scalar_prefetch = 0 : i64, scratch_operands = 0 : i64, tpu.core_type = #tpu.core_type<tc>, window_params = [{transform_indices = @transform_0, window_bounds = array<i64: 4, 4096>}, {pipeline_mode = #tpu.pipeline_mode<synchronous>, transform_indices = @transform_1, window_bounds = array<i64: 4096, 128>}, {pipeline_mode = #tpu.pipeline_mode<synchronous>, transform_indices = @transform_2, window_bounds = array<i64: 1, 128>}, {transform_indices = @transform_3, window_bounds = array<i64: 4, 128>}]} {
    %c0 = arith.constant 0 : index
    %c0_0 = arith.constant 0 : index
    %0 = vector.load %arg1[%c0, %c0_0] : memref<4x4096xbf16, #tpu.memory_space<vmem>>, vector<4x4096xbf16>
    %c0_1 = arith.constant 0 : index
    %c0_2 = arith.constant 0 : index
    %1 = vector.load %arg2[%c0_1, %c0_2] : memref<4096x128xbf16, #tpu.memory_space<vmem>>, vector<4096x128xbf16>
    %cst = arith.constant dense<0.000000e+00> : vector<4x128xf32>
    %2 = tpu.matmul %0, %1, %cst {dimension_numbers = #tpu.dot_dimension_numbers<[1], [0], [0], [1], [0, 0, 1, 1], [], []>} : vector<4x4096xbf16>, vector<4096x128xbf16>, vector<4x128xf32> -> vector<4x128xf32>
    %c0_3 = arith.constant 0 : index
    %c0_4 = arith.constant 0 : index
    %3 = vector.load %arg3[%c0_3, %c0_4] : memref<1x128xf32, #tpu.memory_space<vmem>>, vector<1x128xf32>
    %4 = vector.broadcast %3 : vector<1x128xf32> to vector<4x128xf32>
    %5 = arith.addf %2, %4 : vector<4x128xf32>
    %cst_5 = arith.constant 0.000000e+00 : f32
    %6 = vector.broadcast %cst_5 : f32 to vector<4x128xf32>
    %7 = arith.cmpf oge, %5, %6 : vector<4x128xf32>
    %cst_6 = arith.constant 2.000000e-01 : f32
    %8 = vector.broadcast %cst_6 : f32 to vector<4x128xf32>
    %9 = arith.mulf %8, %5 : vector<4x128xf32>
    %10 = arith.select %7, %5, %9 : vector<4x128xi1>, vector<4x128xf32>
    %c0_7 = arith.constant 0 : index
    %c0_8 = arith.constant 0 : index
    %11 = vector.load %arg4[%c0_7, %c0_8] : memref<4x128xf32, #tpu.memory_space<vmem>>, vector<4x128xf32>
    tpu.vector_store %arg4[%c0_7, %c0_8], %10 {strides = array<i32>} : memref<4x128xf32, #tpu.memory_space<vmem>>, vector<4x128xf32>,
    return
  }
  func.func @transform_0(%arg0: i32) -> (i32, i32) {
    %c0_i32 = arith.constant 0 : i32
    %c0_i32_0 = arith.constant 0 : i32
    return %arg0, %c0_i32 : i32, i32
  }
  func.func @transform_1(%arg0: i32) -> (i32, i32) {
    %c0_i32 = arith.constant 0 : i32
    %c0_i32_0 = arith.constant 0 : i32
    %c0_i32_1 = arith.constant 0 : i32
    return %c0_i32, %c0_i32_0 : i32, i32
  }
  func.func @transform_2(%arg0: i32) -> (i32, i32) {
    %c0_i32 = arith.constant 0 : i32
    %c0_i32_0 = arith.constant 0 : i32
    %c0_i32_1 = arith.constant 0 : i32
    return %c0_i32, %c0_i32_0 : i32, i32
  }
  func.func @transform_3(%arg0: i32) -> (i32, i32) {
    %c0_i32 = arith.constant 0 : i32
    %c0_i32_0 = arith.constant 0 : i32
    return %arg0, %c0_i32 : i32, i32
  }
}

</mosaic_0001>

<bundles_post_ra>
// kernel: encoder_forward.5
= control target key start
LH: loop header
LB: loop body
LE: loop exit
PB: predicated region body
PF: predicated region fallthrough
CT: control target
= control target key end

     0   :  { %s3221_s12 = smov 0   ;;  %s4061_s0 = inlined_call_operand.vmem [shape: bf16[4096,75], index: 0, kind: input, shape index: {}]   ;;  %s4062_s1 = inlined_call_operand.vmem [shape: bf16[75,32], index: 1, kind: input, shape index: {}]   ;;  %s4063_s2 = inlined_call_operand.vmem [shape: f32[1,32], index: 2, kind: input, shape index: {}]   ;;  %s4064_s3 = inlined_call_operand.vmem [shape: bf16[4096,32], index: 3, kind: output, shape index: {}]  }
   0x1 LB: > { %s2495_s13 = sadd.s32 4294967295, %s3198_s12   ;;  %p2499_p0 = scmp.ge.s32.totalorder %s3198_s12, 1  ;;  %s3198_s12 = sphi %s3221_s12, %s13_s12  }
   0x2   : > { %p138_p1 = scmp.lt.s32.totalorder %s3198_s12, 5 }
   0x4   : > { %p139_p2 = pnand %p2499_p0, %p138_p1 }
   0x5   : > { %v3122_v0 = vld [vmem:[%s4062_s1] sm:$0xff] (!%p139_p2)   ;;  %v3123_v1 = vld [vmem:[%s4062_s1 + $0x8] sm:$0xff] (!%p139_p2)   ;;  %vm862_vm0 = vcmask (!%p139_p2), 1044480   ;;  %v3124_v2 = vld [vmem:[%s4062_s1 + $0x10] sm:$0xff] (!%p139_p2)   ;;  %s2500_s20 = sshll.u32 (!%p139_p2), %s2495_s13, 7  ;;  %vm863_vm1 = vcmask (!%p139_p2), 1045504  }
   0x6   : > { %142 = sbr.rel (%p139_p2) target bundleno = 404 (0x194), region = 32  ;;  %2965 = vmatprep.subr.bf16.mxu0 (!%p139_p2), %v3122_v0  ;;  %3103 = vmatprep.subr.bf16.mxu1 (!%p139_p2), %v3122_v0  ;;  %v3200_v3 = vmov (!%p139_p2), 65535   ;;  %p163_p3 = scmp.lt.s32.totalorder (!%p139_p2), %s2500_s20, 511  ;;  %v3125_v5 = vld [vmem:[%s4062_s1 + $0x18] sm:$0xff] (!%p139_p2)   ;;  %v3126_v6 = vld [vmem:[%s4062_s1 + $0x20] sm:$0x3f] (!%p139_p2)  }
   0x7   : > { %2966 = vmatpush3.bf16.msra.mxu0 (!%p139_p2), %v3122_v0  ;;  %3108 = vmatpush3.bf16.msra.mxu1 (!%p139_p2), %v3122_v0  ;;  %v864_v4 = vsel (!%p139_p2), %vm862_vm0, 4294967295, %v3200_v3  ;;  %vm669_vm2 = vcmask (!%p139_p2), 613376   ;;  %vm2310_vm3 = vcmask (!%p139_p2), 257024  }
   0x8   : > { %2967 = vmatprep.subr.bf16.mxu0 (!%p139_p2), %v3123_v1  ;;  %3104 = vmatprep.subr.bf16.mxu1 (!%p139_p2), %v3123_v1  ;;  %v865_v7 = vsel (!%p139_p2), %vm863_vm1, %v864_v4, 0 }
   0x9   : > { %v867_v8 = vand.u32 (!%p139_p2), %v3126_v6, %v865_v7 }
   0xb   : > { %2968 = vmatpush3.bf16.msra.mxu0 (!%p139_p2), %v3123_v1  ;;  %3109 = vmatpush3.bf16.msra.mxu1 (!%p139_p2), %v3123_v1 }
   0xc   : > { %2969 = vmatprep.subr.bf16.mxu0 (!%p139_p2), %v3124_v2  ;;  %3105 = vmatprep.subr.bf16.mxu1 (!%p139_p2), %v3124_v2 }
   0xd   : > { %s4066_s20 = smov (!%p163_p3, %s2500_s20), 511 }
   0xe   : > { %s2501_s25 = sshll.u32 %s4066_s20, 2 }
   0xf   : > { %2970 = vmatpush3.bf16.msra.mxu0 %v3124_v2  ;;  %3110 = vmatpush3.bf16.msra.mxu1 %v3124_v2  ;;  %s3252_s28 = scalar_lea.vmem %s4061_s0, %s2501_s25  ;;  %s3396_s6 = scalar_lea.vmem %s4064_s3, %s2501_s25 }
  0x10   : > { %2971 = vmatprep.subr.bf16.mxu0 %v3125_v5  ;;  %3106 = vmatprep.subr.bf16.mxu1 %v3125_v5  ;;  %v3127_v9 = vld [vmem:[%s3252_s28] sm:$0xff]   ;;  %v3129_v11 = vld [vmem:[%s3252_s28 + $0x8] sm:$0xff]   ;;  %v3131_v13 = vld [vmem:[%s3252_s28 + $0x10] sm:$0xff]  }
  0x11   : > { %v3128_v10 = vld [vmem:[%s3252_s28 + $0x100] sm:$0xff]   ;;  %2975 = vmatprep.mubr.msk.bf16.mxu0 %vm669_vm2, %v3127_v9  ;;  %v3130_v12 = vld [vmem:[%s3252_s28 + $0x108] sm:$0xff]   ;;  %v3132_v14 = vld [vmem:[%s3252_s28 + $0x110] sm:$0xff]  }
  0x12   : > { %3039 = vmatprep.mubr.msk.bf16.mxu1 %vm669_vm2, %v3128_v10  ;;  %v3133_v15 = vld [vmem:[%s3252_s28 + $0x18] sm:$0xff]   ;;  %v3135_v17 = vld [vmem:[%s3252_s28 + $0x20] sm:$0xff]   ;;  %v3137_v19 = vld [vmem:[%s3252_s28 + $0x28] sm:$0xff]  }
  0x13   : > { %2972 = vmatpush3.bf16.msra.mxu0 %v3125_v5  ;;  %3111 = vmatpush3.bf16.msra.mxu1 %v3125_v5  ;;  %v3134_v16 = vld [vmem:[%s3252_s28 + $0x118] sm:$0xff]   ;;  %v3136_v18 = vld [vmem:[%s3252_s28 + $0x120] sm:$0xff]   ;;  %v3138_v20 = vld [vmem:[%s3252_s28 + $0x128] sm:$0xff]  }
  0x14   : > { %2973 = vmatprep.subr.bf16.mxu0 %v867_v8  ;;  %3107 = vmatprep.subr.bf16.mxu1 %v867_v8  ;;  %v3139_v21 = vld [vmem:[%s3252_s28 + $0x30] sm:$0xff]   ;;  %v3141_v23 = vld [vmem:[%s3252_s28 + $0x38] sm:$0xff]   ;;  %v3143_v25 = vld [vmem:[%s3252_s28 + $0x40] sm:$0xff]  }
  0x15   : > { %v3140_v22 = vld [vmem:[%s3252_s28 + $0x130] sm:$0xff]   ;;  %v3142_v24 = vld [vmem:[%s3252_s28 + $0x138] sm:$0xff]   ;;  %v3144_v26 = vld [vmem:[%s3252_s28 + $0x140] sm:$0xff]  }
  0x16   : > { %v3145_v27 = vld [vmem:[%s3252_s28 + $0x48] sm:$0xff]   ;;  %v3147_v29 = vld [vmem:[%s3252_s28 + $0x50] sm:$0xff]   ;;  %v3149_v31 = vld [vmem:[%s3252_s28 + $0x58] sm:$0xff]  }
  0x17   : > { %2974 = vmatpush3.bf16.msra.mxu0 %v867_v8  ;;  %3112 = vmatpush3.bf16.msra.mxu1 %v867_v8  ;;  %v3146_v28 = vld [vmem:[%s3252_s28 + $0x148] sm:$0xff]   ;;  %v3148_v30 = vld [vmem:[%s3252_s28 + $0x150] sm:$0xff]   ;;  %v3150_v32 = vld [vmem:[%s3252_s28 + $0x158] sm:$0xff]  }
  0x18   : > { %v3151_v33 = vld [vmem:[%s3252_s28 + $0x60] sm:$0xff]   ;;  %v3153_v35 = vld [vmem:[%s3252_s28 + $0x68] sm:$0xff]   ;;  %v3155_v37 = vld [vmem:[%s3252_s28 + $0x70] sm:$0xff]  }
  0x19   : > { %v3152_v34 = vld [vmem:[%s3252_s28 + $0x160] sm:$0xff]   ;;  %v3154_v36 = vld [vmem:[%s3252_s28 + $0x168] sm:$0xff]   ;;  %v3156_v38 = vld [vmem:[%s3252_s28 + $0x170] sm:$0xff]  }
  0x1a   : > { %2976 = vmatmul.mubr.msk.bf16.vlgmr.msra.gmra.mrb[0].mxu0 %vm669_vm2, %v3129_v11  ;;  %3040 = vmatmul.mubr.msk.bf16.vlgmr.msra.gmra.mrb[0].mxu1 %vm669_vm2, %v3130_v12  ;;  %v3157_v39 = vld [vmem:[%s3252_s28 + $0x78] sm:$0xff]   ;;  %v3159_v41 = vld [vmem:[%s3252_s28 + $0x80] sm:$0xff]   ;;  %v3161_v43 = vld [vmem:[%s3252_s28 + $0x88] sm:$0xff]  }
  0x1b   : > { %2979 = vmatprep.mubr.msk.bf16.mxu0 %vm669_vm2, %v3131_v13  ;;  %3043 = vmatprep.mubr.msk.bf16.mxu1 %vm669_vm2, %v3132_v14  ;;  %v3158_v40 = vld [vmem:[%s3252_s28 + $0x178] sm:$0xff]   ;;  %v3160_v42 = vld [vmem:[%s3252_s28 + $0x180] sm:$0xff]   ;;  %v3162_v44 = vld [vmem:[%s3252_s28 + $0x188] sm:$0xff]  }
  0x1c   : > { %v3163_v45 = vld [vmem:[%s3252_s28 + $0x90] sm:$0xff]   ;;  %v3165_v47 = vld [vmem:[%s3252_s28 + $0x98] sm:$0xff]   ;;  %v3167_v49 = vld [vmem:[%s3252_s28 + $0xa0] sm:$0xff]  }
  0x1d   : > { %v3164_v46 = vld [vmem:[%s3252_s28 + $0x190] sm:$0xff]   ;;  %v3166_v48 = vld [vmem:[%s3252_s28 + $0x198] sm:$0xff]   ;;  %v3168_v50 = vld [vmem:[%s3252_s28 + $0x1a0] sm:$0xff]  }
  0x1e   : > { %v3169_v51 = vld [vmem:[%s3252_s28 + $0xa8] sm:$0xff]   ;;  %v3171_v53 = vld [vmem:[%s3252_s28 + $0xb0] sm:$0xff]   ;;  %v3173_v55 = vld [vmem:[%s3252_s28 + $0xb8] sm:$0xff]  }
  0x1f   : > { %v3170_v52 = vld [vmem:[%s3252_s28 + $0x1a8] sm:$0xff]   ;;  %v3172_v54 = vld [vmem:[%s3252_s28 + $0x1b0] sm:$0xff]   ;;  %v3174_v56 = vld [vmem:[%s3252_s28 + $0x1b8] sm:$0xff]  }
  0x20   : > { %v3175_v57 = vld [vmem:[%s3252_s28 + $0xc0] sm:$0xff]   ;;  %v3177_v59 = vld [vmem:[%s3252_s28 + $0xc8] sm:$0xff]   ;;  %v3179_v61 = vld [vmem:[%s3252_s28 + $0xd0] sm:$0xff]  }
  0x21   : > { %v3176_v58 = vld [vmem:[%s3252_s28 + $0x1c0] sm:$0xff]   ;;  %v3178_v60 = vld [vmem:[%s3252_s28 + $0x1c8] sm:$0xff]   ;;  %v3180_v62 = vld [vmem:[%s3252_s28 + $0x1d0] sm:$0xff]  }
  0x22   : > { %2980 = vmatmul.mubr.msk.bf16.gmra.mrb[4].mxu0 %vm669_vm2, %v3133_v15  ;;  %3044 = vmatmul.mubr.msk.bf16.gmra.mrb[4].mxu1 %vm669_vm2, %v3134_v16  ;;  %v3181_v63 = vld [vmem:[%s3252_s28 + $0xd8] sm:$0xff]   ;;  %v3183_v1 = vld [vmem:[%s3252_s28 + $0xe0] sm:$0xff]   ;;  %v3185_v3 = vld [vmem:[%s3252_s28 + $0xe8] sm:$0xff]  }
  0x23   : > { %2983 = vmatprep.mubr.msk.bf16.mxu0 %vm669_vm2, %v3135_v17  ;;  %3047 = vmatprep.mubr.msk.bf16.mxu1 %vm669_vm2, %v3136_v18  ;;  %v3182_v0 = vld [vmem:[%s3252_s28 + $0x1d8] sm:$0xff]   ;;  %v3184_v2 = vld [vmem:[%s3252_s28 + $0x1e0] sm:$0xff]   ;;  %v3186_v4 = vld [vmem:[%s3252_s28 + $0x1e8] sm:$0xff]  }
  0x24   : > { %v3187_v5 = vld [vmem:[%s3252_s28 + $0xf0] sm:$0xff]   ;;  %v3189_v7 = vld [vmem:[%s3252_s28 + $0xf8] sm:$0xff]   ;;  %v3385_v9 = vld [vmem:[%s4063_s2] ss:$0 sm:$0xff] }
  0x25   : > { %v3188_v6 = vld [vmem:[%s3252_s28 + $0x1f0] sm:$0xff]   ;;  %v3190_v8 = vld [vmem:[%s3252_s28 + $0x1f8] sm:$0xff]  }
  0x2a   : > { %2984 = vmatmul.mubr.msk.bf16.gmra.mrb[8].mxu0 %vm669_vm2, %v3137_v19  ;;  %3048 = vmatmul.mubr.msk.bf16.gmra.mrb[8].mxu1 %vm669_vm2, %v3138_v20 }
  0x2b   : > { %2987 = vmatprep.mubr.msk.bf16.mxu0 %vm669_vm2, %v3139_v21  ;;  %3051 = vmatprep.mubr.msk.bf16.mxu1 %vm669_vm2, %v3140_v22 }
  0x32   : > { %2988 = vmatmul.mubr.msk.bf16.gmra.mrb[12].mxu0 %vm669_vm2, %v3141_v23  ;;  %3052 = vmatmul.mubr.msk.bf16.gmra.mrb[12].mxu1 %vm669_vm2, %v3142_v24 }
  0x33   : > { %2991 = vmatprep.mubr.msk.bf16.mxu0 %vm669_vm2, %v3143_v25  ;;  %3055 = vmatprep.mubr.msk.bf16.mxu1 %vm669_vm2, %v3144_v26 }
  0x3a   : > { %2992 = vmatmul.mubr.msk.bf16.gmra.mrb[16].mxu0 %vm669_vm2, %v3145_v27  ;;  %3056 = vmatmul.mubr.msk.bf16.gmra.mrb[16].mxu1 %vm669_vm2, %v3146_v28 }
  0x3b   : > { %2995 = vmatprep.mubr.msk.bf16.mxu0 %vm669_vm2, %v3147_v29  ;;  %3059 = vmatprep.mubr.msk.bf16.mxu1 %vm669_vm2, %v3148_v30 }
  0x42   : > { %2996 = vmatmul.mubr.msk.bf16.gmra.mrb[20].mxu0 %vm669_vm2, %v3149_v31  ;;  %3060 = vmatmul.mubr.msk.bf16.gmra.mrb[20].mxu1 %vm669_vm2, %v3150_v32 }
  0x43   : > { %2999 = vmatprep.mubr.msk.bf16.mxu0 %vm669_vm2, %v3151_v33  ;;  %3063 = vmatprep.mubr.msk.bf16.mxu1 %vm669_vm2, %v3152_v34 }
  0x4a   : > { %3000 = vmatmul.mubr.msk.bf16.gmra.mrb[24].mxu0 %vm669_vm2, %v3153_v35  ;;  %3064 = vmatmul.mubr.msk.bf16.gmra.mrb[24].mxu1 %vm669_vm2, %v3154_v36 }
  0x4b   : > { %3003 = vmatprep.mubr.msk.bf16.mxu0 %vm669_vm2, %v3155_v37  ;;  %3067 = vmatprep.mubr.msk.bf16.mxu1 %vm669_vm2, %v3156_v38 }
  0x52   : > { %3004 = vmatmul.mubr.msk.bf16.gmra.mrb[28].mxu0 %vm669_vm2, %v3157_v39  ;;  %3068 = vmatmul.mubr.msk.bf16.gmra.mrb[28].mxu1 %vm669_vm2, %v3158_v40 }
  0x53   : > { %3007 = vmatprep.mubr.msk.bf16.mxu0 %vm669_vm2, %v3159_v41  ;;  %3071 = vmatprep.mubr.msk.bf16.mxu1 %vm669_vm2, %v3160_v42 }
  0x5a   : > { %3008 = vmatmul.mubr.msk.bf16.gmra.mrb[32].mxu0 %vm669_vm2, %v3161_v43  ;;  %3072 = vmatmul.mubr.msk.bf16.gmra.mrb[32].mxu1 %vm669_vm2, %v3162_v44 }
  0x5b   : > { %3011 = vmatprep.mubr.msk.bf16.mxu0 %vm669_vm2, %v3163_v45  ;;  %3075 = vmatprep.mubr.msk.bf16.mxu1 %vm669_vm2, %v3164_v46 }
  0x62   : > { %3012 = vmatmul.mubr.msk.bf16.gmra.mrb[36].mxu0 %vm669_vm2, %v3165_v47  ;;  %3076 = vmatmul.mubr.msk.bf16.gmra.mrb[36].mxu1 %vm669_vm2, %v3166_v48 }
  0x63   : > { %3015 = vmatprep.mubr.msk.bf16.mxu0 %vm669_vm2, %v3167_v49  ;;  %3079 = vmatprep.mubr.msk.bf16.mxu1 %vm669_vm2, %v3168_v50 }
  0x6a   : > { %3016 = vmatmul.mubr.msk.bf16.gmra.mrb[40].mxu0 %vm669_vm2, %v3169_v51  ;;  %3080 = vmatmul.mubr.msk.bf16.gmra.mrb[40].mxu1 %vm669_vm2, %v3170_v52 }
  0x6b   : > { %3019 = vmatprep.mubr.msk.bf16.mxu0 %vm669_vm2, %v3171_v53  ;;  %3083 = vmatprep.mubr.msk.bf16.mxu1 %vm669_vm2, %v3172_v54 }
  0x72   : > { %3020 = vmatmul.mubr.msk.bf16.gmra.mrb[44].mxu0 %vm669_vm2, %v3173_v55  ;;  %3084 = vmatmul.mubr.msk.bf16.gmra.mrb[44].mxu1 %vm669_vm2, %v3174_v56 }
  0x73   : > { %3023 = vmatprep.mubr.msk.bf16.mxu0 %vm669_vm2, %v3175_v57  ;;  %3087 = vmatprep.mubr.msk.bf16.mxu1 %vm669_vm2, %v3176_v58 }
  0x7a   : > { %3024 = vmatmul.mubr.msk.bf16.gmra.mrb[48].mxu0 %vm669_vm2, %v3177_v59  ;;  %3088 = vmatmul.mubr.msk.bf16.gmra.mrb[48].mxu1 %vm669_vm2, %v3178_v60 }
  0x7b   : > { %3027 = vmatprep.mubr.msk.bf16.mxu0 %vm669_vm2, %v3179_v61  ;;  %3091 = vmatprep.mubr.msk.bf16.mxu1 %vm669_vm2, %v3180_v62 }
  0x82   : > { %3028 = vmatmul.mubr.msk.bf16.gmra.mrb[52].mxu0 %vm669_vm2, %v3181_v63  ;;  %3092 = vmatmul.mubr.msk.bf16.gmra.mrb[52].mxu1 %vm669_vm2, %v3182_v0 }
  0x83   : > { %3031 = vmatprep.mubr.msk.bf16.mxu0 %vm669_vm2, %v3183_v1  ;;  %3095 = vmatprep.mubr.msk.bf16.mxu1 %vm669_vm2, %v3184_v2 }
  0x8a   : > { %3032 = vmatmul.mubr.msk.bf16.gmra.mrb[56].mxu0 %vm669_vm2, %v3185_v3  ;;  %3096 = vmatmul.mubr.msk.bf16.gmra.mrb[56].mxu1 %vm669_vm2, %v3186_v4 }
  0x8b   : > { %3035 = vmatprep.mubr.msk.bf16.mxu0 %vm669_vm2, %v3187_v5  ;;  %3099 = vmatprep.mubr.msk.bf16.mxu1 %vm669_vm2, %v3188_v6 }
  0x92   : > { %3036 = vmatmul.mubr.msk.bf16.gmra.mrb[60].mxu0 %vm669_vm2, %v3189_v7  ;;  %3100 = vmatmul.mubr.msk.bf16.gmra.mrb[60].mxu1 %vm669_vm2, %v3190_v8 }
  0xed   : > { %v2977_v10 = vpop.f32.mrb[0].mxu0  ;;  %v3041_v11 = vpop.f32.mrb[0].mxu1 }
  0xee   : > { %v912_v12 = vadd.f32 %v2977_v10, %v3385_v9  ;;  %v1168_v13 = vadd.f32 %v3041_v11, %v3385_v9  ;;  %v903_v14 = vpop.f32.mrb[1].mxu0  ;;  %v1159_v15 = vpop.f32.mrb[1].mxu1 }
  0xef   : > { %v904_v16 = vadd.f32 %v3385_v9, %v903_v14  ;;  %v1160_v17 = vadd.f32 %v3385_v9, %v1159_v15  ;;  %v2978_v18 = vpop.f32.mrb[2].mxu0  ;;  %v3042_v19 = vpop.f32.mrb[2].mxu1 }
  0xf0   : > { %vm1416_vm4 = vcmp.ge.f32.partialorder %v912_v12, 0.0  ;;  %v1544_v20 = vmul.f32 0.2, %v912_v12  ;;  %vm1480_vm5 = vcmp.ge.f32.partialorder %v1168_v13, 0.0  ;;  %v1608_v21 = vmul.f32 0.2, %v1168_v13 }
  0xf1   : > { %vm1414_vm6 = vcmp.ge.f32.partialorder %v904_v16, 0.0  ;;  %v1542_v22 = vmul.f32 0.2, %v904_v16  ;;  %vm1478_vm7 = vcmp.ge.f32.partialorder %v1160_v17, 0.0  ;;  %v1606_v23 = vmul.f32 0.2, %v1160_v17 }
  0xf2   : > { %v1672_v24 = vsel %vm1416_vm4, %v912_v12, %v1544_v20  ;;  %v1736_v25 = vsel %vm1480_vm5, %v1168_v13, %v1608_v21  ;;  %v915_v26 = vadd.f32 %v2978_v18, %v3385_v9  ;;  %v1171_v27 = vadd.f32 %v3042_v19, %v3385_v9  ;;  %v906_v28 = vpop.f32.mrb[3].mxu0  ;;  %v1162_v29 = vpop.f32.mrb[3].mxu1 }
  0xf3   : > { %v2770_v30 = vpack.c.bf16 %v1672_v24, %v1672_v24  ;;  %v2834_v31 = vpack.c.bf16 %v1736_v25, %v1736_v25  ;;  %v1670_v32 = vsel %vm1414_vm6, %v904_v16, %v1542_v22  ;;  %v1734_v33 = vsel %vm1478_vm7, %v1160_v17, %v1606_v23 }
  0xf4   : > { %v2768_v34 = vpack.c.bf16 %v1670_v32, %v1670_v32  ;;  %v2832_v35 = vpack.c.bf16 %v1734_v33, %v1734_v33  ;;  %vm1417_vm8 = vcmp.ge.f32.partialorder %v915_v26, 0.0  ;;  %v1545_v36 = vmul.f32 0.2, %v915_v26 }
  0xf5   : > { %2313 = vst.msk [vmem:[%s3396_s6 + $0x8] sm:$0xf] %vm2310_vm3, %v2770_v30  ;;  %2377 = vst.msk [vmem:[%s3396_s6 + $0x108] sm:$0xf] %vm2310_vm3, %v2834_v31  ;;  %vm1481_vm9 = vcmp.ge.f32.partialorder %v1171_v27, 0.0  ;;  %v907_v38 = vadd.f32 %v3385_v9, %v906_v28  ;;  %v1163_v39 = vadd.f32 %v3385_v9, %v1162_v29  ;;  %v2981_v40 = vpop.f32.mrb[4].mxu0 }
  0xf6   : > { %v1609_v37 = vmul.f32 0.2, %v1171_v27  ;;  %v3045_v41 = vpop.f32.mrb[4].mxu1  ;;  %2311 = vst.msk [vmem:[%s3396_s6] sm:$0xf] %vm2310_vm3, %v2768_v34  ;;  %v1673_v42 = vsel %vm1417_vm8, %v915_v26, %v1545_v36  ;;  %v928_v43 = vadd.f32 %v2981_v40, %v3385_v9  ;;  %v919_v45 = vpop.f32.mrb[5].mxu0 }
  0xf7   : > { %2375 = vst.msk [vmem:[%s3396_s6 + $0x100] sm:$0xf] %vm2310_vm3, %v2832_v35  ;;  %v1184_v44 = vadd.f32 %v3045_v41, %v3385_v9  ;;  %v1175_v46 = vpop.f32.mrb[5].mxu1  ;;  %v2771_v47 = vpack.c.bf16 %v1673_v42, %v1673_v42  ;;  %vm1415_vm10 = vcmp.ge.f32.partialorder %v907_v38, 0.0  ;;  %v1543_v49 = vmul.f32 0.2, %v907_v38 }
  0xf8   : > { %v1737_v48 = vsel %vm1481_vm9, %v1171_v27, %v1609_v37  ;;  %v2982_v50 = vpop.f32.mrb[6].mxu0  ;;  %v3046_v51 = vpop.f32.mrb[6].mxu1  ;;  %vm1479_vm11 = vcmp.ge.f32.partialorder %v1163_v39, 0.0  ;;  %v1607_v53 = vmul.f32 0.2, %v1163_v39  ;;  %vm1420_vm12 = vcmp.ge.f32.partialorder %v928_v43, 0.0 }
  0xf9   : > { %v2835_v52 = vpack.c.bf16 %v1737_v48, %v1737_v48  ;;  %v922_v54 = vpop.f32.mrb[7].mxu0  ;;  %v1178_v55 = vpop.f32.mrb[7].mxu1  ;;  %2314 = vst.msk [vmem:[%s3396_s6 + $0xc] sm:$0xf] %vm2310_vm3, %v2771_v47  ;;  %v1671_v56 = vsel %vm1415_vm10, %v907_v38, %v1543_v49  ;;  %v1548_v57 = vmul.f32 0.2, %v928_v43  ;;  %v920_v61 = vadd.f32 %v3385_v9, %v919_v45 }
  0xfa   : > { %vm1484_vm13 = vcmp.ge.f32.partialorder %v1184_v44, 0.0  ;;  %v1612_v58 = vmul.f32 0.2, %v1184_v44  ;;  %v2769_v59 = vpack.c.bf16 %v1671_v56, %v1671_v56  ;;  %v1735_v60 = vsel %vm1479_vm11, %v1163_v39, %v1607_v53 }
  0xfb   : > { %2378 = vst.msk [vmem:[%s3396_s6 + $0x10c] sm:$0xf] %vm2310_vm3, %v2835_v52  ;;  %v1176_v62 = vadd.f32 %v3385_v9, %v1175_v46  ;;  %v2833_v63 = vpack.c.bf16 %v1735_v60, %v1735_v60  ;;  %v1676_v0 = vsel %vm1420_vm12, %v928_v43, %v1548_v57  ;;  %v931_v2 = vadd.f32 %v2982_v50, %v3385_v9 }
  0xfc   : > { %v1740_v1 = vsel %vm1484_vm13, %v1184_v44, %v1612_v58  ;;  %2312 = vst.msk [vmem:[%s3396_s6 + $0x4] sm:$0xf] %vm2310_vm3, %v2769_v59  ;;  %v2774_v3 = vpack.c.bf16 %v1676_v0, %v1676_v0  ;;  %vm1418_vm14 = vcmp.ge.f32.partialorder %v920_v61, 0.0  ;;  %v1546_v5 = vmul.f32 0.2, %v920_v61 }
  0xfd   : > { %v2838_v4 = vpack.c.bf16 %v1740_v1, %v1740_v1  ;;  %2376 = vst.msk [vmem:[%s3396_s6 + $0x104] sm:$0xf] %vm2310_vm3, %v2833_v63  ;;  %vm1482_vm15 = vcmp.ge.f32.partialorder %v1176_v62, 0.0  ;;  %v1610_v6 = vmul.f32 0.2, %v1176_v62  ;;  %vm1421_vm0 = vcmp.ge.f32.partialorder %v931_v2, 0.0 }
  0xfe   : > { %v1549_v7 = vmul.f32 0.2, %v931_v2  ;;  %2317 = vst.msk [vmem:[%s3396_s6 + $0x18] sm:$0xf] %vm2310_vm3, %v2774_v3  ;;  %v1674_v8 = vsel %vm1418_vm14, %v920_v61, %v1546_v5  ;;  %v1187_v10 = vadd.f32 %v3046_v51, %v3385_v9  ;;  %v923_v11 = vadd.f32 %v3385_v9, %v922_v54  ;;  %v2985_v13 = vpop.f32.mrb[8].mxu0  ;;  %v3049_v14 = vpop.f32.mrb[8].mxu1 }
  0xff   : > { %2381 = vst.msk [vmem:[%s3396_s6 + $0x118] sm:$0xf] %vm2310_vm3, %v2838_v4  ;;  %v1179_v12 = vadd.f32 %v3385_v9, %v1178_v55  ;;  %v2772_v15 = vpack.c.bf16 %v1674_v8, %v1674_v8  ;;  %v1738_v16 = vsel %vm1482_vm15, %v1176_v62, %v1610_v6  ;;  %v944_v18 = vadd.f32 %v2985_v13, %v3385_v9  ;;  %v935_v19 = vpop.f32.mrb[9].mxu0  ;;  %v1191_v20 = vpop.f32.mrb[9].mxu1 }
 0x100   : > { %v1677_v17 = vsel %vm1421_vm0, %v931_v2, %v1549_v7  ;;  %v2836_v21 = vpack.c.bf16 %v1738_v16, %v1738_v16  ;;  %vm1485_vm1 = vcmp.ge.f32.partialorder %v1187_v10, 0.0  ;;  %v1613_v23 = vmul.f32 0.2, %v1187_v10  ;;  %v2986_v24 = vpop.f32.mrb[10].mxu0  ;;  %v3050_v25 = vpop.f32.mrb[10].mxu1 }
 0x101   : > { %v2775_v22 = vpack.c.bf16 %v1677_v17, %v1677_v17  ;;  %2315 = vst.msk [vmem:[%s3396_s6 + $0x10] sm:$0xf] %vm2310_vm3, %v2772_v15  ;;  %vm1419_vm2 = vcmp.ge.f32.partialorder %v923_v11, 0.0  ;;  %v1547_v26 = vmul.f32 0.2, %v923_v11  ;;  %vm1483_vm4 = vcmp.ge.f32.partialorder %v1179_v12, 0.0 }
 0x102   : > { %v1611_v27 = vmul.f32 0.2, %v1179_v12  ;;  %2379 = vst.msk [vmem:[%s3396_s6 + $0x110] sm:$0xf] %vm2310_vm3, %v2836_v21  ;;  %v1741_v28 = vsel %vm1485_vm1, %v1187_v10, %v1613_v23  ;;  %vm1424_vm5 = vcmp.ge.f32.partialorder %v944_v18, 0.0  ;;  %v1200_v30 = vadd.f32 %v3049_v14, %v3385_v9  ;;  %v938_v31 = vpop.f32.mrb[11].mxu0 }
 0x103   : > { %2318 = vst.msk [vmem:[%s3396_s6 + $0x1c] sm:$0xf] %vm2310_vm3, %v2775_v22  ;;  %v1552_v29 = vmul.f32 0.2, %v944_v18  ;;  %v1194_v32 = vpop.f32.mrb[11].mxu1  ;;  %v2839_v33 = vpack.c.bf16 %v1741_v28, %v1741_v28  ;;  %v1675_v34 = vsel %vm1419_vm2, %v923_v11, %v1547_v26  ;;  %v936_v36 = vadd.f32 %v3385_v9, %v935_v19 }
 0x104   : > { %v1739_v35 = vsel %vm1483_vm4, %v1179_v12, %v1611_v27  ;;  %v2773_v37 = vpack.c.bf16 %v1675_v34, %v1675_v34  ;;  %vm1488_vm6 = vcmp.ge.f32.partialorder %v1200_v30, 0.0  ;;  %v1616_v41 = vmul.f32 0.2, %v1200_v30 }
 0x105   : > { %v2837_v38 = vpack.c.bf16 %v1739_v35, %v1739_v35  ;;  %v1680_v39 = vsel %vm1424_vm5, %v944_v18, %v1552_v29  ;;  %2382 = vst.msk [vmem:[%s3396_s6 + $0x11c] sm:$0xf] %vm2310_vm3, %v2839_v33  ;;  %vm1422_vm7 = vcmp.ge.f32.partialorder %v936_v36, 0.0  ;;  %v1550_v42 = vmul.f32 0.2, %v936_v36  ;;  %v2989_v43 = vpop.f32.mrb[12].mxu0 }
 0x106   : > { %v2778_v40 = vpack.c.bf16 %v1680_v39, %v1680_v39  ;;  %2316 = vst.msk [vmem:[%s3396_s6 + $0x14] sm:$0xf] %vm2310_vm3, %v2773_v37  ;;  %v1192_v44 = vadd.f32 %v3385_v9, %v1191_v20  ;;  %v947_v45 = vadd.f32 %v2986_v24, %v3385_v9  ;;  %v1203_v46 = vadd.f32 %v3050_v25, %v3385_v9  ;;  %v3053_v48 = vpop.f32.mrb[12].mxu1  ;;  %v951_v49 = vpop.f32.mrb[13].mxu0 }
 0x107   : > { %2380 = vst.msk [vmem:[%s3396_s6 + $0x114] sm:$0xf] %vm2310_vm3, %v2837_v38  ;;  %v939_v47 = vadd.f32 %v3385_v9, %v938_v31  ;;  %v1744_v50 = vsel %vm1488_vm6, %v1200_v30, %v1616_v41  ;;  %v1678_v51 = vsel %vm1422_vm7, %v936_v36, %v1550_v42  ;;  %v1195_v52 = vadd.f32 %v3385_v9, %v1194_v32  ;;  %v1207_v54 = vpop.f32.mrb[13].mxu1  ;;  %v2990_v55 = vpop.f32.mrb[14].mxu0 }
 0x108   : > { %2321 = vst.msk [vmem:[%s3396_s6 + $0x28] sm:$0xf] %vm2310_vm3, %v2778_v40  ;;  %v960_v53 = vadd.f32 %v2989_v43, %v3385_v9  ;;  %v2842_v56 = vpack.c.bf16 %v1744_v50, %v1744_v50  ;;  %v2776_v57 = vpack.c.bf16 %v1678_v51, %v1678_v51  ;;  %vm1486_vm8 = vcmp.ge.f32.partialorder %v1192_v44, 0.0  ;;  %v3054_v59 = vpop.f32.mrb[14].mxu1  ;;  %v954_v60 = vpop.f32.mrb[15].mxu0 }
 0x109   : > { %v1614_v58 = vmul.f32 0.2, %v1192_v44  ;;  %vm1425_vm9 = vcmp.ge.f32.partialorder %v947_v45, 0.0  ;;  %v1553_v61 = vmul.f32 0.2, %v947_v45  ;;  %vm1489_vm10 = vcmp.ge.f32.partialorder %v1203_v46, 0.0 }
 0x10a   : > { %v1617_v62 = vmul.f32 0.2, %v1203_v46  ;;  %2385 = vst.msk [vmem:[%s3396_s6 + $0x128] sm:$0xf] %vm2310_vm3, %v2842_v56  ;;  %2319 = vst.msk [vmem:[%s3396_s6 + $0x20] sm:$0xf] %vm2310_vm3, %v2776_v57  ;;  %v1216_v13 = vadd.f32 %v3053_v48, %v3385_v9  ;;  %v952_v17 = vadd.f32 %v3385_v9, %v951_v49  ;;  %v1208_v18 = vadd.f32 %v3385_v9, %v1207_v54 }
 0x10b   : > { %v1742_v63 = vsel %vm1486_vm8, %v1192_v44, %v1614_v58  ;;  %vm1423_vm11 = vcmp.ge.f32.partialorder %v939_v47, 0.0  ;;  %v1551_v0 = vmul.f32 0.2, %v939_v47  ;;  %vm1487_vm12 = vcmp.ge.f32.partialorder %v1195_v52, 0.0  ;;  %v1210_v1 = vpop.f32.mrb[15].mxu1 }
 0x10c   : > { %v2840_v2 = vpack.c.bf16 %v1742_v63, %v1742_v63  ;;  %v1681_v3 = vsel %vm1425_vm9, %v947_v45, %v1553_v61  ;;  %v1745_v4 = vsel %vm1489_vm10, %v1203_v46, %v1617_v62  ;;  %v1615_v5 = vmul.f32 0.2, %v1195_v52 }
 0x10d   : > { %v2779_v6 = vpack.c.bf16 %v1681_v3, %v1681_v3  ;;  %v2843_v7 = vpack.c.bf16 %v1745_v4, %v1745_v4  ;;  %v1679_v8 = vsel %vm1423_vm11, %v939_v47, %v1551_v0  ;;  %vm1428_vm13 = vcmp.ge.f32.partialorder %v960_v53, 0.0  ;;  %v2993_v14 = vpop.f32.mrb[16].mxu0  ;;  %v3057_v15 = vpop.f32.mrb[16].mxu1 }
 0x10e   : > { %2383 = vst.msk [vmem:[%s3396_s6 + $0x120] sm:$0xf] %vm2310_vm3, %v2840_v2  ;;  %v2777_v10 = vpack.c.bf16 %v1679_v8, %v1679_v8  ;;  %v1743_v11 = vsel %vm1487_vm12, %v1195_v52, %v1615_v5  ;;  %v1556_v12 = vmul.f32 0.2, %v960_v53  ;;  %v963_v19 = vadd.f32 %v2990_v55, %v3385_v9  ;;  %v967_v20 = vpop.f32.mrb[17].mxu0  ;;  %v1223_v21 = vpop.f32.mrb[17].mxu1 }
 0x10f   : > { %2322 = vst.msk [vmem:[%s3396_s6 + $0x2c] sm:$0xf] %vm2310_vm3, %v2779_v6  ;;  %2386 = vst.msk [vmem:[%s3396_s6 + $0x12c] sm:$0xf] %vm2310_vm3, %v2843_v7  ;;  %v2841_v16 = vpack.c.bf16 %v1743_v11, %v1743_v11  ;;  %vm1492_vm14 = vcmp.ge.f32.partialorder %v1216_v13, 0.0  ;;  %v1219_v24 = vadd.f32 %v3054_v59, %v3385_v9  ;;  %v3472_v25 = vpop.f32.mrb[18].mxu0  ;;  %v955_v40 = vadd.f32 %v3385_v9, %v954_v60 }
 0x110   : > { %2320 = vst.msk [vmem:[%s3396_s6 + $0x24] sm:$0xf] %vm2310_vm3, %v2777_v10  ;;  %v1684_v22 = vsel %vm1428_vm13, %v960_v53, %v1556_v12  ;;  %v1620_v23 = vmul.f32 0.2, %v1216_v13  ;;  %v3474_v26 = vpop.f32.mrb[18].mxu1  ;;  %vm1426_vm15 = vcmp.ge.f32.partialorder %v952_v17, 0.0  ;;  %v1211_v44 = vadd.f32 %v3385_v9, %v1210_v1 }
 0x111   : > { %2384 = vst.msk [vmem:[%s3396_s6 + $0x124] sm:$0xf] %vm2310_vm3, %v2841_v16  ;;  %v2782_v27 = vpack.c.bf16 %v1684_v22, %v1684_v22  ;;  %v1554_v28 = vmul.f32 0.2, %v952_v17  ;;  %vm1490_vm0 = vcmp.ge.f32.partialorder %v1208_v18, 0.0  ;;  %v3478_v29 = vpop.f32.mrb[19].mxu0  ;;  %v976_v47 = vadd.f32 %v2993_v14, %v3385_v9 }
 0x112   : > { %v3480_v30 = vpop.f32.mrb[19].mxu1  ;;  %v1748_v31 = vsel %vm1492_vm14, %v1216_v13, %v1620_v23  ;;  %v1618_v32 = vmul.f32 0.2, %v1208_v18  ;;  %vm1429_vm1 = vcmp.ge.f32.partialorder %v963_v19, 0.0  ;;  %v1557_v33 = vmul.f32 0.2, %v963_v19 }
 0x113   : > { %2325 = vst.msk [vmem:[%s3396_s6 + $0x38] sm:$0xf] %vm2310_vm3, %v2782_v27  ;;  %v2846_v34 = vpack.c.bf16 %v1748_v31, %v1748_v31  ;;  %v1682_v35 = vsel %vm1426_vm15, %v952_v17, %v1554_v28  ;;  %vm1493_vm2 = vcmp.ge.f32.partialorder %v1219_v24, 0.0  ;;  %v1621_v36 = vmul.f32 0.2, %v1219_v24 }
 0x114   : > { %v2780_v37 = vpack.c.bf16 %v1682_v35, %v1682_v35  ;;  %v1746_v38 = vsel %vm1490_vm0, %v1208_v18, %v1618_v32  ;;  %v1685_v39 = vsel %vm1429_vm1, %v963_v19, %v1557_v33  ;;  %vm1427_vm4 = vcmp.ge.f32.partialorder %v955_v40, 0.0 }
 0x115   : > { %2389 = vst.msk [vmem:[%s3396_s6 + $0x138] sm:$0xf] %vm2310_vm3, %v2846_v34  ;;  %v2844_v41 = vpack.c.bf16 %v1746_v38, %v1746_v38  ;;  %v2783_v42 = vpack.c.bf16 %v1685_v39, %v1685_v39  ;;  %v1749_v43 = vsel %vm1493_vm2, %v1219_v24, %v1621_v36  ;;  %v1555_v46 = vmul.f32 0.2, %v955_v40  ;;  %v2997_v48 = vpop.f32.mrb[20].mxu0  ;;  %v3061_v49 = vpop.f32.mrb[20].mxu1 }
 0x116   : > { %2323 = vst.msk [vmem:[%s3396_s6 + $0x30] sm:$0xf] %vm2310_vm3, %v2780_v37  ;;  %v2847_v45 = vpack.c.bf16 %v1749_v43, %v1749_v43  ;;  %vm1491_vm5 = vcmp.ge.f32.partialorder %v1211_v44, 0.0  ;;  %v1619_v50 = vmul.f32 0.2, %v1211_v44  ;;  %v1232_v51 = vadd.f32 %v3057_v15, %v3385_v9  ;;  %v983_v53 = vpop.f32.mrb[21].mxu0 }
 0x117   : > { %2387 = vst.msk [vmem:[%s3396_s6 + $0x130] sm:$0xf] %vm2310_vm3, %v2844_v41  ;;  %2326 = vst.msk [vmem:[%s3396_s6 + $0x3c] sm:$0xf] %vm2310_vm3, %v2783_v42  ;;  %v968_v52 = vadd.f32 %v3385_v9, %v967_v20  ;;  %v3497_v54 = vpop.f32.mrb[21].mxu1  ;;  %v1683_v55 = vsel %vm1427_vm4, %v955_v40, %v1555_v46  ;;  %vm1432_vm6 = vcmp.ge.f32.partialorder %v976_v47, 0.0  ;;  %v1224_v57 = vadd.f32 %v3385_v9, %v1223_v21 }
 0x118   : > { %2390 = vst.msk [vmem:[%s3396_s6 + $0x13c] sm:$0xf] %vm2310_vm3, %v2847_v45  ;;  %v1560_v56 = vmul.f32 0.2, %v976_v47  ;;  %v3502_v58 = vpop.f32.mrb[22].mxu0  ;;  %v3504_v59 = vpop.f32.mrb[22].mxu1  ;;  %v2781_v60 = vpack.c.bf16 %v1683_v55, %v1683_v55  ;;  %v1747_v61 = vsel %vm1491_vm5, %v1211_v44, %v1619_v50  ;;  %v979_v10 = vadd.f32 %v3472_v25, %v3385_v9 }
 0x119   : > { %vm1496_vm7 = vcmp.ge.f32.partialorder %v1232_v51, 0.0  ;;  %v1624_v62 = vmul.f32 0.2, %v1232_v51  ;;  %v3506_v63 = vpop.f32.mrb[23].mxu0  ;;  %v3508_v0 = vpop.f32.mrb[23].mxu1  ;;  %v2845_v1 = vpack.c.bf16 %v1747_v61, %v1747_v61  ;;  %vm1430_vm8 = vcmp.ge.f32.partialorder %v968_v52, 0.0 }
 0x11a   : > { %v1688_v2 = vsel %vm1432_vm6, %v976_v47, %v1560_v56  ;;  %v1558_v3 = vmul.f32 0.2, %v968_v52  ;;  %2324 = vst.msk [vmem:[%s3396_s6 + $0x34] sm:$0xf] %vm2310_vm3, %v2781_v60  ;;  %vm1494_vm9 = vcmp.ge.f32.partialorder %v1224_v57, 0.0  ;;  %v1235_v11 = vadd.f32 %v3474_v26, %v3385_v9 }
 0x11b   : > { %v2786_v4 = vpack.c.bf16 %v1688_v2, %v1688_v2  ;;  %v1752_v5 = vsel %vm1496_vm7, %v1232_v51, %v1624_v62  ;;  %v1622_v6 = vmul.f32 0.2, %v1224_v57  ;;  %2388 = vst.msk [vmem:[%s3396_s6 + $0x134] sm:$0xf] %vm2310_vm3, %v2845_v1  ;;  %v971_v14 = vadd.f32 %v3385_v9, %v3478_v29 }
 0x11c   : > { %v2850_v7 = vpack.c.bf16 %v1752_v5, %v1752_v5  ;;  %v1686_v8 = vsel %vm1430_vm8, %v968_v52, %v1558_v3  ;;  %v1227_v15 = vadd.f32 %v3385_v9, %v3480_v30  ;;  %vm1433_vm10 = vcmp.ge.f32.partialorder %v979_v10, 0.0 }
 0x11d   : > { %2329 = vst.msk [vmem:[%s3396_s6 + $0x48] sm:$0xf] %vm2310_vm3, %v2786_v4  ;;  %v2784_v12 = vpack.c.bf16 %v1686_v8, %v1686_v8  ;;  %v1750_v13 = vsel %vm1494_vm9, %v1224_v57, %v1622_v6  ;;  %v1561_v17 = vmul.f32 0.2, %v979_v10  ;;  %vm1497_vm11 = vcmp.ge.f32.partialorder %v1235_v11, 0.0  ;;  %v3526_v18 = vpop.f32.mrb[24].mxu0 }
 0x11e   : > { %2393 = vst.msk [vmem:[%s3396_s6 + $0x148] sm:$0xf] %vm2310_vm3, %v2850_v7  ;;  %v2848_v16 = vpack.c.bf16 %v1750_v13, %v1750_v13  ;;  %v3528_v19 = vpop.f32.mrb[24].mxu1  ;;  %v1625_v20 = vmul.f32 0.2, %v1235_v11  ;;  %vm1431_vm12 = vcmp.ge.f32.partialorder %v971_v14, 0.0  ;;  %v992_v24 = vadd.f32 %v2997_v48, %v3385_v9 }
 0x11f   : > { %2327 = vst.msk [vmem:[%s3396_s6 + $0x40] sm:$0xf] %vm2310_vm3, %v2784_v12  ;;  %v1559_v21 = vmul.f32 0.2, %v971_v14  ;;  %vm1495_vm13 = vcmp.ge.f32.partialorder %v1227_v15, 0.0  ;;  %v1689_v22 = vsel %vm1433_vm10, %v979_v10, %v1561_v17  ;;  %v1248_v25 = vadd.f32 %v3061_v49, %v3385_v9  ;;  %v3536_v26 = vpop.f32.mrb[25].mxu0 }
 0x120   : > { %2391 = vst.msk [vmem:[%s3396_s6 + $0x140] sm:$0xf] %vm2310_vm3, %v2848_v16  ;;  %v1623_v23 = vmul.f32 0.2, %v1227_v15  ;;  %v3538_v27 = vpop.f32.mrb[25].mxu1  ;;  %v2787_v28 = vpack.c.bf16 %v1689_v22, %v1689_v22  ;;  %v1753_v29 = vsel %vm1497_vm11, %v1235_v11, %v1625_v20  ;;  %v984_v31 = vadd.f32 %v3385_v9, %v983_v53  ;;  %v3542_v32 = vpop.f32.mrb[26].mxu0 }
 0x121   : > { %v1687_v30 = vsel %vm1431_vm12, %v971_v14, %v1559_v21  ;;  %v3544_v33 = vpop.f32.mrb[26].mxu1  ;;  %v2851_v34 = vpack.c.bf16 %v1753_v29, %v1753_v29  ;;  %vm1436_vm14 = vcmp.ge.f32.partialorder %v992_v24, 0.0  ;;  %v3547_v37 = vpop.f32.mrb[27].mxu0  ;;  %v1564_v40 = vmul.f32 0.2, %v992_v24 }
 0x122   : > { %v2785_v35 = vpack.c.bf16 %v1687_v30, %v1687_v30  ;;  %v1751_v36 = vsel %vm1495_vm13, %v1227_v15, %v1623_v23  ;;  %v3549_v38 = vpop.f32.mrb[27].mxu1  ;;  %2330 = vst.msk [vmem:[%s3396_s6 + $0x4c] sm:$0xf] %vm2310_vm3, %v2787_v28  ;;  %vm1500_vm15 = vcmp.ge.f32.partialorder %v1248_v25, 0.0  ;;  %v1628_v41 = vmul.f32 0.2, %v1248_v25 }
 0x123   : > { %v2849_v39 = vpack.c.bf16 %v1751_v36, %v1751_v36  ;;  %2394 = vst.msk [vmem:[%s3396_s6 + $0x14c] sm:$0xf] %vm2310_vm3, %v2851_v34  ;;  %vm1434_vm0 = vcmp.ge.f32.partialorder %v984_v31, 0.0  ;;  %v1562_v42 = vmul.f32 0.2, %v984_v31  ;;  %v1240_v43 = vadd.f32 %v3385_v9, %v3497_v54 }
 0x124   : > { %2328 = vst.msk [vmem:[%s3396_s6 + $0x44] sm:$0xf] %vm2310_vm3, %v2785_v35  ;;  %v995_v44 = vadd.f32 %v3502_v58, %v3385_v9  ;;  %v1692_v45 = vsel %vm1436_vm14, %v992_v24, %v1564_v40  ;;  %v1756_v46 = vsel %vm1500_vm15, %v1248_v25, %v1628_v41  ;;  %v1251_v47 = vadd.f32 %v3504_v59, %v3385_v9 }
 0x125   : > { %2392 = vst.msk [vmem:[%s3396_s6 + $0x144] sm:$0xf] %vm2310_vm3, %v2849_v39  ;;  %v987_v48 = vadd.f32 %v3385_v9, %v3506_v63  ;;  %v2790_v49 = vpack.c.bf16 %v1692_v45, %v1692_v45  ;;  %v2854_v50 = vpack.c.bf16 %v1756_v46, %v1756_v46  ;;  %v1690_v51 = vsel %vm1434_vm0, %v984_v31, %v1562_v42  ;;  %v3567_v52 = vpop.f32.mrb[28].mxu0  ;;  %v3569_v53 = vpop.f32.mrb[28].mxu1 }
 0x126   : > { %vm1498_vm1 = vcmp.ge.f32.partialorder %v1240_v43, 0.0  ;;  %v2788_v54 = vpack.c.bf16 %v1690_v51, %v1690_v51  ;;  %v1626_v55 = vmul.f32 0.2, %v1240_v43  ;;  %vm1437_vm2 = vcmp.ge.f32.partialorder %v995_v44, 0.0  ;;  %v3571_v57 = vpop.f32.mrb[29].mxu0  ;;  %v3583_v1 = vpop.f32.mrb[29].mxu1 }
 0x127   : > { %v1565_v56 = vmul.f32 0.2, %v995_v44  ;;  %2333 = vst.msk [vmem:[%s3396_s6 + $0x58] sm:$0xf] %vm2310_vm3, %v2790_v49  ;;  %2397 = vst.msk [vmem:[%s3396_s6 + $0x158] sm:$0xf] %vm2310_vm3, %v2854_v50  ;;  %v1243_v62 = vadd.f32 %v3385_v9, %v3508_v0  ;;  %v1008_v63 = vadd.f32 %v3526_v18, %v3385_v9  ;;  %v1264_v14 = vadd.f32 %v3528_v19, %v3385_v9 }
 0x128   : > { %vm1501_vm4 = vcmp.ge.f32.partialorder %v1251_v47, 0.0  ;;  %v1629_v58 = vmul.f32 0.2, %v1251_v47  ;;  %vm1435_vm5 = vcmp.ge.f32.partialorder %v987_v48, 0.0  ;;  %v1563_v59 = vmul.f32 0.2, %v987_v48 }
 0x129   : > { %2331 = vst.msk [vmem:[%s3396_s6 + $0x50] sm:$0xf] %vm2310_vm3, %v2788_v54  ;;  %v1754_v60 = vsel %vm1498_vm1, %v1240_v43, %v1626_v55  ;;  %v1693_v61 = vsel %vm1437_vm2, %v995_v44, %v1565_v56  ;;  %v3585_v2 = vpop.f32.mrb[30].mxu0  ;;  %v3587_v7 = vpop.f32.mrb[30].mxu1  ;;  %vm1499_vm6 = vcmp.ge.f32.partialorder %v1243_v62, 0.0  ;;  %vm1440_vm7 = vcmp.ge.f32.partialorder %v1008_v63, 0.0 }
 0x12a   : > { %v2852_v3 = vpack.c.bf16 %v1754_v60, %v1754_v60  ;;  %v2791_v4 = vpack.c.bf16 %v1693_v61, %v1693_v61  ;;  %v1757_v5 = vsel %vm1501_vm4, %v1251_v47, %v1629_v58  ;;  %v1691_v6 = vsel %vm1435_vm5, %v987_v48, %v1563_v59  ;;  %v3589_v8 = vpop.f32.mrb[31].mxu0  ;;  %v3591_v12 = vpop.f32.mrb[31].mxu1 }
 0x12b   : > { %v2855_v10 = vpack.c.bf16 %v1757_v5, %v1757_v5  ;;  %v2789_v0 = vpack.c.bf16 %v1691_v6, %v1691_v6  ;;  %v1627_v11 = vmul.f32 0.2, %v1243_v62  ;;  %v1568_v13 = vmul.f32 0.2, %v1008_v63 }
 0x12c   : > { %2395 = vst.msk [vmem:[%s3396_s6 + $0x150] sm:$0xf] %vm2310_vm3, %v2852_v3  ;;  %2334 = vst.msk [vmem:[%s3396_s6 + $0x5c] sm:$0xf] %vm2310_vm3, %v2791_v4  ;;  %v1000_v15 = vadd.f32 %v3385_v9, %v3536_v26  ;;  %v1256_v17 = vadd.f32 %v3385_v9, %v3538_v27  ;;  %v1011_v18 = vadd.f32 %v3542_v32, %v3385_v9  ;;  %vm1504_vm8 = vcmp.ge.f32.partialorder %v1264_v14, 0.0 }
 0x12d   : > { %2398 = vst.msk [vmem:[%s3396_s6 + $0x15c] sm:$0xf] %vm2310_vm3, %v2855_v10  ;;  %2332 = vst.msk [vmem:[%s3396_s6 + $0x54] sm:$0xf] %vm2310_vm3, %v2789_v0  ;;  %v1755_v16 = vsel %vm1499_vm6, %v1243_v62, %v1627_v11  ;;  %v1267_v20 = vadd.f32 %v3544_v33, %v3385_v9  ;;  %v1696_v19 = vsel %vm1440_vm7, %v1008_v63, %v1568_v13  ;;  %v1632_v22 = vmul.f32 0.2, %v1264_v14 }
 0x12e   : > { %v2853_v21 = vpack.c.bf16 %v1755_v16, %v1755_v16  ;;  %v3611_v23 = vpop.f32.mrb[32].mxu0  ;;  %v3613_v24 = vpop.f32.mrb[32].mxu1  ;;  %v2794_v25 = vpack.c.bf16 %v1696_v19, %v1696_v19  ;;  %vm1438_vm9 = vcmp.ge.f32.partialorder %v1000_v15, 0.0  ;;  %v1566_v26 = vmul.f32 0.2, %v1000_v15 }
 0x12f   : > { %vm1502_vm10 = vcmp.ge.f32.partialorder %v1256_v17, 0.0  ;;  %v3615_v27 = vpop.f32.mrb[33].mxu0  ;;  %v3617_v28 = vpop.f32.mrb[33].mxu1  ;;  %v1760_v29 = vsel %vm1504_vm8, %v1264_v14, %v1632_v22  ;;  %v1630_v30 = vmul.f32 0.2, %v1256_v17  ;;  %vm1441_vm11 = vcmp.ge.f32.partialorder %v1011_v18, 0.0 }
 0x130   : > { %2396 = vst.msk [vmem:[%s3396_s6 + $0x154] sm:$0xf] %vm2310_vm3, %v2853_v21  ;;  %v1569_v31 = vmul.f32 0.2, %v1011_v18  ;;  %v3621_v32 = vpop.f32.mrb[34].mxu0  ;;  %v2858_v33 = vpack.c.bf16 %v1760_v29, %v1760_v29  ;;  %v1694_v34 = vsel %vm1438_vm9, %v1000_v15, %v1566_v26  ;;  %vm1505_vm12 = vcmp.ge.f32.partialorder %v1267_v20, 0.0 }
 0x131   : > { %2337 = vst.msk [vmem:[%s3396_s6 + $0x68] sm:$0xf] %vm2310_vm3, %v2794_v25  ;;  %v1633_v35 = vmul.f32 0.2, %v1267_v20  ;;  %v3625_v36 = vpop.f32.mrb[34].mxu1  ;;  %v3627_v39 = vpop.f32.mrb[35].mxu0  ;;  %v2792_v40 = vpack.c.bf16 %v1694_v34, %v1694_v34  ;;  %v1758_v41 = vsel %vm1502_vm10, %v1256_v17, %v1630_v30  ;;  %v1003_v43 = vadd.f32 %v3385_v9, %v3547_v37 }
 0x132   : > { %v1697_v42 = vsel %vm1441_vm11, %v1011_v18, %v1569_v31  ;;  %v3632_v44 = vpop.f32.mrb[35].mxu1  ;;  %2401 = vst.msk [vmem:[%s3396_s6 + $0x168] sm:$0xf] %vm2310_vm3, %v2858_v33  ;;  %v2856_v45 = vpack.c.bf16 %v1758_v41, %v1758_v41  ;;  %v1259_v48 = vadd.f32 %v3385_v9, %v3549_v38  ;;  %v1024_v51 = vadd.f32 %v3567_v52, %v3385_v9 }
 0x133   : > { %v2795_v46 = vpack.c.bf16 %v1697_v42, %v1697_v42  ;;  %v1761_v47 = vsel %vm1505_vm12, %v1267_v20, %v1633_v35  ;;  %2335 = vst.msk [vmem:[%s3396_s6 + $0x60] sm:$0xf] %vm2310_vm3, %v2792_v40  ;;  %vm1439_vm13 = vcmp.ge.f32.partialorder %v1003_v43, 0.0  ;;  %v1567_v50 = vmul.f32 0.2, %v1003_v43 }
 0x134   : > { %v2859_v49 = vpack.c.bf16 %v1761_v47, %v1761_v47  ;;  %2399 = vst.msk [vmem:[%s3396_s6 + $0x160] sm:$0xf] %vm2310_vm3, %v2856_v45  ;;  %vm1503_vm14 = vcmp.ge.f32.partialorder %v1259_v48, 0.0  ;;  %v1631_v37 = vmul.f32 0.2, %v1259_v48  ;;  %v1280_v54 = vadd.f32 %v3569_v53, %v3385_v9 }
 0x135   : > { %2338 = vst.msk [vmem:[%s3396_s6 + $0x6c] sm:$0xf] %vm2310_vm3, %v2795_v46  ;;  %v1016_v38 = vadd.f32 %v3385_v9, %v3571_v57  ;;  %v1695_v55 = vsel %vm1439_vm13, %v1003_v43, %v1567_v50  ;;  %vm1444_vm15 = vcmp.ge.f32.partialorder %v1024_v51, 0.0  ;;  %v1572_v56 = vmul.f32 0.2, %v1024_v51  ;;  %v3654_v58 = vpop.f32.mrb[36].mxu0 }
 0x136   : > { %2402 = vst.msk [vmem:[%s3396_s6 + $0x16c] sm:$0xf] %vm2310_vm3, %v2859_v49  ;;  %v1272_v52 = vadd.f32 %v3385_v9, %v3583_v1  ;;  %v3656_v59 = vpop.f32.mrb[36].mxu1  ;;  %v2793_v60 = vpack.c.bf16 %v1695_v55, %v1695_v55  ;;  %v1759_v61 = vsel %vm1503_vm14, %v1259_v48, %v1631_v37  ;;  %vm1508_vm0 = vcmp.ge.f32.partialorder %v1280_v54, 0.0  ;;  %v3658_v62 = vpop.f32.mrb[37].mxu0 }
 0x137   : > { %v1636_v53 = vmul.f32 0.2, %v1280_v54  ;;  %v3660_v57 = vpop.f32.mrb[37].mxu1  ;;  %v2857_v63 = vpack.c.bf16 %v1759_v61, %v1759_v61  ;;  %v1700_v3 = vsel %vm1444_vm15, %v1024_v51, %v1572_v56  ;;  %vm1442_vm1 = vcmp.ge.f32.partialorder %v1016_v38, 0.0  ;;  %v3662_v5 = vpop.f32.mrb[38].mxu0 }
 0x138   : > { %v1570_v4 = vmul.f32 0.2, %v1016_v38  ;;  %v3664_v1 = vpop.f32.mrb[38].mxu1  ;;  %2336 = vst.msk [vmem:[%s3396_s6 + $0x64] sm:$0xf] %vm2310_vm3, %v2793_v60  ;;  %v2798_v6 = vpack.c.bf16 %v1700_v3, %v1700_v3  ;;  %vm1506_vm2 = vcmp.ge.f32.partialorder %v1272_v52, 0.0  ;;  %v1027_v16 = vadd.f32 %v3585_v2, %v3385_v9 }
 0x139   : > { %v1764_v10 = vsel %vm1508_vm0, %v1280_v54, %v1636_v53  ;;  %v1634_v0 = vmul.f32 0.2, %v1272_v52  ;;  %v3668_v11 = vpop.f32.mrb[39].mxu0  ;;  %v3670_v13 = vpop.f32.mrb[39].mxu1  ;;  %2400 = vst.msk [vmem:[%s3396_s6 + $0x164] sm:$0xf] %vm2310_vm3, %v2857_v63  ;;  %v1283_v17 = vadd.f32 %v3587_v7, %v3385_v9  ;;  %v1019_v21 = vadd.f32 %v3385_v9, %v3589_v8 }
 0x13a   : > { %v2862_v14 = vpack.c.bf16 %v1764_v10, %v1764_v10  ;;  %v1698_v15 = vsel %vm1442_vm1, %v1016_v38, %v1570_v4  ;;  %2341 = vst.msk [vmem:[%s3396_s6 + $0x78] sm:$0xf] %vm2310_vm3, %v2798_v6  ;;  %v1275_v19 = vadd.f32 %v3385_v9, %v3591_v12  ;;  %vm1445_vm4 = vcmp.ge.f32.partialorder %v1027_v16, 0.0 }
 0x13b   : > { %v2796_v18 = vpack.c.bf16 %v1698_v15, %v1698_v15  ;;  %v1762_v20 = vsel %vm1506_vm2, %v1272_v52, %v1634_v0  ;;  %v1573_v25 = vmul.f32 0.2, %v1027_v16  ;;  %vm1509_vm5 = vcmp.ge.f32.partialorder %v1283_v17, 0.0 }
 0x13c   : > { %2405 = vst.msk [vmem:[%s3396_s6 + $0x178] sm:$0xf] %vm2310_vm3, %v2862_v14  ;;  %v2860_v22 = vpack.c.bf16 %v1762_v20, %v1762_v20  ;;  %v1637_v2 = vmul.f32 0.2, %v1283_v17  ;;  %vm1443_vm6 = vcmp.ge.f32.partialorder %v1019_v21, 0.0  ;;  %vm1507_vm7 = vcmp.ge.f32.partialorder %v1275_v19, 0.0 }
 0x13d   : > { %2339 = vst.msk [vmem:[%s3396_s6 + $0x70] sm:$0xf] %vm2310_vm3, %v2796_v18  ;;  %v1571_v7 = vmul.f32 0.2, %v1019_v21  ;;  %v1701_v26 = vsel %vm1445_vm4, %v1027_v16, %v1573_v25  ;;  %v1635_v29 = vmul.f32 0.2, %v1275_v19  ;;  %v1040_v8 = vadd.f32 %v3611_v23, %v3385_v9 }
 0x13e   : > { %2403 = vst.msk [vmem:[%s3396_s6 + $0x170] sm:$0xf] %vm2310_vm3, %v2860_v22  ;;  %v1296_v12 = vadd.f32 %v3613_v24, %v3385_v9  ;;  %v3694_v30 = vpop.f32.mrb[40].mxu0  ;;  %v3696_v31 = vpop.f32.mrb[40].mxu1  ;;  %v2799_v33 = vpack.c.bf16 %v1701_v26, %v1701_v26  ;;  %v1765_v34 = vsel %vm1509_vm5, %v1283_v17, %v1637_v2  ;;  %v1032_v40 = vadd.f32 %v3385_v9, %v3615_v27  ;;  %v3759_v2 = vld [vmem:[%s4063_s2] ss:$0 sm:$0xff] }
 0x13f   : > { %v1699_v35 = vsel %vm1443_vm6, %v1019_v21, %v1571_v7  ;;  %v3700_v41 = vpop.f32.mrb[41].mxu0  ;;  %v3702_v42 = vpop.f32.mrb[41].mxu1  ;;  %v2863_v23 = vpack.c.bf16 %v1765_v34, %v1765_v34  ;;  %v1763_v24 = vsel %vm1507_vm7, %v1275_v19, %v1635_v29  ;;  %vm1448_vm8 = vcmp.ge.f32.partialorder %v1040_v8, 0.0 }
 0x140   : > { %v2797_v43 = vpack.c.bf16 %v1699_v35, %v1699_v35  ;;  %v3705_v45 = vpop.f32.mrb[42].mxu0  ;;  %v3707_v46 = vpop.f32.mrb[42].mxu1  ;;  %2342 = vst.msk [vmem:[%s3396_s6 + $0x7c] sm:$0xf] %vm2310_vm3, %v2799_v33  ;;  %v2861_v47 = vpack.c.bf16 %v1763_v24, %v1763_v24  ;;  %v1576_v48 = vmul.f32 0.2, %v1040_v8  ;;  %v1288_v51 = vadd.f32 %v3385_v9, %v3617_v28 }
 0x141   : > { %vm1512_vm9 = vcmp.ge.f32.partialorder %v1296_v12, 0.0  ;;  %v1640_v27 = vmul.f32 0.2, %v1296_v12  ;;  %v3711_v49 = vpop.f32.mrb[43].mxu0  ;;  %2406 = vst.msk [vmem:[%s3396_s6 + $0x17c] sm:$0xf] %vm2310_vm3, %v2863_v23  ;;  %v1043_v37 = vadd.f32 %v3621_v32, %v3385_v9  ;;  %v1299_v56 = vadd.f32 %v3625_v36, %v3385_v9 }
 0x142   : > { %2340 = vst.msk [vmem:[%s3396_s6 + $0x74] sm:$0xf] %vm2310_vm3, %v2797_v43  ;;  %vm1446_vm10 = vcmp.ge.f32.partialorder %v1032_v40, 0.0  ;;  %v1574_v50 = vmul.f32 0.2, %v1032_v40  ;;  %v3721_v54 = vpop.f32.mrb[43].mxu1  ;;  %v1704_v38 = vsel %vm1448_vm8, %v1040_v8, %v1576_v48  ;;  %v1035_v52 = vadd.f32 %v3385_v9, %v3627_v39 }
 0x143   : > { %2404 = vst.msk [vmem:[%s3396_s6 + $0x174] sm:$0xf] %vm2310_vm3, %v2861_v47  ;;  %v1768_v55 = vsel %vm1512_vm9, %v1296_v12, %v1640_v27  ;;  %v2802_v28 = vpack.c.bf16 %v1704_v38, %v1704_v38  ;;  %vm1510_vm11 = vcmp.ge.f32.partialorder %v1288_v51, 0.0  ;;  %v1638_v53 = vmul.f32 0.2, %v1288_v51 }
 0x144   : > { %v2866_v60 = vpack.c.bf16 %v1768_v55, %v1768_v55  ;;  %v1702_v61 = vsel %vm1446_vm10, %v1032_v40, %v1574_v50  ;;  %vm1449_vm12 = vcmp.ge.f32.partialorder %v1043_v37, 0.0  ;;  %v1577_v63 = vmul.f32 0.2, %v1043_v37 }
 0x145   : > { %v2800_v32 = vpack.c.bf16 %v1702_v61, %v1702_v61  ;;  %2345 = vst.msk [vmem:[%s3396_s6 + $0x88] sm:$0xf] %vm2310_vm3, %v2802_v28  ;;  %vm1513_vm13 = vcmp.ge.f32.partialorder %v1299_v56, 0.0  ;;  %v1641_v3 = vmul.f32 0.2, %v1299_v56  ;;  %vm1447_vm14 = vcmp.ge.f32.partialorder %v1035_v52, 0.0 }
 0x146   : > { %2409 = vst.msk [vmem:[%s3396_s6 + $0x188] sm:$0xf] %vm2310_vm3, %v2866_v60  ;;  %v1575_v36 = vmul.f32 0.2, %v1035_v52  ;;  %v1766_v4 = vsel %vm1510_vm11, %v1288_v51, %v1638_v53  ;;  %v1705_v39 = vsel %vm1449_vm12, %v1043_v37, %v1577_v63  ;;  %v1291_v6 = vadd.f32 %v3385_v9, %v3632_v44  ;;  %v3740_v0 = vpop.f32.mrb[44].mxu0  ;;  %v3742_v14 = vpop.f32.mrb[44].mxu1 }
 0x147   : > { %2343 = vst.msk [vmem:[%s3396_s6 + $0x80] sm:$0xf] %vm2310_vm3, %v2800_v32  ;;  %v1056_v10 = vadd.f32 %v3654_v58, %v3385_v9  ;;  %v2864_v15 = vpack.c.bf16 %v1766_v4, %v1766_v4  ;;  %v2803_v16 = vpack.c.bf16 %v1705_v39, %v1705_v39  ;;  %v1769_v17 = vsel %vm1513_vm13, %v1299_v56, %v1641_v3  ;;  %v3744_v20 = vpop.f32.mrb[45].mxu0  ;;  %v3746_v21 = vpop.f32.mrb[45].mxu1 }
 0x148   : > { %v1703_v18 = vsel %vm1447_vm14, %v1035_v52, %v1575_v36  ;;  %v2867_v19 = vpack.c.bf16 %v1769_v17, %v1769_v17  ;;  %vm1511_vm15 = vcmp.ge.f32.partialorder %v1291_v6, 0.0  ;;  %v1639_v22 = vmul.f32 0.2, %v1291_v6  ;;  %v3748_v9 = vpop.f32.mrb[46].mxu0  ;;  %v3750_v58 = vpop.f32.mrb[46].mxu1 }
 0x149   : > { %v2801_v44 = vpack.c.bf16 %v1703_v18, %v1703_v18  ;;  %2407 = vst.msk [vmem:[%s3396_s6 + $0x180] sm:$0xf] %vm2310_vm3, %v2864_v15  ;;  %2346 = vst.msk [vmem:[%s3396_s6 + $0x8c] sm:$0xf] %vm2310_vm3, %v2803_v16  ;;  %vm1452_vm0 = vcmp.ge.f32.partialorder %v1056_v10, 0.0  ;;  %v1312_v7 = vadd.f32 %v3759_v2, %v3656_v59  ;;  %v1048_v26 = vadd.f32 %v3759_v2, %v3658_v62  ;;  %v3765_v29 = vpop.f32.mrb[47].mxu0 }
 0x14a   : > { %v1580_v25 = vmul.f32 0.2, %v1056_v10  ;;  %v3767_v8 = vpop.f32.mrb[47].mxu1  ;;  %2410 = vst.msk [vmem:[%s3396_s6 + $0x18c] sm:$0xf] %vm2310_vm3, %v2867_v19  ;;  %v1767_v12 = vsel %vm1511_vm15, %v1291_v6, %v1639_v22  ;;  %v1304_v33 = vadd.f32 %v3759_v2, %v3660_v57  ;;  %v1059_v34 = vadd.f32 %v3759_v2, %v3662_v5 }
 0x14b   : > { %2344 = vst.msk [vmem:[%s3396_s6 + $0x84] sm:$0xf] %vm2310_vm3, %v2801_v44  ;;  %v1315_v59 = vadd.f32 %v3759_v2, %v3664_v1  ;;  %v2865_v62 = vpack.c.bf16 %v1767_v12, %v1767_v12  ;;  %vm1516_vm1 = vcmp.ge.f32.partialorder %v1312_v7, 0.0  ;;  %v1644_v40 = vmul.f32 0.2, %v1312_v7 }
 0x14c   : > { %v1708_v35 = vsel %vm1452_vm0, %v1056_v10, %v1580_v25  ;;  %vm1450_vm2 = vcmp.ge.f32.partialorder %v1048_v26, 0.0  ;;  %v1578_v43 = vmul.f32 0.2, %v1048_v26  ;;  %vm1514_vm4 = vcmp.ge.f32.partialorder %v1304_v33, 0.0 }
 0x14d   : > { %v2806_v23 = vpack.c.bf16 %v1708_v35, %v1708_v35  ;;  %2408 = vst.msk [vmem:[%s3396_s6 + $0x184] sm:$0xf] %vm2310_vm3, %v2865_v62  ;;  %v1772_v24 = vsel %vm1516_vm1, %v1312_v7, %v1644_v40  ;;  %v1642_v47 = vmul.f32 0.2, %v1304_v33  ;;  %vm1453_vm5 = vcmp.ge.f32.partialorder %v1059_v34, 0.0  ;;  %v3781_v5 = vpop.f32.mrb[48].mxu0 }
 0x14e   : > { %v1581_v57 = vmul.f32 0.2, %v1059_v34  ;;  %v2870_v1 = vpack.c.bf16 %v1772_v24, %v1772_v24  ;;  %v1706_v48 = vsel %vm1450_vm2, %v1048_v26, %v1578_v43  ;;  %vm1517_vm6 = vcmp.ge.f32.partialorder %v1315_v59, 0.0  ;;  %v3785_v50 = vpop.f32.mrb[48].mxu1  ;;  %v3787_v51 = vpop.f32.mrb[49].mxu0 }
 0x14f   : > { %2349 = vst.msk [vmem:[%s3396_s6 + $0x98] sm:$0xf] %vm2310_vm3, %v2806_v23  ;;  %v1645_v27 = vmul.f32 0.2, %v1315_v59  ;;  %v2804_v37 = vpack.c.bf16 %v1706_v48, %v1706_v48  ;;  %v1770_v38 = vsel %vm1514_vm4, %v1304_v33, %v1642_v47  ;;  %v1051_v56 = vadd.f32 %v3759_v2, %v3668_v11  ;;  %v3791_v52 = vpop.f32.mrb[49].mxu1  ;;  %v3793_v28 = vpop.f32.mrb[50].mxu0 }
 0x150   : > { %v1709_v55 = vsel %vm1453_vm5, %v1059_v34, %v1581_v57  ;;  %2413 = vst.msk [vmem:[%s3396_s6 + $0x198] sm:$0xf] %vm2310_vm3, %v2870_v1  ;;  %v2868_v60 = vpack.c.bf16 %v1770_v38, %v1770_v38  ;;  %v1307_v53 = vadd.f32 %v3759_v2, %v3670_v13  ;;  %v3799_v63 = vpop.f32.mrb[50].mxu1  ;;  %v3801_v3 = vpop.f32.mrb[51].mxu0  ;;  %v1072_v4 = vadd.f32 %v3759_v2, %v3694_v30 }
 0x151   : > { %v2807_v61 = vpack.c.bf16 %v1709_v55, %v1709_v55  ;;  %v1773_v32 = vsel %vm1517_vm6, %v1315_v59, %v1645_v27  ;;  %2347 = vst.msk [vmem:[%s3396_s6 + $0x90] sm:$0xf] %vm2310_vm3, %v2804_v37  ;;  %vm1451_vm7 = vcmp.ge.f32.partialorder %v1051_v56, 0.0  ;;  %v1579_v36 = vmul.f32 0.2, %v1051_v56  ;;  %v3807_v39 = vpop.f32.mrb[51].mxu1 }
 0x152   : > { %v2871_v11 = vpack.c.bf16 %v1773_v32, %v1773_v32  ;;  %2411 = vst.msk [vmem:[%s3396_s6 + $0x190] sm:$0xf] %vm2310_vm3, %v2868_v60  ;;  %vm1515_vm8 = vcmp.ge.f32.partialorder %v1307_v53, 0.0  ;;  %v1643_v13 = vmul.f32 0.2, %v1307_v53  ;;  %v1328_v6 = vadd.f32 %v3759_v2, %v3696_v31 }
 0x153   : > { %2350 = vst.msk [vmem:[%s3396_s6 + $0x9c] sm:$0xf] %vm2310_vm3, %v2807_v61  ;;  %v1064_v10 = vadd.f32 %v3759_v2, %v3700_v41  ;;  %v1707_v15 = vsel %vm1451_vm7, %v1051_v56, %v1579_v36  ;;  %vm1456_vm9 = vcmp.ge.f32.partialorder %v1072_v4, 0.0  ;;  %v1584_v30 = vmul.f32 0.2, %v1072_v4 }
 0x154   : > { %2414 = vst.msk [vmem:[%s3396_s6 + $0x19c] sm:$0xf] %vm2310_vm3, %v2871_v11  ;;  %v1320_v16 = vadd.f32 %v3759_v2, %v3702_v42  ;;  %v2805_v17 = vpack.c.bf16 %v1707_v15, %v1707_v15  ;;  %v1771_v18 = vsel %vm1515_vm8, %v1307_v53, %v1643_v13  ;;  %vm1520_vm10 = vcmp.ge.f32.partialorder %v1328_v6, 0.0 }
 0x155   : > { %v1648_v19 = vmul.f32 0.2, %v1328_v6  ;;  %v2869_v44 = vpack.c.bf16 %v1771_v18, %v1771_v18  ;;  %v1712_v22 = vsel %vm1456_vm9, %v1072_v4, %v1584_v30  ;;  %vm1454_vm11 = vcmp.ge.f32.partialorder %v1064_v10, 0.0  ;;  %v3821_v25 = vpop.f32.mrb[52].mxu0  ;;  %v3823_v41 = vpop.f32.mrb[52].mxu1 }
 0x156   : > { %v1582_v31 = vmul.f32 0.2, %v1064_v10  ;;  %2348 = vst.msk [vmem:[%s3396_s6 + $0x94] sm:$0xf] %vm2310_vm3, %v2805_v17  ;;  %v2810_v7 = vpack.c.bf16 %v1712_v22, %v1712_v22  ;;  %vm1518_vm12 = vcmp.ge.f32.partialorder %v1320_v16, 0.0  ;;  %v3827_v12 = vpop.f32.mrb[53].mxu0  ;;  %v1075_v62 = vadd.f32 %v3759_v2, %v3705_v45 }
 0x157   : > { %v1776_v26 = vsel %vm1520_vm10, %v1328_v6, %v1648_v19  ;;  %v1646_v42 = vmul.f32 0.2, %v1320_v16  ;;  %v3829_v33 = vpop.f32.mrb[53].mxu1  ;;  %2412 = vst.msk [vmem:[%s3396_s6 + $0x194] sm:$0xf] %vm2310_vm3, %v2869_v44  ;;  %v1331_v35 = vadd.f32 %v3759_v2, %v3707_v46  ;;  %v3837_v40 = vpop.f32.mrb[54].mxu0  ;;  %v1067_v47 = vadd.f32 %v3759_v2, %v3711_v49 }
 0x158   : > { %v2874_v34 = vpack.c.bf16 %v1776_v26, %v1776_v26  ;;  %v1710_v59 = vsel %vm1454_vm11, %v1064_v10, %v1582_v31  ;;  %v3839_v23 = vpop.f32.mrb[54].mxu1  ;;  %2353 = vst.msk [vmem:[%s3396_s6 + $0xa8] sm:$0xf] %vm2310_vm3, %v2810_v7  ;;  %v1323_v57 = vadd.f32 %v3759_v2, %v3721_v54  ;;  %v3847_v45 = vpop.f32.mrb[55].mxu0  ;;  %vm1457_vm13 = vcmp.ge.f32.partialorder %v1075_v62, 0.0 }
 0x159   : > { %v2808_v43 = vpack.c.bf16 %v1710_v59, %v1710_v59  ;;  %v1774_v24 = vsel %vm1518_vm12, %v1320_v16, %v1646_v42  ;;  %v3849_v1 = vpop.f32.mrb[55].mxu1  ;;  %v1585_v48 = vmul.f32 0.2, %v1075_v62  ;;  %vm1521_vm14 = vcmp.ge.f32.partialorder %v1331_v35, 0.0 }
 0x15a   : > { %2417 = vst.msk [vmem:[%s3396_s6 + $0x1a8] sm:$0xf] %vm2310_vm3, %v2874_v34  ;;  %v2872_v46 = vpack.c.bf16 %v1774_v24, %v1774_v24  ;;  %v1649_v27 = vmul.f32 0.2, %v1331_v35  ;;  %vm1455_vm15 = vcmp.ge.f32.partialorder %v1067_v47, 0.0  ;;  %vm1519_vm0 = vcmp.ge.f32.partialorder %v1323_v57, 0.0 }
 0x15b   : > { %2351 = vst.msk [vmem:[%s3396_s6 + $0xa0] sm:$0xf] %vm2310_vm3, %v2808_v43  ;;  %v1583_v37 = vmul.f32 0.2, %v1067_v47  ;;  %v1713_v49 = vsel %vm1457_vm13, %v1075_v62, %v1585_v48  ;;  %v1647_v54 = vmul.f32 0.2, %v1323_v57  ;;  %v1088_v38 = vadd.f32 %v3759_v2, %v3740_v0 }
 0x15c   : > { %2415 = vst.msk [vmem:[%s3396_s6 + $0x1a0] sm:$0xf] %vm2310_vm3, %v2872_v46  ;;  %v1344_v55 = vadd.f32 %v3759_v2, %v3742_v14  ;;  %v2811_v56 = vpack.c.bf16 %v1713_v49, %v1713_v49  ;;  %v1777_v60 = vsel %vm1521_vm14, %v1331_v35, %v1649_v27  ;;  %v1080_v32 = vadd.f32 %v3759_v2, %v3744_v20 }
 0x15d   : > { %v1711_v61 = vsel %vm1455_vm15, %v1067_v47, %v1583_v37  ;;  %v2875_v53 = vpack.c.bf16 %v1777_v60, %v1777_v60  ;;  %v1775_v36 = vsel %vm1519_vm0, %v1323_v57, %v1647_v54  ;;  %vm1460_vm1 = vcmp.ge.f32.partialorder %v1088_v38, 0.0  ;;  %v3863_v4 = vpop.f32.mrb[56].mxu0  ;;  %v3865_v13 = vpop.f32.mrb[56].mxu1 }
 0x15e   : > { %v2809_v11 = vpack.c.bf16 %v1711_v61, %v1711_v61  ;;  %2354 = vst.msk [vmem:[%s3396_s6 + $0xac] sm:$0xf] %vm2310_vm3, %v2811_v56  ;;  %v2873_v0 = vpack.c.bf16 %v1775_v36, %v1775_v36  ;;  %v1588_v14 = vmul.f32 0.2, %v1088_v38  ;;  %vm1524_vm2 = vcmp.ge.f32.partialorder %v1344_v55, 0.0  ;;  %v3869_v10 = vpop.f32.mrb[57].mxu0 }
 0x15f   : > { %v1652_v6 = vmul.f32 0.2, %v1344_v55  ;;  %2418 = vst.msk [vmem:[%s3396_s6 + $0x1ac] sm:$0xf] %vm2310_vm3, %v2875_v53  ;;  %vm1458_vm4 = vcmp.ge.f32.partialorder %v1080_v32, 0.0  ;;  %v1336_v15 = vadd.f32 %v3759_v2, %v3746_v21  ;;  %v1091_v30 = vadd.f32 %v3759_v2, %v3748_v9  ;;  %v3879_v16 = vpop.f32.mrb[57].mxu1 }
 0x160   : > { %2352 = vst.msk [vmem:[%s3396_s6 + $0xa4] sm:$0xf] %vm2310_vm3, %v2809_v11  ;;  %v1586_v20 = vmul.f32 0.2, %v1080_v32  ;;  %v3881_v17 = vpop.f32.mrb[58].mxu0  ;;  %v1716_v18 = vsel %vm1460_vm1, %v1088_v38, %v1588_v14  ;;  %v1347_v44 = vadd.f32 %v3759_v2, %v3750_v58  ;;  %v1083_v21 = vadd.f32 %v3759_v2, %v3765_v29  ;;  %v3890_v22 = vpop.f32.mrb[58].mxu1 }
 0x161   : > { %2416 = vst.msk [vmem:[%s3396_s6 + $0x1a4] sm:$0xf] %vm2310_vm3, %v2873_v0  ;;  %v1780_v19 = vsel %vm1524_vm2, %v1344_v55, %v1652_v6  ;;  %v3892_v9 = vpop.f32.mrb[59].mxu0  ;;  %v2814_v31 = vpack.c.bf16 %v1716_v18, %v1716_v18  ;;  %vm1522_vm5 = vcmp.ge.f32.partialorder %v1336_v15, 0.0  ;;  %v3894_v42 = vpop.f32.mrb[59].mxu1  ;;  %vm1461_vm6 = vcmp.ge.f32.partialorder %v1091_v30, 0.0 }
 0x162   : > { %v2878_v7 = vpack.c.bf16 %v1780_v19, %v1780_v19  ;;  %v1714_v26 = vsel %vm1458_vm4, %v1080_v32, %v1586_v20  ;;  %v1650_v59 = vmul.f32 0.2, %v1336_v15  ;;  %v1589_v62 = vmul.f32 0.2, %v1091_v30 }
 0x163   : > { %v2812_v34 = vpack.c.bf16 %v1714_v26, %v1714_v26  ;;  %2357 = vst.msk [vmem:[%s3396_s6 + $0xb8] sm:$0xf] %vm2310_vm3, %v2814_v31  ;;  %vm1525_vm7 = vcmp.ge.f32.partialorder %v1347_v44, 0.0  ;;  %v1653_v58 = vmul.f32 0.2, %v1347_v44  ;;  %vm1459_vm8 = vcmp.ge.f32.partialorder %v1083_v21, 0.0 }
 0x164   : > { %2421 = vst.msk [vmem:[%s3396_s6 + $0x1b8] sm:$0xf] %vm2310_vm3, %v2878_v7  ;;  %v1587_v29 = vmul.f32 0.2, %v1083_v21  ;;  %v1778_v35 = vsel %vm1522_vm5, %v1336_v15, %v1650_v59  ;;  %v1717_v43 = vsel %vm1461_vm6, %v1091_v30, %v1589_v62  ;;  %v1339_v24 = vadd.f32 %v3759_v2, %v3767_v8 }
 0x165   : > { %2355 = vst.msk [vmem:[%s3396_s6 + $0xb0] sm:$0xf] %vm2310_vm3, %v2812_v34  ;;  %v1104_v47 = vadd.f32 %v3759_v2, %v3781_v5  ;;  %v2876_v57 = vpack.c.bf16 %v1778_v35, %v1778_v35  ;;  %v2815_v46 = vpack.c.bf16 %v1717_v43, %v1717_v43  ;;  %v1781_v48 = vsel %vm1525_vm7, %v1347_v44, %v1653_v58  ;;  %v3906_v37 = vpop.f32.mrb[60].mxu0  ;;  %v3908_v49 = vpop.f32.mrb[60].mxu1 }
 0x166   : > { %v1715_v27 = vsel %vm1459_vm8, %v1083_v21, %v1587_v29  ;;  %v2879_v54 = vpack.c.bf16 %v1781_v48, %v1781_v48  ;;  %vm1523_vm9 = vcmp.ge.f32.partialorder %v1339_v24, 0.0  ;;  %v1651_v55 = vmul.f32 0.2, %v1339_v24  ;;  %v3910_v56 = vpop.f32.mrb[61].mxu0  ;;  %v3912_v8 = vpop.f32.mrb[61].mxu1 }
 0x167   : > { %v2813_v38 = vpack.c.bf16 %v1715_v27, %v1715_v27  ;;  %2419 = vst.msk [vmem:[%s3396_s6 + $0x1b0] sm:$0xf] %vm2310_vm3, %v2876_v57  ;;  %2358 = vst.msk [vmem:[%s3396_s6 + $0xbc] sm:$0xf] %vm2310_vm3, %v2815_v46  ;;  %vm1464_vm10 = vcmp.ge.f32.partialorder %v1104_v47, 0.0  ;;  %v1360_v60 = vadd.f32 %v3759_v2, %v3785_v50  ;;  %v1096_v61 = vadd.f32 %v3759_v2, %v3787_v51  ;;  %v3922_v32 = vpop.f32.mrb[62].mxu0 }
 0x168   : > { %v1592_v5 = vmul.f32 0.2, %v1104_v47  ;;  %v3924_v53 = vpop.f32.mrb[62].mxu1  ;;  %2422 = vst.msk [vmem:[%s3396_s6 + $0x1bc] sm:$0xf] %vm2310_vm3, %v2879_v54  ;;  %v1779_v11 = vsel %vm1523_vm9, %v1339_v24, %v1651_v55  ;;  %v1352_v36 = vadd.f32 %v3759_v2, %v3791_v52  ;;  %v1107_v0 = vadd.f32 %v3759_v2, %v3793_v28  ;;  %v3936_v51 = vpop.f32.mrb[63].mxu0 }
 0x169   : > { %2356 = vst.msk [vmem:[%s3396_s6 + $0xb4] sm:$0xf] %vm2310_vm3, %v2813_v38  ;;  %v1363_v50 = vadd.f32 %v3759_v2, %v3799_v63  ;;  %v3938_v14 = vpop.f32.mrb[63].mxu1  ;;  %v2877_v6 = vpack.c.bf16 %v1779_v11, %v1779_v11  ;;  %vm1528_vm11 = vcmp.ge.f32.partialorder %v1360_v60, 0.0  ;;  %v1656_v15 = vmul.f32 0.2, %v1360_v60 }
 0x16a   : > { %v1720_v20 = vsel %vm1464_vm10, %v1104_v47, %v1592_v5  ;;  %vm1462_vm12 = vcmp.ge.f32.partialorder %v1096_v61, 0.0  ;;  %v1590_v18 = vmul.f32 0.2, %v1096_v61  ;;  %vm1526_vm13 = vcmp.ge.f32.partialorder %v1352_v36, 0.0 }
 0x16b   : > { %v2818_v30 = vpack.c.bf16 %v1720_v20, %v1720_v20  ;;  %2420 = vst.msk [vmem:[%s3396_s6 + $0x1b4] sm:$0xf] %vm2310_vm3, %v2877_v6  ;;  %v1784_v52 = vsel %vm1528_vm11, %v1360_v60, %v1656_v15  ;;  %v1654_v28 = vmul.f32 0.2, %v1352_v36  ;;  %vm1465_vm14 = vcmp.ge.f32.partialorder %v1107_v0, 0.0 }
 0x16c   : > { %v1593_v63 = vmul.f32 0.2, %v1107_v0  ;;  %v2882_v19 = vpack.c.bf16 %v1784_v52, %v1784_v52  ;;  %v1718_v44 = vsel %vm1462_vm12, %v1096_v61, %v1590_v18  ;;  %vm1529_vm15 = vcmp.ge.f32.partialorder %v1363_v50, 0.0 }
 0x16d   : > { %2361 = vst.msk [vmem:[%s3396_s6 + $0xc8] sm:$0xf] %vm2310_vm3, %v2818_v30  ;;  %v1657_v21 = vmul.f32 0.2, %v1363_v50  ;;  %v2816_v31 = vpack.c.bf16 %v1718_v44, %v1718_v44  ;;  %v1782_v7 = vsel %vm1526_vm13, %v1352_v36, %v1654_v28  ;;  %v1099_v34 = vadd.f32 %v3759_v2, %v3801_v3 }
 0x16e   : > { %v1721_v26 = vsel %vm1465_vm14, %v1107_v0, %v1593_v63  ;;  %2425 = vst.msk [vmem:[%s3396_s6 + $0x1c8] sm:$0xf] %vm2310_vm3, %v2882_v19  ;;  %v2880_v59 = vpack.c.bf16 %v1782_v7, %v1782_v7  ;;  %v1355_v29 = vadd.f32 %v3759_v2, %v3807_v39  ;;  %v1120_v24 = vadd.f32 %v3759_v2, %v3821_v25 }
 0x16f   : > { %v2819_v62 = vpack.c.bf16 %v1721_v26, %v1721_v26  ;;  %v1785_v58 = vsel %vm1529_vm15, %v1363_v50, %v1657_v21  ;;  %2359 = vst.msk [vmem:[%s3396_s6 + $0xc0] sm:$0xf] %vm2310_vm3, %v2816_v31  ;;  %vm1463_vm0 = vcmp.ge.f32.partialorder %v1099_v34, 0.0  ;;  %v1591_v43 = vmul.f32 0.2, %v1099_v34 }
 0x170   : > { %v2883_v35 = vpack.c.bf16 %v1785_v58, %v1785_v58  ;;  %2423 = vst.msk [vmem:[%s3396_s6 + $0x1c0] sm:$0xf] %vm2310_vm3, %v2880_v59  ;;  %vm1527_vm1 = vcmp.ge.f32.partialorder %v1355_v29, 0.0  ;;  %v1655_v3 = vmul.f32 0.2, %v1355_v29  ;;  %v1376_v47 = vadd.f32 %v3759_v2, %v3823_v41 }
 0x171   : > { %2362 = vst.msk [vmem:[%s3396_s6 + $0xcc] sm:$0xf] %vm2310_vm3, %v2819_v62  ;;  %v1112_v39 = vadd.f32 %v3759_v2, %v3827_v12  ;;  %v1719_v57 = vsel %vm1463_vm0, %v1099_v34, %v1591_v43  ;;  %vm1468_vm2 = vcmp.ge.f32.partialorder %v1120_v24, 0.0  ;;  %v1596_v46 = vmul.f32 0.2, %v1120_v24 }
 0x172   : > { %2426 = vst.msk [vmem:[%s3396_s6 + $0x1cc] sm:$0xf] %vm2310_vm3, %v2883_v35  ;;  %v1368_v25 = vadd.f32 %v3759_v2, %v3829_v33  ;;  %v2817_v48 = vpack.c.bf16 %v1719_v57, %v1719_v57  ;;  %v1783_v27 = vsel %vm1527_vm1, %v1355_v29, %v1655_v3  ;;  %vm1532_vm4 = vcmp.ge.f32.partialorder %v1376_v47, 0.0 }
 0x173   : > { %v1660_v54 = vmul.f32 0.2, %v1376_v47  ;;  %v2881_v38 = vpack.c.bf16 %v1783_v27, %v1783_v27  ;;  %v1724_v55 = vsel %vm1468_vm2, %v1120_v24, %v1596_v46  ;;  %vm1466_vm5 = vcmp.ge.f32.partialorder %v1112_v39, 0.0 }
 0x174   : > { %v1594_v41 = vmul.f32 0.2, %v1112_v39  ;;  %2360 = vst.msk [vmem:[%s3396_s6 + $0xc4] sm:$0xf] %vm2310_vm3, %v2817_v48  ;;  %v2822_v12 = vpack.c.bf16 %v1724_v55, %v1724_v55  ;;  %vm1530_vm6 = vcmp.ge.f32.partialorder %v1368_v25, 0.0  ;;  %v1123_v11 = vadd.f32 %v3759_v2, %v3837_v40 }
 0x175   : > { %v1788_v5 = vsel %vm1532_vm4, %v1376_v47, %v1660_v54  ;;  %v1658_v60 = vmul.f32 0.2, %v1368_v25  ;;  %2424 = vst.msk [vmem:[%s3396_s6 + $0x1c4] sm:$0xf] %vm2310_vm3, %v2881_v38  ;;  %v1379_v36 = vadd.f32 %v3759_v2, %v3839_v23  ;;  %v1115_v6 = vadd.f32 %v3759_v2, %v3847_v45 }
 0x176   : > { %v2886_v33 = vpack.c.bf16 %v1788_v5, %v1788_v5  ;;  %v1722_v61 = vsel %vm1466_vm5, %v1112_v39, %v1594_v41  ;;  %2365 = vst.msk [vmem:[%s3396_s6 + $0xd8] sm:$0xf] %vm2310_vm3, %v2822_v12  ;;  %v1371_v20 = vadd.f32 %v3759_v2, %v3849_v1  ;;  %vm1469_vm7 = vcmp.ge.f32.partialorder %v1123_v11, 0.0 }
 0x177   : > { %v2820_v0 = vpack.c.bf16 %v1722_v61, %v1722_v61  ;;  %v1786_v50 = vsel %vm1530_vm6, %v1368_v25, %v1658_v60  ;;  %v1597_v30 = vmul.f32 0.2, %v1123_v11  ;;  %vm1533_vm8 = vcmp.ge.f32.partialorder %v1379_v36, 0.0 }
 0x178   : > { %2429 = vst.msk [vmem:[%s3396_s6 + $0x1d8] sm:$0xf] %vm2310_vm3, %v2886_v33  ;;  %v2884_v15 = vpack.c.bf16 %v1786_v50, %v1786_v50  ;;  %v1661_v40 = vmul.f32 0.2, %v1379_v36  ;;  %vm1467_vm9 = vcmp.ge.f32.partialorder %v1115_v6, 0.0  ;;  %vm1531_vm10 = vcmp.ge.f32.partialorder %v1371_v20, 0.0 }
 0x179   : > { %2363 = vst.msk [vmem:[%s3396_s6 + $0xd0] sm:$0xf] %vm2310_vm3, %v2820_v0  ;;  %v1595_v23 = vmul.f32 0.2, %v1115_v6  ;;  %v1725_v18 = vsel %vm1469_vm7, %v1123_v11, %v1597_v30  ;;  %v1659_v45 = vmul.f32 0.2, %v1371_v20  ;;  %v1136_v1 = vadd.f32 %v3759_v2, %v3863_v4 }
 0x17a   : > { %2427 = vst.msk [vmem:[%s3396_s6 + $0x1d0] sm:$0xf] %vm2310_vm3, %v2884_v15  ;;  %v1392_v52 = vadd.f32 %v3759_v2, %v3865_v13  ;;  %v2823_v28 = vpack.c.bf16 %v1725_v18, %v1725_v18  ;;  %v1789_v63 = vsel %vm1533_vm8, %v1379_v36, %v1661_v40  ;;  %v1128_v44 = vadd.f32 %v3759_v2, %v3869_v10 }
 0x17b   : > { %v1723_v19 = vsel %vm1467_vm9, %v1115_v6, %v1595_v23  ;;  %v2887_v21 = vpack.c.bf16 %v1789_v63, %v1789_v63  ;;  %v1787_v7 = vsel %vm1531_vm10, %v1371_v20, %v1659_v45  ;;  %vm1472_vm11 = vcmp.ge.f32.partialorder %v1136_v1, 0.0 }
 0x17c   : > { %v2821_v31 = vpack.c.bf16 %v1723_v19, %v1723_v19  ;;  %2366 = vst.msk [vmem:[%s3396_s6 + $0xdc] sm:$0xf] %vm2310_vm3, %v2823_v28  ;;  %v2885_v26 = vpack.c.bf16 %v1787_v7, %v1787_v7  ;;  %v1600_v34 = vmul.f32 0.2, %v1136_v1  ;;  %vm1536_vm12 = vcmp.ge.f32.partialorder %v1392_v52, 0.0 }
 0x17d   : > { %v1664_v4 = vmul.f32 0.2, %v1392_v52  ;;  %2430 = vst.msk [vmem:[%s3396_s6 + $0x1dc] sm:$0xf] %vm2310_vm3, %v2887_v21  ;;  %vm1470_vm13 = vcmp.ge.f32.partialorder %v1128_v44, 0.0  ;;  %v1384_v10 = vadd.f32 %v3759_v2, %v3879_v16  ;;  %v1139_v59 = vadd.f32 %v3759_v2, %v3881_v17 }
 0x17e   : > { %2364 = vst.msk [vmem:[%s3396_s6 + $0xd4] sm:$0xf] %vm2310_vm3, %v2821_v31  ;;  %v1598_v13 = vmul.f32 0.2, %v1128_v44  ;;  %2428 = vst.msk [vmem:[%s3396_s6 + $0x1d4] sm:$0xf] %vm2310_vm3, %v2885_v26  ;;  %v1728_v62 = vsel %vm1472_vm11, %v1136_v1, %v1600_v34  ;;  %v1395_v29 = vadd.f32 %v3759_v2, %v3890_v22  ;;  %v1131_v35 = vadd.f32 %v3759_v2, %v3892_v9 }
 0x17f   : > { %v1792_v58 = vsel %vm1536_vm12, %v1392_v52, %v1664_v4  ;;  %v2826_v43 = vpack.c.bf16 %v1728_v62, %v1728_v62  ;;  %vm1534_vm14 = vcmp.ge.f32.partialorder %v1384_v10, 0.0  ;;  %v1662_v47 = vmul.f32 0.2, %v1384_v10 }
 0x180   : > { %v2890_v24 = vpack.c.bf16 %v1792_v58, %v1792_v58  ;;  %v1726_v3 = vsel %vm1470_vm13, %v1128_v44, %v1598_v13  ;;  %vm1473_vm15 = vcmp.ge.f32.partialorder %v1139_v59, 0.0  ;;  %v1601_v39 = vmul.f32 0.2, %v1139_v59 }
 0x181   : > { %v2824_v16 = vpack.c.bf16 %v1726_v3, %v1726_v3  ;;  %2369 = vst.msk [vmem:[%s3396_s6 + $0xe8] sm:$0xf] %vm2310_vm3, %v2826_v43  ;;  %vm1537_vm0 = vcmp.ge.f32.partialorder %v1395_v29, 0.0  ;;  %v1665_v17 = vmul.f32 0.2, %v1395_v29  ;;  %vm1471_vm1 = vcmp.ge.f32.partialorder %v1131_v35, 0.0 }
 0x182   : > { %2433 = vst.msk [vmem:[%s3396_s6 + $0x1e8] sm:$0xf] %vm2310_vm3, %v2890_v24  ;;  %v1599_v22 = vmul.f32 0.2, %v1131_v35  ;;  %v1790_v9 = vsel %vm1534_vm14, %v1384_v10, %v1662_v47  ;;  %v1729_v57 = vsel %vm1473_vm15, %v1139_v59, %v1601_v39  ;;  %v1387_v46 = vadd.f32 %v3759_v2, %v3894_v42 }
 0x183   : > { %2367 = vst.msk [vmem:[%s3396_s6 + $0xe0] sm:$0xf] %vm2310_vm3, %v2824_v16  ;;  %v1152_v25 = vadd.f32 %v3759_v2, %v3906_v37  ;;  %v2888_v48 = vpack.c.bf16 %v1790_v9, %v1790_v9  ;;  %v2827_v27 = vpack.c.bf16 %v1729_v57, %v1729_v57  ;;  %v1793_v54 = vsel %vm1537_vm0, %v1395_v29, %v1665_v17 }
 0x184   : > { %v1727_v38 = vsel %vm1471_vm1, %v1131_v35, %v1599_v22  ;;  %v2891_v55 = vpack.c.bf16 %v1793_v54, %v1793_v54  ;;  %vm1535_vm2 = vcmp.ge.f32.partialorder %v1387_v46, 0.0  ;;  %v1663_v12 = vmul.f32 0.2, %v1387_v46 }
 0x185   : > { %v2825_v41 = vpack.c.bf16 %v1727_v38, %v1727_v38  ;;  %2431 = vst.msk [vmem:[%s3396_s6 + $0x1e0] sm:$0xf] %vm2310_vm3, %v2888_v48  ;;  %2370 = vst.msk [vmem:[%s3396_s6 + $0xec] sm:$0xf] %vm2310_vm3, %v2827_v27  ;;  %vm1476_vm4 = vcmp.ge.f32.partialorder %v1152_v25, 0.0  ;;  %v1408_v42 = vadd.f32 %v3759_v2, %v3908_v49  ;;  %v1144_v37 = vadd.f32 %v3759_v2, %v3910_v56 }
 0x186   : > { %v1604_v5 = vmul.f32 0.2, %v1152_v25  ;;  %2434 = vst.msk [vmem:[%s3396_s6 + $0x1ec] sm:$0xf] %vm2310_vm3, %v2891_v55  ;;  %v1791_v60 = vsel %vm1535_vm2, %v1387_v46, %v1663_v12  ;;  %v1400_v33 = vadd.f32 %v3759_v2, %v3912_v8  ;;  %v1155_v61 = vadd.f32 %v3759_v2, %v3922_v32 }
 0x187   : > { %2368 = vst.msk [vmem:[%s3396_s6 + $0xe4] sm:$0xf] %vm2310_vm3, %v2825_v41  ;;  %v1411_v11 = vadd.f32 %v3759_v2, %v3924_v53  ;;  %v2889_v49 = vpack.c.bf16 %v1791_v60, %v1791_v60  ;;  %vm1540_vm5 = vcmp.ge.f32.partialorder %v1408_v42, 0.0  ;;  %v1668_v0 = vmul.f32 0.2, %v1408_v42 }
 0x188   : > { %v1732_v36 = vsel %vm1476_vm4, %v1152_v25, %v1604_v5  ;;  %vm1474_vm6 = vcmp.ge.f32.partialorder %v1144_v37, 0.0  ;;  %v1602_v50 = vmul.f32 0.2, %v1144_v37  ;;  %vm1538_vm7 = vcmp.ge.f32.partialorder %v1400_v33, 0.0 }
 0x189   : > { %v2830_v56 = vpack.c.bf16 %v1732_v36, %v1732_v36  ;;  %2432 = vst.msk [vmem:[%s3396_s6 + $0x1e4] sm:$0xf] %vm2310_vm3, %v2889_v49  ;;  %v1796_v6 = vsel %vm1540_vm5, %v1408_v42, %v1668_v0  ;;  %v1666_v8 = vmul.f32 0.2, %v1400_v33  ;;  %vm1477_vm8 = vcmp.ge.f32.partialorder %v1155_v61, 0.0 }
 0x18a   : > { %v1605_v20 = vmul.f32 0.2, %v1155_v61  ;;  %v2894_v32 = vpack.c.bf16 %v1796_v6, %v1796_v6  ;;  %v1730_v53 = vsel %vm1474_vm6, %v1144_v37, %v1602_v50  ;;  %vm1541_vm9 = vcmp.ge.f32.partialorder %v1411_v11, 0.0 }
 0x18b   : > { %2373 = vst.msk [vmem:[%s3396_s6 + $0xf8] sm:$0xf] %vm2310_vm3, %v2830_v56  ;;  %v1669_v15 = vmul.f32 0.2, %v1411_v11  ;;  %v2828_v30 = vpack.c.bf16 %v1730_v53, %v1730_v53  ;;  %v1794_v40 = vsel %vm1538_vm7, %v1400_v33, %v1666_v8  ;;  %v1147_v18 = vadd.f32 %v3759_v2, %v3936_v51 }
 0x18c   : > { %v1733_v23 = vsel %vm1477_vm8, %v1155_v61, %v1605_v20  ;;  %2437 = vst.msk [vmem:[%s3396_s6 + $0x1f8] sm:$0xf] %vm2310_vm3, %v2894_v32  ;;  %v2892_v45 = vpack.c.bf16 %v1794_v40, %v1794_v40  ;;  %v1403_v28 = vadd.f32 %v3759_v2, %v3938_v14 }
 0x18d   : > { %v2831_v1 = vpack.c.bf16 %v1733_v23, %v1733_v23  ;;  %v1797_v52 = vsel %vm1541_vm9, %v1411_v11, %v1669_v15  ;;  %2371 = vst.msk [vmem:[%s3396_s6 + $0xf0] sm:$0xf] %vm2310_vm3, %v2828_v30  ;;  %vm1475_vm10 = vcmp.ge.f32.partialorder %v1147_v18, 0.0  ;;  %v1603_v19 = vmul.f32 0.2, %v1147_v18 }
 0x18e   : > { %v2895_v63 = vpack.c.bf16 %v1797_v52, %v1797_v52  ;;  %2435 = vst.msk [vmem:[%s3396_s6 + $0x1f0] sm:$0xf] %vm2310_vm3, %v2892_v45  ;;  %vm1539_vm11 = vcmp.ge.f32.partialorder %v1403_v28, 0.0  ;;  %v1667_v51 = vmul.f32 0.2, %v1403_v28 }
 0x18f   : > { %2374 = vst.msk [vmem:[%s3396_s6 + $0xfc] sm:$0xf] %vm2310_vm3, %v2831_v1  ;;  %v1731_v44 = vsel %vm1475_vm10, %v1147_v18, %v1603_v19 }
 0x190   : > { %2438 = vst.msk [vmem:[%s3396_s6 + $0x1fc] sm:$0xf] %vm2310_vm3, %v2895_v63  ;;  %v2829_v21 = vpack.c.bf16 %v1731_v44, %v1731_v44  ;;  %v1795_v31 = vsel %vm1539_vm11, %v1403_v28, %v1667_v51 }
 0x191   : > { %v2893_v7 = vpack.c.bf16 %v1795_v31, %v1795_v31 }
 0x192   : > { %2372 = vst.msk [vmem:[%s3396_s6 + $0xf4] sm:$0xf] %vm2310_vm3, %v2829_v21 }
 0x193   : > { %2436 = vst.msk [vmem:[%s3396_s6 + $0x1f4] sm:$0xf] %vm2310_vm3, %v2893_v7 }
 0x194 PF: > { %s13_s12 = sadd.s32 1, %s3198_s12  }
 0x195   : > { %p10_p4 = scmp.ge.s32.totalorder %s13_s12, 6  }
 0x197   :  { %12 = sbr.rel (!%p10_p4) target bundleno = 1 (0x1), region = 62 }

// kernel: encoder_forward.6
= control target key start
LH: loop header
LB: loop body
LE: loop exit
PB: predicated region body
PF: predicated region fallthrough
CT: control target
= control target key end

     0   :  { %s2787_s12 = smov 0   ;;  %s3399_s0 = inlined_call_operand.vmem [shape: bf16[1024,288], index: 0, kind: input, shape index: {}]   ;;  %s3400_s1 = inlined_call_operand.vmem [shape: bf16[288,64], index: 1, kind: input, shape index: {}]   ;;  %s3401_s2 = inlined_call_operand.vmem [shape: f32[1,64], index: 2, kind: input, shape index: {}]   ;;  %s3402_s3 = inlined_call_operand.vmem [shape: bf16[1024,64], index: 3, kind: output, shape index: {}]  }
   0x1 LB: > { %s2181_s13 = sadd.s32 4294967295, %s2764_s12   ;;  %p2185_p0 = scmp.ge.s32.totalorder %s2764_s12, 1  ;;  %s2764_s12 = sphi %s2787_s12, %s13_s12  }
   0x2   : > { %p139_p1 = scmp.lt.s32.totalorder %s2764_s12, 3 }
   0x4   : > { %p140_p2 = pnand %p2185_p0, %p139_p1 }
   0x5   : > { %v2611_v0 = vld [vmem:[%s3400_s1] sm:$0xff] (!%p140_p2)   ;;  %v2766_v1 = vmov (!%p140_p2), 0   ;;  %s2186_s16 = sshll.u32 (!%p140_p2), %s2181_s13, 6  ;;  %v2612_v2 = vld [vmem:[%s3400_s1 + $0x8] sm:$0xff] (!%p140_p2)   ;;  %v2613_v3 = vld [vmem:[%s3400_s1 + $0x10] sm:$0xff] (!%p140_p2)   ;;  %vm937_vm0 = vcmask (!%p140_p2), 261120  }
   0x6   : > { %143 = sbr.rel (%p140_p2) target bundleno = 480 (0x1e0), region = 32  ;;  %1034 = vmatprep.subr.bf16.mxu0 (!%p140_p2), %v2766_v1  ;;  %2569 = vmatprep.subr.bf16.mxu1 (!%p140_p2), %v2766_v1  ;;  %p165_p3 = scmp.lt.s32.totalorder (!%p140_p2), %s2186_s16, 127  ;;  %v2614_v4 = vld [vmem:[%s3400_s1 + $0x18] sm:$0xff] (!%p140_p2)   ;;  %v2615_v5 = vld [vmem:[%s3400_s1 + $0x20] sm:$0xff] (!%p140_p2)   ;;  %v2616_v7 = vld [vmem:[%s3400_s1 + $0x28] sm:$0xff] (!%p140_p2)   ;;  %vm2060_vm3 = vcmask (!%p140_p2), 519168  }
   0x7   : > { %1035 = vmatpush1.bf16.msra.mxu0 (!%p140_p2), %v2611_v0  ;;  %2585 = vmatpush1.bf16.msra.mxu1 (!%p140_p2), %v2611_v0  ;;  %v2617_v9 = vld [vmem:[%s3400_s1 + $0x30] sm:$0xff] (!%p140_p2)   ;;  %v2618_v10 = vld [vmem:[%s3400_s1 + $0x38] sm:$0xff] (!%p140_p2)   ;;  %v2619_v11 = vld [vmem:[%s3400_s1 + $0x40] sm:$0xff] (!%p140_p2)  }
   0x8   : > { %1036 = vmatprep.subr.bf16.mxu0 (!%p140_p2), %v2766_v1  ;;  %2570 = vmatprep.subr.bf16.mxu1 (!%p140_p2), %v2766_v1  ;;  %v2620_v12 = vld [vmem:[%s3400_s1 + $0x48] sm:$0xff] (!%p140_p2)   ;;  %v2621_v13 = vld [vmem:[%s3400_s1 + $0x50] sm:$0xff] (!%p140_p2)   ;;  %v2622_v14 = vld [vmem:[%s3400_s1 + $0x58] sm:$0xff] (!%p140_p2)  }
   0x9   : > { %v2623_v15 = vld [vmem:[%s3400_s1 + $0x60] sm:$0xff] (!%p140_p2)   ;;  %v2624_v16 = vld [vmem:[%s3400_s1 + $0x68] sm:$0xff] (!%p140_p2)   ;;  %v2625_v17 = vld [vmem:[%s3400_s1 + $0x70] sm:$0xff] (!%p140_p2)  }
   0xa   : > { %v2626_v18 = vld [vmem:[%s3400_s1 + $0x78] sm:$0xff] (!%p140_p2)   ;;  %v2633_v19 = vld [vmem:[%s3400_s1 + $0x80] sm:$0xff] (!%p140_p2)   ;;  %v2658_v24 = vld [vmem:[%s3400_s1 + $0x88] sm:$0xff] (!%p140_p2)  }
   0xb   : > { %1037 = vmatpush1.bf16.msra.mxu0 (!%p140_p2), %v2612_v2  ;;  %2586 = vmatpush1.bf16.msra.mxu1 (!%p140_p2), %v2612_v2 }
   0xc   : > { %1038 = vmatprep.subr.bf16.mxu0 (!%p140_p2), %v2766_v1  ;;  %2571 = vmatprep.subr.bf16.mxu1 (!%p140_p2), %v2766_v1 }
   0xd   : > { %s3404_s16 = smov (!%p165_p3, %s2186_s16), 127 }
   0xe   : > { %s2601_s23 = smul.u32 12, %s3404_s16  ;;  %s2189_s5 = sshll.u32 %s3404_s16, 2 }
   0xf   : > { %1039 = vmatpush1.bf16.msra.mxu0 %v2613_v3  ;;  %2587 = vmatpush1.bf16.msra.mxu1 %v2613_v3  ;;  %s3096_s8 = scalar_lea.vmem %s3402_s3, %s2189_s5 }
  0x10   : > { %1040 = vmatprep.subr.bf16.mxu0 %v2766_v1  ;;  %2572 = vmatprep.subr.bf16.mxu1 %v2766_v1  ;;  %s2824_s28 = scalar_lea.vmem %s3399_s0, %s2601_s23 }
  0x11   : > { %v2629_v6 = vld [vmem:[%s2824_s28 + $0x4] ss:$12 sps:$4 sm:$0xff]   ;;  %v2627_v20 = vld [vmem:[%s2824_s28] ss:$12 sps:$4 sm:$0xff]   ;;  %v2634_v22 = vld [vmem:[%s2824_s28 + $0x1c] ss:$12 sps:$4 sm:$0xff]  }
  0x12   : > { %v2632_v8 = vld [vmem:[%s2824_s28 + $0x244] ss:$12 sps:$4 sm:$0xff]   ;;  %1066 = vmatprep.mubr.bf16.mxu0 %v2629_v6  ;;  %v2630_v21 = vld [vmem:[%s2824_s28 + $0x240] ss:$12 sps:$4 sm:$0xff]   ;;  %v2636_v23 = vld [vmem:[%s2824_s28 + $0x25c] ss:$12 sps:$4 sm:$0xff]  }
  0x13   : > { %1041 = vmatpush1.bf16.msra.mxu0 %v2614_v4  ;;  %2588 = vmatpush1.bf16.msra.mxu1 %v2614_v4  ;;  %v2638_v25 = vld [vmem:[%s2824_s28 + $0x18] ss:$12 sps:$4 sm:$0xff]   ;;  %v2640_v27 = vld [vmem:[%s2824_s28 + $0x34] ss:$12 sps:$4 sm:$0xff]   ;;  %v2644_v29 = vld [vmem:[%s2824_s28 + $0x30] ss:$12 sps:$4 sm:$0xff]  }
  0x14   : > { %1042 = vmatprep.subr.bf16.mxu0 %v2766_v1  ;;  %2573 = vmatprep.subr.bf16.mxu1 %v2766_v1  ;;  %v2639_v26 = vld [vmem:[%s2824_s28 + $0x258] ss:$12 sps:$4 sm:$0xff]   ;;  %v2642_v28 = vld [vmem:[%s2824_s28 + $0x274] ss:$12 sps:$4 sm:$0xff]   ;;  %v2645_v30 = vld [vmem:[%s2824_s28 + $0x270] ss:$12 sps:$4 sm:$0xff]  }
  0x15   : > { %1258 = vmatprep.mubr.bf16.mxu1 %v2632_v8  ;;  %v2646_v31 = vld [vmem:[%s2824_s28 + $0x4c] ss:$12 sps:$4 sm:$0xff]   ;;  %v2650_v33 = vld [vmem:[%s2824_s28 + $0x48] ss:$12 sps:$4 sm:$0xff]   ;;  %v2652_v35 = vld [vmem:[%s2824_s28 + $0x64] ss:$12 sps:$4 sm:$0xff]  }
  0x16   : > { %v2648_v32 = vld [vmem:[%s2824_s28 + $0x28c] ss:$12 sps:$4 sm:$0xff]   ;;  %v2651_v34 = vld [vmem:[%s2824_s28 + $0x288] ss:$12 sps:$4 sm:$0xff]   ;;  %v2654_v36 = vld [vmem:[%s2824_s28 + $0x2a4] ss:$12 sps:$4 sm:$0xff]  }
  0x17   : > { %1043 = vmatpush1.bf16.msra.mxu0 %v2615_v5  ;;  %2589 = vmatpush1.bf16.msra.mxu1 %v2615_v5  ;;  %v2656_v37 = vld [vmem:[%s2824_s28 + $0x60] ss:$12 sps:$4 sm:$0xff]   ;;  %v2659_v39 = vld [vmem:[%s2824_s28 + $0x7c] ss:$12 sps:$4 sm:$0xff]   ;;  %v2663_v41 = vld [vmem:[%s2824_s28 + $0x78] ss:$12 sps:$4 sm:$0xff]  }
  0x18   : > { %1044 = vmatprep.subr.bf16.mxu0 %v2766_v1  ;;  %2574 = vmatprep.subr.bf16.mxu1 %v2766_v1  ;;  %v2657_v38 = vld [vmem:[%s2824_s28 + $0x2a0] ss:$12 sps:$4 sm:$0xff]   ;;  %v2661_v40 = vld [vmem:[%s2824_s28 + $0x2bc] ss:$12 sps:$4 sm:$0xff]   ;;  %v2664_v42 = vld [vmem:[%s2824_s28 + $0x2b8] ss:$12 sps:$4 sm:$0xff]  }
  0x19   : > { %v2665_v43 = vld [vmem:[%s2824_s28 + $0x94] ss:$12 sps:$4 sm:$0xff]   ;;  %v2669_v45 = vld [vmem:[%s2824_s28 + $0x90] ss:$12 sps:$4 sm:$0xff]   ;;  %v2671_v47 = vld [vmem:[%s2824_s28 + $0xac] ss:$12 sps:$4 sm:$0xff]  }
  0x1a   : > { %v2667_v44 = vld [vmem:[%s2824_s28 + $0x2d4] ss:$12 sps:$4 sm:$0xff]   ;;  %v2670_v46 = vld [vmem:[%s2824_s28 + $0x2d0] ss:$12 sps:$4 sm:$0xff]   ;;  %v2673_v48 = vld [vmem:[%s2824_s28 + $0x2ec] ss:$12 sps:$4 sm:$0xff]  }
  0x1b   : > { %1045 = vmatpush1.bf16.msra.mxu0 %v2616_v7  ;;  %2590 = vmatpush1.bf16.msra.mxu1 %v2616_v7  ;;  %v2675_v49 = vld [vmem:[%s2824_s28 + $0xa8] ss:$12 sps:$4 sm:$0xff]   ;;  %v2677_v51 = vld [vmem:[%s2824_s28 + $0xc4] ss:$12 sps:$4 sm:$0xff]   ;;  %v2680_v53 = vld [vmem:[%s2824_s28 + $0xc0] ss:$12 sps:$4 sm:$0xff]  }
  0x1c   : > { %1046 = vmatprep.subr.bf16.mxu0 %v2766_v1  ;;  %2575 = vmatprep.subr.bf16.mxu1 %v2766_v1  ;;  %v2676_v50 = vld [vmem:[%s2824_s28 + $0x2e8] ss:$12 sps:$4 sm:$0xff]   ;;  %v2681_v54 = vld [vmem:[%s2824_s28 + $0x20] ss:$12 sps:$4 sm:$0xff]   ;;  %v2684_v56 = vld [vmem:[%s2824_s28 + $0x38] ss:$12 sps:$4 sm:$0xff]  }
  0x1d   : > { %v2679_v52 = vld [vmem:[%s2824_s28 + $0x8] ss:$12 sps:$4 sm:$0xff]   ;;  %v2685_v57 = vld [vmem:[%s2824_s28 + $0xd8] ss:$12 sps:$4 sm:$0xff]   ;;  %v2686_v58 = vld [vmem:[%s2824_s28 + $0x50] ss:$12 sps:$4 sm:$0xff]  }
  0x1e   : > { %v2682_v55 = vld [vmem:[%s2824_s28 + $0xdc] ss:$12 sps:$4 sm:$0xff]   ;;  %v2687_v59 = vld [vmem:[%s2824_s28 + $0xf4] ss:$12 sps:$4 sm:$0xff]   ;;  %v2692_v63 = vld [vmem:[%s2824_s28 + $0x10c] ss:$12 sps:$4 sm:$0xff]  }
  0x1f   : > { %1047 = vmatpush1.bf16.msra.mxu0 %v2617_v9  ;;  %2591 = vmatpush1.bf16.msra.mxu1 %v2617_v9  ;;  %v2689_v60 = vld [vmem:[%s2824_s28 + $0x68] ss:$12 sps:$4 sm:$0xff]   ;;  %v2690_v61 = vld [vmem:[%s2824_s28 + $0xf0] ss:$12 sps:$4 sm:$0xff]   ;;  %v2691_v62 = vld [vmem:[%s2824_s28 + $0x80] ss:$12 sps:$4 sm:$0xff]  }
  0x20   : > { %1048 = vmatprep.subr.bf16.mxu0 %v2766_v1  ;;  %2576 = vmatprep.subr.bf16.mxu1 %v2766_v1  ;;  %v2694_v0 = vld [vmem:[%s2824_s28 + $0x98] ss:$12 sps:$4 sm:$0xff]   ;;  %v2696_v2 = vld [vmem:[%s2824_s28 + $0xb0] ss:$12 sps:$4 sm:$0xff]   ;;  %v2699_v4 = vld [vmem:[%s2824_s28 + $0xc8] ss:$12 sps:$4 sm:$0xff]  }
  0x21   : > { %v2697_v3 = vld [vmem:[%s2824_s28 + $0x124] ss:$12 sps:$4 sm:$0xff]   ;;  %v2700_v5 = vld [vmem:[%s2824_s28 + $0x120] ss:$12 sps:$4 sm:$0xff]   ;;  %v2702_v7 = vld [vmem:[%s2824_s28 + $0x13c] ss:$12 sps:$4 sm:$0xff]  }
  0x22   : > { %v2701_v6 = vld [vmem:[%s2824_s28 + $0xe0] ss:$12 sps:$4 sm:$0xff]   ;;  %v2704_v8 = vld [vmem:[%s2824_s28 + $0xf8] ss:$12 sps:$4 sm:$0xff]  }
  0x23   : > { %1049 = vmatpush1.bf16.msra.mxu0 %v2618_v10  ;;  %2592 = vmatpush1.bf16.msra.mxu1 %v2618_v10  ;;  %v2705_v9 = vld [vmem:[%s2824_s28 + $0x138] ss:$12 sps:$4 sm:$0xff]   ;;  %v2706_v10 = vld [vmem:[%s2824_s28 + $0x110] ss:$12 sps:$4 sm:$0xff]  }
  0x24   : > { %1050 = vmatprep.subr.bf16.mxu0 %v2766_v1  ;;  %2577 = vmatprep.subr.bf16.mxu1 %v2766_v1 }
  0x27   : > { %1051 = vmatpush1.bf16.msra.mxu0 %v2619_v11  ;;  %2593 = vmatpush1.bf16.msra.mxu1 %v2619_v11  ;;  %v2707_v11 = vld [vmem:[%s2824_s28 + $0x154] ss:$12 sps:$4 sm:$0xff]  }
  0x28   : > { %1052 = vmatprep.subr.bf16.mxu0 %v2766_v1  ;;  %2578 = vmatprep.subr.bf16.mxu1 %v2766_v1 }
  0x2b   : > { %1053 = vmatpush1.bf16.msra.mxu0 %v2620_v12  ;;  %2594 = vmatpush1.bf16.msra.mxu1 %v2620_v12  ;;  %v2709_v12 = vld [vmem:[%s2824_s28 + $0x128] ss:$12 sps:$4 sm:$0xff]  }
  0x2c   : > { %1054 = vmatprep.subr.bf16.mxu0 %v2766_v1  ;;  %2579 = vmatprep.subr.bf16.mxu1 %v2766_v1 }
  0x2f   : > { %1055 = vmatpush1.bf16.msra.mxu0 %v2621_v13  ;;  %2595 = vmatpush1.bf16.msra.mxu1 %v2621_v13  ;;  %v2710_v13 = vld [vmem:[%s2824_s28 + $0x150] ss:$12 sps:$4 sm:$0xff]  }
  0x30   : > { %1056 = vmatprep.subr.bf16.mxu0 %v2766_v1  ;;  %2580 = vmatprep.subr.bf16.mxu1 %v2766_v1 }
  0x33   : > { %1057 = vmatpush1.bf16.msra.mxu0 %v2622_v14  ;;  %2596 = vmatpush1.bf16.msra.mxu1 %v2622_v14  ;;  %v2711_v14 = vld [vmem:[%s2824_s28 + $0x140] ss:$12 sps:$4 sm:$0xff]  }
  0x34   : > { %1058 = vmatprep.subr.bf16.mxu0 %v2766_v1  ;;  %2581 = vmatprep.subr.bf16.mxu1 %v2766_v1 }
  0x37   : > { %1059 = vmatpush1.bf16.msra.mxu0 %v2623_v15  ;;  %2597 = vmatpush1.bf16.msra.mxu1 %v2623_v15  ;;  %v2712_v15 = vld [vmem:[%s2824_s28 + $0x16c] ss:$12 sps:$4 sm:$0xff]  }
  0x38   : > { %1060 = vmatprep.subr.bf16.mxu0 %v2766_v1  ;;  %2582 = vmatprep.subr.bf16.mxu1 %v2766_v1 }
  0x3b   : > { %1061 = vmatpush1.bf16.msra.mxu0 %v2624_v16  ;;  %2598 = vmatpush1.bf16.msra.mxu1 %v2624_v16  ;;  %v2714_v16 = vld [vmem:[%s2824_s28 + $0x158] ss:$12 sps:$4 sm:$0xff]  }
  0x3c   : > { %1062 = vmatprep.subr.bf16.mxu0 %v2766_v1  ;;  %2583 = vmatprep.subr.bf16.mxu1 %v2766_v1 }
  0x3f   : > { %1063 = vmatpush1.bf16.msra.mxu0 %v2625_v17  ;;  %2599 = vmatpush1.bf16.msra.mxu1 %v2625_v17  ;;  %v2715_v17 = vld [vmem:[%s2824_s28 + $0x168] ss:$12 sps:$4 sm:$0xff]  }
  0x40   : > { %1064 = vmatprep.subr.bf16.mxu0 %v2766_v1  ;;  %2584 = vmatprep.subr.bf16.mxu1 %v2766_v1  ;;  %v2695_v1 = vld [vmem:[%s2824_s28 + $0x108] ss:$12 sps:$4 sm:$0xff]  }
  0x43   : > { %1065 = vmatpush1.bf16.msra.mxu0 %v2626_v18  ;;  %2600 = vmatpush1.bf16.msra.mxu1 %v2626_v18  ;;  %v2716_v18 = vld [vmem:[%s2824_s28 + $0x170] ss:$12 sps:$4 sm:$0xff]  }
  0x44   : > { %2501 = vmatprep.subr.bf16.mxu1 %v2633_v19 }
  0x46   : > { %1067 = vmatmul.mubr.bf16.vlgmr.msra.gmra.mrb[0].mxu0 %v2627_v20  ;;  %1259 = vmatmul.mubr.bf16.vlgmr.msra.gmra.mrb[0].mxu1 %v2630_v21  ;;  %v2719_v20 = vld [vmem:[%s2824_s28 + $0x188] ss:$12 sps:$4 sm:$0xff]   ;;  %v2720_v21 = vld [vmem:[%s2824_s28 + $0x180] ss:$12 sps:$4 sm:$0xff]  }
  0x47   : > { %2502 = vmatpush3.bf16.msra.mxu1 %v2633_v19  ;;  %1074 = vmatprep.mubr.bf16.mxu0 %v2634_v22  ;;  %v2717_v19 = vld [vmem:[%s2824_s28 + $0x184] ss:$12 sps:$4 sm:$0xff]   ;;  %v2721_v22 = vld [vmem:[%s2824_s28 + $0x1a0] ss:$12 sps:$4 sm:$0xff]  }
  0x48   : > { %1266 = vmatprep.mubr.bf16.mxu1 %v2636_v23  ;;  %2503 = vmatprep.subr.bf16.mxu1 %v2658_v24  ;;  %v2722_v23 = vld [vmem:[%s2824_s28 + $0x19c] ss:$12 sps:$4 sm:$0xff]  }
  0x4b   : > { %2504 = vmatpush3.bf16.msra.mxu1 %v2658_v24  ;;  %v2724_v24 = vld [vmem:[%s2824_s28 + $0x1b8] ss:$12 sps:$4 sm:$0xff]  }
  0x4e   : > { %1075 = vmatmul.mubr.bf16.gmra.mrb[4].mxu0 %v2638_v25  ;;  %1267 = vmatmul.mubr.bf16.gmra.mrb[4].mxu1 %v2639_v26  ;;  %v2725_v25 = vld [vmem:[%s2824_s28 + $0x198] ss:$12 sps:$4 sm:$0xff]   ;;  %v2726_v26 = vld [vmem:[%s2824_s28 + $0x1d0] ss:$12 sps:$4 sm:$0xff]  }
  0x4f   : > { %1082 = vmatprep.mubr.bf16.mxu0 %v2640_v27  ;;  %1274 = vmatprep.mubr.bf16.mxu1 %v2642_v28  ;;  %v2727_v27 = vld [vmem:[%s2824_s28 + $0x1b4] ss:$12 sps:$4 sm:$0xff]  }
  0x50   : > { %v2729_v28 = vld [vmem:[%s2824_s28 + $0x1e8] ss:$12 sps:$4 sm:$0xff]  }
  0x56   : > { %1083 = vmatmul.mubr.bf16.gmra.mrb[8].mxu0 %v2644_v29  ;;  %1275 = vmatmul.mubr.bf16.gmra.mrb[8].mxu1 %v2645_v30  ;;  %v2730_v29 = vld [vmem:[%s2824_s28 + $0x1b0] ss:$12 sps:$4 sm:$0xff]   ;;  %v2731_v30 = vld [vmem:[%s2824_s28 + $0x200] ss:$12 sps:$4 sm:$0xff]  }
  0x57   : > { %1090 = vmatprep.mubr.bf16.mxu0 %v2646_v31  ;;  %1282 = vmatprep.mubr.bf16.mxu1 %v2648_v32  ;;  %v2732_v31 = vld [vmem:[%s2824_s28 + $0x1cc] ss:$12 sps:$4 sm:$0xff]  }
  0x58   : > { %v2734_v32 = vld [vmem:[%s2824_s28 + $0x218] ss:$12 sps:$4 sm:$0xff]  }
  0x5e   : > { %1091 = vmatmul.mubr.bf16.gmra.mrb[12].mxu0 %v2650_v33  ;;  %1283 = vmatmul.mubr.bf16.gmra.mrb[12].mxu1 %v2651_v34  ;;  %v2735_v33 = vld [vmem:[%s2824_s28 + $0x1c8] ss:$12 sps:$4 sm:$0xff]   ;;  %v2736_v34 = vld [vmem:[%s2824_s28 + $0x230] ss:$12 sps:$4 sm:$0xff]  }
  0x5f   : > { %1098 = vmatprep.mubr.bf16.mxu0 %v2652_v35  ;;  %1290 = vmatprep.mubr.bf16.mxu1 %v2654_v36  ;;  %v2737_v35 = vld [vmem:[%s2824_s28 + $0x1e4] ss:$12 sps:$4 sm:$0xff]   ;;  %v2739_v36 = vld [vmem:[%s2824_s28 + $0x248] ss:$12 sps:$4 sm:$0xff]  }
  0x66   : > { %1099 = vmatmul.mubr.bf16.gmra.mrb[16].mxu0 %v2656_v37  ;;  %1291 = vmatmul.mubr.bf16.gmra.mrb[16].mxu1 %v2657_v38  ;;  %v2740_v37 = vld [vmem:[%s2824_s28 + $0x1e0] ss:$12 sps:$4 sm:$0xff]  }
  0x67   : > { %1106 = vmatprep.mubr.bf16.mxu0 %v2659_v39  ;;  %1298 = vmatprep.mubr.bf16.mxu1 %v2661_v40  ;;  %v2741_v38 = vld [vmem:[%s2824_s28 + $0x260] ss:$12 sps:$4 sm:$0xff]   ;;  %v2742_v39 = vld [vmem:[%s2824_s28 + $0x1fc] ss:$12 sps:$4 sm:$0xff]   ;;  %v2744_v40 = vld [vmem:[%s2824_s28 + $0x278] ss:$12 sps:$4 sm:$0xff]  }
  0x6e   : > { %1107 = vmatmul.mubr.bf16.gmra.mrb[20].mxu0 %v2663_v41  ;;  %1299 = vmatmul.mubr.bf16.gmra.mrb[20].mxu1 %v2664_v42  ;;  %v2745_v41 = vld [vmem:[%s2824_s28 + $0x1f8] ss:$12 sps:$4 sm:$0xff]   ;;  %v2746_v42 = vld [vmem:[%s2824_s28 + $0x290] ss:$12 sps:$4 sm:$0xff]  }
  0x6f   : > { %1114 = vmatprep.mubr.bf16.mxu0 %v2665_v43  ;;  %1306 = vmatprep.mubr.bf16.mxu1 %v2667_v44  ;;  %v2747_v43 = vld [vmem:[%s2824_s28 + $0x214] ss:$12 sps:$4 sm:$0xff]  }
  0x70   : > { %v2749_v44 = vld [vmem:[%s2824_s28 + $0x2a8] ss:$12 sps:$4 sm:$0xff]  }
  0x76   : > { %1115 = vmatmul.mubr.bf16.gmra.mrb[24].mxu0 %v2669_v45  ;;  %1307 = vmatmul.mubr.bf16.gmra.mrb[24].mxu1 %v2670_v46  ;;  %v2750_v45 = vld [vmem:[%s2824_s28 + $0x210] ss:$12 sps:$4 sm:$0xff]   ;;  %v2751_v46 = vld [vmem:[%s2824_s28 + $0x2c0] ss:$12 sps:$4 sm:$0xff]  }
  0x77   : > { %1122 = vmatprep.mubr.bf16.mxu0 %v2671_v47  ;;  %1314 = vmatprep.mubr.bf16.mxu1 %v2673_v48  ;;  %v2752_v47 = vld [vmem:[%s2824_s28 + $0x22c] ss:$12 sps:$4 sm:$0xff]  }
  0x78   : > { %v2754_v48 = vld [vmem:[%s2824_s28 + $0x2d8] ss:$12 sps:$4 sm:$0xff]  }
  0x7e   : > { %1123 = vmatmul.mubr.bf16.gmra.mrb[28].mxu0 %v2675_v49  ;;  %1315 = vmatmul.mubr.bf16.gmra.mrb[28].mxu1 %v2676_v50  ;;  %v2755_v49 = vld [vmem:[%s2824_s28 + $0x228] ss:$12 sps:$4 sm:$0xff]   ;;  %v2756_v50 = vld [vmem:[%s2824_s28 + $0x2f0] ss:$12 sps:$4 sm:$0xff]  }
  0x7f   : > { %1130 = vmatprep.mubr.bf16.mxu0 %v2677_v51  ;;  %2505 = vmatprep.mubr.msk.bf16.mxu1 %vm937_vm0, %v2679_v52 }
  0x86   : > { %1131 = vmatmul.mubr.bf16.gmra.mrb[32].mxu0 %v2680_v53  ;;  %2506 = vmatmul.mubr.msk.bf16.vlgmr.msra.gmra.mrb[32].mxu1 %vm937_vm0, %v2681_v54 }
  0x87   : > { %1138 = vmatprep.mubr.bf16.mxu0 %v2682_v55  ;;  %2509 = vmatprep.mubr.msk.bf16.mxu1 %vm937_vm0, %v2684_v56 }
  0x8e   : > { %1139 = vmatmul.mubr.bf16.gmra.mrb[36].mxu0 %v2685_v57  ;;  %2510 = vmatmul.mubr.msk.bf16.gmra.mrb[36].mxu1 %vm937_vm0, %v2686_v58 }
  0x8f   : > { %1146 = vmatprep.mubr.bf16.mxu0 %v2687_v59  ;;  %2513 = vmatprep.mubr.msk.bf16.mxu1 %vm937_vm0, %v2689_v60 }
  0x96   : > { %1147 = vmatmul.mubr.bf16.gmra.mrb[40].mxu0 %v2690_v61  ;;  %2514 = vmatmul.mubr.msk.bf16.gmra.mrb[40].mxu1 %vm937_vm0, %v2691_v62 }
  0x97   : > { %1154 = vmatprep.mubr.bf16.mxu0 %v2692_v63  ;;  %2517 = vmatprep.mubr.msk.bf16.mxu1 %vm937_vm0, %v2694_v0 }
  0x9e   : > { %1155 = vmatmul.mubr.bf16.gmra.mrb[44].mxu0 %v2695_v1  ;;  %2518 = vmatmul.mubr.msk.bf16.gmra.mrb[44].mxu1 %vm937_vm0, %v2696_v2 }
  0x9f   : > { %1162 = vmatprep.mubr.bf16.mxu0 %v2697_v3  ;;  %2521 = vmatprep.mubr.msk.bf16.mxu1 %vm937_vm0, %v2699_v4 }
  0xa6   : > { %1163 = vmatmul.mubr.bf16.gmra.mrb[48].mxu0 %v2700_v5  ;;  %2522 = vmatmul.mubr.msk.bf16.gmra.mrb[48].mxu1 %vm937_vm0, %v2701_v6 }
  0xa7   : > { %1170 = vmatprep.mubr.bf16.mxu0 %v2702_v7  ;;  %2525 = vmatprep.mubr.msk.bf16.mxu1 %vm937_vm0, %v2704_v8 }
  0xae   : > { %1171 = vmatmul.mubr.bf16.gmra.mrb[52].mxu0 %v2705_v9  ;;  %2526 = vmatmul.mubr.msk.bf16.gmra.mrb[52].mxu1 %vm937_vm0, %v2706_v10 }
  0xaf   : > { %1178 = vmatprep.mubr.bf16.mxu0 %v2707_v11  ;;  %2529 = vmatprep.mubr.msk.bf16.mxu1 %vm937_vm0, %v2709_v12 }
  0xb6   : > { %1179 = vmatmul.mubr.bf16.gmra.mrb[56].mxu0 %v2710_v13  ;;  %2530 = vmatmul.mubr.msk.bf16.gmra.mrb[56].mxu1 %vm937_vm0, %v2711_v14 }
  0xb7   : > { %1186 = vmatprep.mubr.bf16.mxu0 %v2712_v15  ;;  %2533 = vmatprep.mubr.msk.bf16.mxu1 %vm937_vm0, %v2714_v16 }
  0xbe   : > { %1187 = vmatmul.mubr.bf16.gmra.mrb[60].mxu0 %v2715_v17  ;;  %2534 = vmatmul.mubr.msk.bf16.gmra.mrb[60].mxu1 %vm937_vm0, %v2716_v18 }
  0xbf   : > { %1194 = vmatprep.mubr.bf16.mxu0 %v2717_v19  ;;  %2537 = vmatprep.mubr.msk.bf16.mxu1 %vm937_vm0, %v2719_v20 }
  0xc6   : > { %1195 = vmatmul.mubr.bf16.gmra.mrb[64].mxu0 %v2720_v21  ;;  %2538 = vmatmul.mubr.msk.bf16.gmra.mrb[64].mxu1 %vm937_vm0, %v2721_v22 }
  0xc7   : > { %1202 = vmatprep.mubr.bf16.mxu0 %v2722_v23  ;;  %2541 = vmatprep.mubr.msk.bf16.mxu1 %vm937_vm0, %v2724_v24 }
  0xce   : > { %1203 = vmatmul.mubr.bf16.gmra.mrb[68].mxu0 %v2725_v25  ;;  %2542 = vmatmul.mubr.msk.bf16.gmra.mrb[68].mxu1 %vm937_vm0, %v2726_v26 }
  0xcf   : > { %1210 = vmatprep.mubr.bf16.mxu0 %v2727_v27  ;;  %2545 = vmatprep.mubr.msk.bf16.mxu1 %vm937_vm0, %v2729_v28 }
  0xd6   : > { %1211 = vmatmul.mubr.bf16.gmra.mrb[72].mxu0 %v2730_v29  ;;  %2546 = vmatmul.mubr.msk.bf16.gmra.mrb[72].mxu1 %vm937_vm0, %v2731_v30 }
  0xd7   : > { %1218 = vmatprep.mubr.bf16.mxu0 %v2732_v31  ;;  %2549 = vmatprep.mubr.msk.bf16.mxu1 %vm937_vm0, %v2734_v32 }
  0xde   : > { %1219 = vmatmul.mubr.bf16.gmra.mrb[76].mxu0 %v2735_v33  ;;  %2550 = vmatmul.mubr.msk.bf16.gmra.mrb[76].mxu1 %vm937_vm0, %v2736_v34 }
  0xdf   : > { %1226 = vmatprep.mubr.bf16.mxu0 %v2737_v35  ;;  %2553 = vmatprep.mubr.msk.bf16.mxu1 %vm937_vm0, %v2739_v36 }
  0xe6   : > { %1227 = vmatmul.mubr.bf16.gmra.mrb[80].mxu0 %v2740_v37  ;;  %2554 = vmatmul.mubr.msk.bf16.gmra.mrb[80].mxu1 %vm937_vm0, %v2741_v38 }
  0xe7   : > { %1234 = vmatprep.mubr.bf16.mxu0 %v2742_v39  ;;  %2557 = vmatprep.mubr.msk.bf16.mxu1 %vm937_vm0, %v2744_v40 }
  0xee   : > { %1235 = vmatmul.mubr.bf16.gmra.mrb[84].mxu0 %v2745_v41  ;;  %2558 = vmatmul.mubr.msk.bf16.gmra.mrb[84].mxu1 %vm937_vm0, %v2746_v42 }
  0xef   : > { %1242 = vmatprep.mubr.bf16.mxu0 %v2747_v43  ;;  %2561 = vmatprep.mubr.msk.bf16.mxu1 %vm937_vm0, %v2749_v44 }
  0xf6   : > { %1243 = vmatmul.mubr.bf16.gmra.mrb[88].mxu0 %v2750_v45  ;;  %2562 = vmatmul.mubr.msk.bf16.gmra.mrb[88].mxu1 %vm937_vm0, %v2751_v46 }
  0xf7   : > { %1250 = vmatprep.mubr.bf16.mxu0 %v2752_v47  ;;  %2565 = vmatprep.mubr.msk.bf16.mxu1 %vm937_vm0, %v2754_v48 }
  0xfe   : > { %1251 = vmatmul.mubr.bf16.gmra.mrb[92].mxu0 %v2755_v49  ;;  %2566 = vmatmul.mubr.msk.bf16.gmra.mrb[92].mxu1 %vm937_vm0, %v2756_v50 }
 0x119   : > { %v3017_v51 = vpop.f32.mrb[0].mxu0  ;;  %v3019_v52 = vpop.f32.mrb[0].mxu1 }
 0x11a   : > { %v1070_v53 = vpop.f32.mrb[1].mxu0  ;;  %v1262_v54 = vpop.f32.mrb[1].mxu1 }
 0x11b   : > { %v3021_v55 = vpop.f32.mrb[2].mxu0  ;;  %v3023_v56 = vpop.f32.mrb[2].mxu1  ;;  %v3080_v53 = vld [vmem:[%s3401_s2] ss:$0 sm:$0xff] }
 0x11c   : > { %v1073_v57 = vpop.f32.mrb[3].mxu0  ;;  %v1265_v58 = vpop.f32.mrb[3].mxu1 }
 0x11d   : > { %v1069_v57 = vadd.f32 %v3080_v53, %v3017_v51 }
 0x121   : > { %v1076_v59 = vpop.f32.mrb[4].mxu0  ;;  %v3025_v60 = vpop.f32.mrb[4].mxu1 }
 0x122   : > { %v1078_v61 = vpop.f32.mrb[5].mxu0  ;;  %v1270_v62 = vpop.f32.mrb[5].mxu1  ;;  %v1077_v54 = vadd.f32 %v3080_v53, %v1076_v59 }
 0x123   : > { %v1079_v63 = vpop.f32.mrb[6].mxu0  ;;  %v3027_v0 = vpop.f32.mrb[6].mxu1 }
 0x124   : > { %v1081_v1 = vpop.f32.mrb[7].mxu0  ;;  %v1273_v2 = vpop.f32.mrb[7].mxu1  ;;  %v1080_v62 = vadd.f32 %v3080_v53, %v1079_v63 }
 0x129   : > { %v3029_v3 = vpop.f32.mrb[8].mxu0  ;;  %v3031_v4 = vpop.f32.mrb[8].mxu1 }
 0x12a   : > { %v1086_v5 = vpop.f32.mrb[9].mxu0  ;;  %v1278_v6 = vpop.f32.mrb[9].mxu1 }
 0x12b   : > { %v3033_v7 = vpop.f32.mrb[10].mxu0  ;;  %v3035_v8 = vpop.f32.mrb[10].mxu1  ;;  %v1072_v6 = vadd.f32 %v3080_v53, %v3021_v55 }
 0x12c   : > { %v1089_v9 = vpop.f32.mrb[11].mxu0  ;;  %v1281_v10 = vpop.f32.mrb[11].mxu1 }
 0x131   : > { %v3037_v11 = vpop.f32.mrb[12].mxu0  ;;  %v3039_v12 = vpop.f32.mrb[12].mxu1 }
 0x132   : > { %v1094_v13 = vpop.f32.mrb[13].mxu0  ;;  %v1286_v14 = vpop.f32.mrb[13].mxu1 }
 0x133   : > { %v3041_v15 = vpop.f32.mrb[14].mxu0  ;;  %v3043_v16 = vpop.f32.mrb[14].mxu1 }
 0x134   : > { %v1097_v17 = vpop.f32.mrb[15].mxu0  ;;  %v1289_v18 = vpop.f32.mrb[15].mxu1 }
 0x139   : > { %v3045_v19 = vpop.f32.mrb[16].mxu0  ;;  %v3047_v20 = vpop.f32.mrb[16].mxu1 }
 0x13a   : > { %v1102_v21 = vpop.f32.mrb[17].mxu0  ;;  %v1294_v22 = vpop.f32.mrb[17].mxu1 }
 0x13b   : > { %v3049_v23 = vpop.f32.mrb[18].mxu0  ;;  %v3051_v24 = vpop.f32.mrb[18].mxu1 }
 0x13c   : > { %v1105_v25 = vpop.f32.mrb[19].mxu0  ;;  %v1297_v26 = vpop.f32.mrb[19].mxu1 }
 0x141   : > { %v3053_v27 = vpop.f32.mrb[20].mxu0  ;;  %v3055_v28 = vpop.f32.mrb[20].mxu1 }
 0x142   : > { %v1110_v29 = vpop.f32.mrb[21].mxu0  ;;  %v1302_v30 = vpop.f32.mrb[21].mxu1 }
 0x143   : > { %v3057_v31 = vpop.f32.mrb[22].mxu0  ;;  %v3059_v32 = vpop.f32.mrb[22].mxu1  ;;  %v1093_v29 = vadd.f32 %v3080_v53, %v3037_v11 }
 0x144   : > { %v1113_v33 = vpop.f32.mrb[23].mxu0  ;;  %v1305_v34 = vpop.f32.mrb[23].mxu1 }
 0x145   : > { %v1085_v34 = vadd.f32 %v3080_v53, %v3029_v3  ;;  %v1088_v3 = vadd.f32 %v3080_v53, %v3033_v7 }
 0x149   : > { %v3061_v35 = vpop.f32.mrb[24].mxu0  ;;  %v3063_v36 = vpop.f32.mrb[24].mxu1 }
 0x14a   : > { %v1118_v37 = vpop.f32.mrb[25].mxu0  ;;  %v1310_v38 = vpop.f32.mrb[25].mxu1 }
 0x14b   : > { %v3065_v39 = vpop.f32.mrb[26].mxu0  ;;  %v3067_v40 = vpop.f32.mrb[26].mxu1 }
 0x14c   : > { %v1121_v41 = vpop.f32.mrb[27].mxu0  ;;  %v1313_v42 = vpop.f32.mrb[27].mxu1 }
 0x151   : > { %v3069_v43 = vpop.f32.mrb[28].mxu0  ;;  %v3071_v44 = vpop.f32.mrb[28].mxu1 }
 0x152   : > { %v1126_v45 = vpop.f32.mrb[29].mxu0  ;;  %v1318_v46 = vpop.f32.mrb[29].mxu1 }
 0x153   : > { %v3073_v47 = vpop.f32.mrb[30].mxu0  ;;  %v3075_v48 = vpop.f32.mrb[30].mxu1  ;;  %v1096_v45 = vadd.f32 %v3080_v53, %v3041_v15 }
 0x154   : > { %v1129_v49 = vpop.f32.mrb[31].mxu0  ;;  %v1321_v50 = vpop.f32.mrb[31].mxu1 }
 0x159   : > { %v3085_v58 = vpop.f32.mrb[32].mxu0  ;;  %v2507_v61 = vpop.f32.mrb[32].mxu1 }
 0x15a   : > { %v1366_v1 = vadd.f32 %v2507_v61, %v1077_v54  ;;  %v1134_v2 = vpop.f32.mrb[33].mxu0  ;;  %v1357_v5 = vpop.f32.mrb[33].mxu1 }
 0x15b   : > { %v1358_v9 = vadd.f32 %v1357_v5, %v1069_v57  ;;  %v3091_v10 = vpop.f32.mrb[34].mxu0  ;;  %v2508_v13 = vpop.f32.mrb[34].mxu1 }
 0x15c   : > { %vm1614_vm1 = vcmp.ge.f32.partialorder %v1366_v1, 0.0  ;;  %v1678_v59 = vmul.f32 0.2, %v1366_v1  ;;  %v1369_v14 = vadd.f32 %v2508_v13, %v1080_v62  ;;  %v1137_v51 = vpop.f32.mrb[35].mxu0  ;;  %v1360_v17 = vpop.f32.mrb[35].mxu1 }
 0x15d   : > { %vm1612_vm2 = vcmp.ge.f32.partialorder %v1358_v9, 0.0  ;;  %v1676_v18 = vmul.f32 0.2, %v1358_v9  ;;  %v1361_v21 = vadd.f32 %v1360_v17, %v1072_v6  ;;  %v1109_v51 = vadd.f32 %v3080_v53, %v3053_v27 }
 0x15e   : > { %v1742_v55 = vsel %vm1614_vm1, %v1366_v1, %v1678_v59  ;;  %vm1615_vm4 = vcmp.ge.f32.partialorder %v1369_v14, 0.0  ;;  %v1679_v63 = vmul.f32 0.2, %v1369_v14 }
 0x15f   : > { %v2405_v22 = vpack.c.bf16 %v1742_v55, %v1742_v55  ;;  %v1740_v25 = vsel %vm1612_vm2, %v1358_v9, %v1676_v18  ;;  %vm1613_vm5 = vcmp.ge.f32.partialorder %v1361_v21, 0.0  ;;  %v1677_v26 = vmul.f32 0.2, %v1361_v21 }
 0x160   : > { %v2403_v30 = vpack.c.bf16 %v1740_v25, %v1740_v25  ;;  %v1743_v33 = vsel %vm1615_vm4, %v1369_v14, %v1679_v63 }
 0x161   : > { %2063 = vst.msk [vmem:[%s3096_s8 + $0x8] sm:$0xf] %vm2060_vm3, %v2405_v22  ;;  %v2406_v37 = vpack.c.bf16 %v1743_v33, %v1743_v33  ;;  %v1741_v38 = vsel %vm1613_vm5, %v1361_v21, %v1677_v26  ;;  %v3104_v41 = vpop.f32.mrb[36].mxu0  ;;  %v2511_v42 = vpop.f32.mrb[36].mxu1  ;;  %v1101_v21 = vadd.f32 %v3080_v53, %v3045_v19  ;;  %v1112_v26 = vadd.f32 %v3080_v53, %v3057_v31 }
 0x162   : > { %2061 = vst.msk [vmem:[%s3096_s8] sm:$0xf] %vm2060_vm3, %v2403_v30  ;;  %v2404_v11 = vpack.c.bf16 %v1741_v38, %v1741_v38  ;;  %v1382_v46 = vadd.f32 %v2511_v42, %v1093_v29  ;;  %v1142_v49 = vpop.f32.mrb[37].mxu0  ;;  %v1373_v50 = vpop.f32.mrb[37].mxu1  ;;  %v1104_v19 = vadd.f32 %v3080_v53, %v3049_v23 }
 0x163   : > { %2064 = vst.msk [vmem:[%s3096_s8 + $0xc] sm:$0xf] %vm2060_vm3, %v2406_v37  ;;  %v1374_v54 = vadd.f32 %v1373_v50, %v1085_v34  ;;  %v3114_v57 = vpop.f32.mrb[38].mxu0  ;;  %v2512_v61 = vpop.f32.mrb[38].mxu1 }
 0x164   : > { %2062 = vst.msk [vmem:[%s3096_s8 + $0x4] sm:$0xf] %vm2060_vm3, %v2404_v11  ;;  %vm1618_vm6 = vcmp.ge.f32.partialorder %v1382_v46, 0.0  ;;  %v1682_v62 = vmul.f32 0.2, %v1382_v46  ;;  %v1385_v15 = vadd.f32 %v2512_v61, %v1096_v45  ;;  %v1145_v1 = vpop.f32.mrb[39].mxu0 }
 0x165   : > { %v1376_v2 = vpop.f32.mrb[39].mxu1  ;;  %vm1616_vm7 = vcmp.ge.f32.partialorder %v1374_v54, 0.0  ;;  %v1680_v5 = vmul.f32 0.2, %v1374_v54 }
 0x166   : > { %v1377_v6 = vadd.f32 %v1376_v2, %v1088_v3  ;;  %v1746_v9 = vsel %vm1618_vm6, %v1382_v46, %v1682_v62  ;;  %vm1619_vm8 = vcmp.ge.f32.partialorder %v1385_v15, 0.0  ;;  %v1683_v7 = vmul.f32 0.2, %v1385_v15 }
 0x167   : > { %v2409_v13 = vpack.c.bf16 %v1746_v9, %v1746_v9  ;;  %v1744_v59 = vsel %vm1616_vm7, %v1374_v54, %v1680_v5  ;;  %v1125_v62 = vadd.f32 %v3080_v53, %v3069_v43  ;;  %v1117_v2 = vadd.f32 %v3080_v53, %v3061_v35 }
 0x168   : > { %vm1617_vm9 = vcmp.ge.f32.partialorder %v1377_v6, 0.0  ;;  %v1681_v14 = vmul.f32 0.2, %v1377_v6  ;;  %v2407_v17 = vpack.c.bf16 %v1744_v59, %v1744_v59  ;;  %v1747_v18 = vsel %vm1619_vm8, %v1385_v15, %v1683_v7 }
 0x169   : > { %2067 = vst.msk [vmem:[%s3096_s8 + $0x18] sm:$0xf] %vm2060_vm3, %v2409_v13  ;;  %v2410_v55 = vpack.c.bf16 %v1747_v18, %v1747_v18  ;;  %v3124_v22 = vpop.f32.mrb[40].mxu0  ;;  %v2515_v25 = vpop.f32.mrb[40].mxu1  ;;  %v1128_v13 = vadd.f32 %v3080_v53, %v3073_v47  ;;  %v1120_v35 = vadd.f32 %v3080_v53, %v3065_v39 }
 0x16a   : > { %v1745_v63 = vsel %vm1617_vm9, %v1377_v6, %v1681_v14  ;;  %2065 = vst.msk [vmem:[%s3096_s8 + $0x10] sm:$0xf] %vm2060_vm3, %v2407_v17  ;;  %v1398_v29 = vadd.f32 %v2515_v25, %v1109_v51  ;;  %v1150_v30 = vpop.f32.mrb[41].mxu0  ;;  %v1389_v33 = vpop.f32.mrb[41].mxu1 }
 0x16b   : > { %v2408_v27 = vpack.c.bf16 %v1745_v63, %v1745_v63  ;;  %2068 = vst.msk [vmem:[%s3096_s8 + $0x1c] sm:$0xf] %vm2060_vm3, %v2410_v55  ;;  %v1390_v34 = vadd.f32 %v1389_v33, %v1101_v21  ;;  %v3134_v37 = vpop.f32.mrb[42].mxu0  ;;  %v2516_v38 = vpop.f32.mrb[42].mxu1 }
 0x16c   : > { %vm1622_vm10 = vcmp.ge.f32.partialorder %v1398_v29, 0.0  ;;  %v1686_v42 = vmul.f32 0.2, %v1398_v29  ;;  %v1401_v31 = vadd.f32 %v2516_v38, %v1112_v26  ;;  %v1153_v45 = vpop.f32.mrb[43].mxu0  ;;  %v1392_v11 = vpop.f32.mrb[43].mxu1 }
 0x16d   : > { %2066 = vst.msk [vmem:[%s3096_s8 + $0x14] sm:$0xf] %vm2060_vm3, %v2408_v27  ;;  %vm1620_vm11 = vcmp.ge.f32.partialorder %v1390_v34, 0.0  ;;  %v1684_v46 = vmul.f32 0.2, %v1390_v34  ;;  %v1393_v49 = vadd.f32 %v1392_v11, %v1104_v19 }
 0x16e   : > { %v1750_v50 = vsel %vm1622_vm10, %v1398_v29, %v1686_v42  ;;  %vm1623_vm12 = vcmp.ge.f32.partialorder %v1401_v31, 0.0  ;;  %v1687_v23 = vmul.f32 0.2, %v1401_v31 }
 0x16f   : > { %v2413_v3 = vpack.c.bf16 %v1750_v50, %v1750_v50  ;;  %v1748_v54 = vsel %vm1620_vm11, %v1390_v34, %v1684_v46  ;;  %vm1621_vm13 = vcmp.ge.f32.partialorder %v1393_v49, 0.0  ;;  %v1685_v61 = vmul.f32 0.2, %v1393_v49 }
 0x170   : > { %v2411_v15 = vpack.c.bf16 %v1748_v54, %v1748_v54  ;;  %v1751_v1 = vsel %vm1623_vm12, %v1401_v31, %v1687_v23  ;;  %v1141_v34 = vadd.f32 %v3080_v53, %v3104_v41  ;;  %v1133_v31 = vadd.f32 %v3080_v53, %v3085_v58 }
 0x171   : > { %2071 = vst.msk [vmem:[%s3096_s8 + $0x28] sm:$0xf] %vm2060_vm3, %v2413_v3  ;;  %v2414_v5 = vpack.c.bf16 %v1751_v1, %v1751_v1  ;;  %v1749_v6 = vsel %vm1621_vm13, %v1393_v49, %v1685_v61  ;;  %v3144_v9 = vpop.f32.mrb[44].mxu0  ;;  %v2519_v7 = vpop.f32.mrb[44].mxu1  ;;  %v1144_v50 = vadd.f32 %v3080_v53, %v3114_v57  ;;  %v1136_v58 = vadd.f32 %v3080_v53, %v3091_v10 }
 0x172   : > { %2069 = vst.msk [vmem:[%s3096_s8 + $0x20] sm:$0xf] %vm2060_vm3, %v2411_v15  ;;  %v2412_v43 = vpack.c.bf16 %v1749_v6, %v1749_v6  ;;  %v1414_v59 = vadd.f32 %v2519_v7, %v1125_v62  ;;  %v1158_v14 = vpop.f32.mrb[45].mxu0  ;;  %v1405_v51 = vpop.f32.mrb[45].mxu1 }
 0x173   : > { %2072 = vst.msk [vmem:[%s3096_s8 + $0x2c] sm:$0xf] %vm2060_vm3, %v2414_v5  ;;  %v1406_v17 = vadd.f32 %v1405_v51, %v1117_v2  ;;  %v3154_v18 = vpop.f32.mrb[46].mxu0  ;;  %v2520_v21 = vpop.f32.mrb[46].mxu1  ;;  %v1157_v51 = vadd.f32 %v3080_v53, %v3144_v9 }
 0x174   : > { %2070 = vst.msk [vmem:[%s3096_s8 + $0x24] sm:$0xf] %vm2060_vm3, %v2412_v43  ;;  %vm1626_vm14 = vcmp.ge.f32.partialorder %v1414_v59, 0.0  ;;  %v1690_v55 = vmul.f32 0.2, %v1414_v59  ;;  %v1417_v47 = vadd.f32 %v2520_v21, %v1128_v13  ;;  %v1161_v63 = vpop.f32.mrb[47].mxu0  ;;  %v1149_v21 = vadd.f32 %v3080_v53, %v3124_v22 }
 0x175   : > { %v1408_v25 = vpop.f32.mrb[47].mxu1  ;;  %vm1624_vm15 = vcmp.ge.f32.partialorder %v1406_v17, 0.0  ;;  %v1688_v26 = vmul.f32 0.2, %v1406_v17 }
 0x176   : > { %v1409_v27 = vadd.f32 %v1408_v25, %v1120_v35  ;;  %v1754_v29 = vsel %vm1626_vm14, %v1414_v59, %v1690_v55  ;;  %vm1627_vm0 = vcmp.ge.f32.partialorder %v1417_v47, 0.0  ;;  %v1691_v39 = vmul.f32 0.2, %v1417_v47 }
 0x177   : > { %v2417_v30 = vpack.c.bf16 %v1754_v29, %v1754_v29  ;;  %v1752_v33 = vsel %vm1624_vm15, %v1406_v17, %v1688_v26  ;;  %v1160_v26 = vadd.f32 %v3080_v53, %v3154_v18 }
 0x178   : > { %vm1625_vm1 = vcmp.ge.f32.partialorder %v1409_v27, 0.0  ;;  %v1689_v19 = vmul.f32 0.2, %v1409_v27  ;;  %v2415_v38 = vpack.c.bf16 %v1752_v33, %v1752_v33  ;;  %v1755_v42 = vsel %vm1627_vm0, %v1417_v47, %v1691_v39 }
 0x179   : > { %2075 = vst.msk [vmem:[%s3096_s8 + $0x38] sm:$0xf] %vm2060_vm3, %v2417_v30  ;;  %v2418_v45 = vpack.c.bf16 %v1755_v42, %v1755_v42  ;;  %v3164_v46 = vpop.f32.mrb[48].mxu0  ;;  %v2523_v49 = vpop.f32.mrb[48].mxu1  ;;  %v1152_v30 = vadd.f32 %v3080_v53, %v3134_v37 }
 0x17a   : > { %v1753_v11 = vsel %vm1625_vm1, %v1409_v27, %v1689_v19  ;;  %2073 = vst.msk [vmem:[%s3096_s8 + $0x30] sm:$0xf] %vm2060_vm3, %v2415_v38  ;;  %v1430_v23 = vadd.f32 %v2523_v49, %v1141_v34  ;;  %v1166_v3 = vpop.f32.mrb[49].mxu0  ;;  %v1421_v54 = vpop.f32.mrb[49].mxu1 }
 0x17b   : > { %v2416_v41 = vpack.c.bf16 %v1753_v11, %v1753_v11  ;;  %2076 = vst.msk [vmem:[%s3096_s8 + $0x3c] sm:$0xf] %vm2060_vm3, %v2418_v45  ;;  %v1422_v61 = vadd.f32 %v1421_v54, %v1133_v31  ;;  %v3174_v62 = vpop.f32.mrb[50].mxu0  ;;  %v2524_v15 = vpop.f32.mrb[50].mxu1 }
 0x17c   : > { %vm1630_vm2 = vcmp.ge.f32.partialorder %v1430_v23, 0.0  ;;  %v1694_v1 = vmul.f32 0.2, %v1430_v23  ;;  %v1433_v57 = vadd.f32 %v2524_v15, %v1144_v50  ;;  %v1169_v2 = vpop.f32.mrb[51].mxu0  ;;  %v1424_v5 = vpop.f32.mrb[51].mxu1 }
 0x17d   : > { %2074 = vst.msk [vmem:[%s3096_s8 + $0x34] sm:$0xf] %vm2060_vm3, %v2416_v41  ;;  %vm1628_vm4 = vcmp.ge.f32.partialorder %v1422_v61, 0.0  ;;  %v1692_v6 = vmul.f32 0.2, %v1422_v61  ;;  %v1425_v7 = vadd.f32 %v1424_v5, %v1136_v58  ;;  %v1165_v58 = vadd.f32 %v3080_v53, %v3164_v46 }
 0x17e   : > { %v1758_v13 = vsel %vm1630_vm2, %v1430_v23, %v1694_v1  ;;  %vm1631_vm5 = vcmp.ge.f32.partialorder %v1433_v57, 0.0  ;;  %v1695_v10 = vmul.f32 0.2, %v1433_v57 }
 0x17f   : > { %v2421_v43 = vpack.c.bf16 %v1758_v13, %v1758_v13  ;;  %v1756_v59 = vsel %vm1628_vm4, %v1422_v61, %v1692_v6  ;;  %vm1629_vm6 = vcmp.ge.f32.partialorder %v1425_v7, 0.0  ;;  %v1693_v14 = vmul.f32 0.2, %v1425_v7 }
 0x180   : > { %v2419_v35 = vpack.c.bf16 %v1756_v59, %v1756_v59  ;;  %v1759_v17 = vsel %vm1631_vm5, %v1433_v57, %v1695_v10  ;;  %v1168_v10 = vadd.f32 %v3080_v53, %v3174_v62 }
 0x181   : > { %2079 = vst.msk [vmem:[%s3096_s8 + $0x48] sm:$0xf] %vm2060_vm3, %v2421_v43  ;;  %v2422_v55 = vpack.c.bf16 %v1759_v17, %v1759_v17  ;;  %v1757_v47 = vsel %vm1629_vm6, %v1425_v7, %v1693_v14  ;;  %v1172_v63 = vpop.f32.mrb[52].mxu0  ;;  %v2527_v25 = vpop.f32.mrb[52].mxu1 }
 0x182   : > { %2077 = vst.msk [vmem:[%s3096_s8 + $0x40] sm:$0xf] %vm2060_vm3, %v2419_v35  ;;  %v2420_v27 = vpack.c.bf16 %v1757_v47, %v1757_v47  ;;  %v1446_v9 = vadd.f32 %v2527_v25, %v1157_v51  ;;  %v1174_v29 = vpop.f32.mrb[53].mxu0  ;;  %v1437_v39 = vpop.f32.mrb[53].mxu1  ;;  %v1173_v23 = vadd.f32 %v3080_v53, %v1172_v63 }
 0x183   : > { %2080 = vst.msk [vmem:[%s3096_s8 + $0x4c] sm:$0xf] %vm2060_vm3, %v2422_v55  ;;  %v1438_v22 = vadd.f32 %v1437_v39, %v1149_v21  ;;  %v1175_v33 = vpop.f32.mrb[54].mxu0  ;;  %v2528_v19 = vpop.f32.mrb[54].mxu1 }
 0x184   : > { %2078 = vst.msk [vmem:[%s3096_s8 + $0x44] sm:$0xf] %vm2060_vm3, %v2420_v27  ;;  %vm1634_vm7 = vcmp.ge.f32.partialorder %v1446_v9, 0.0  ;;  %v1698_v34 = vmul.f32 0.2, %v1446_v9  ;;  %v1449_v38 = vadd.f32 %v2528_v19, %v1160_v26  ;;  %v1177_v18 = vpop.f32.mrb[55].mxu0  ;;  %v1176_v2 = vadd.f32 %v3080_v53, %v1175_v33 }
 0x185   : > { %v1440_v42 = vpop.f32.mrb[55].mxu1  ;;  %vm1632_vm8 = vcmp.ge.f32.partialorder %v1438_v22, 0.0  ;;  %v1696_v31 = vmul.f32 0.2, %v1438_v22 }
 0x186   : > { %v1441_v45 = vadd.f32 %v1440_v42, %v1152_v30  ;;  %v1762_v11 = vsel %vm1634_vm7, %v1446_v9, %v1698_v34  ;;  %vm1635_vm9 = vcmp.ge.f32.partialorder %v1449_v38, 0.0  ;;  %v1699_v37 = vmul.f32 0.2, %v1449_v38 }
 0x187   : > { %v2425_v49 = vpack.c.bf16 %v1762_v11, %v1762_v11  ;;  %v1760_v50 = vsel %vm1632_vm8, %v1438_v22, %v1696_v31 }
 0x188   : > { %vm1633_vm10 = vcmp.ge.f32.partialorder %v1441_v45, 0.0  ;;  %v1697_v41 = vmul.f32 0.2, %v1441_v45  ;;  %v2423_v3 = vpack.c.bf16 %v1760_v50, %v1760_v50  ;;  %v1763_v54 = vsel %vm1635_vm9, %v1449_v38, %v1699_v37 }
 0x189   : > { %2083 = vst.msk [vmem:[%s3096_s8 + $0x58] sm:$0xf] %vm2060_vm3, %v2425_v49  ;;  %v2426_v61 = vpack.c.bf16 %v1763_v54, %v1763_v54  ;;  %v1180_v1 = vpop.f32.mrb[56].mxu0  ;;  %v2531_v57 = vpop.f32.mrb[56].mxu1 }
 0x18a   : > { %v1761_v15 = vsel %vm1633_vm10, %v1441_v45, %v1697_v41  ;;  %2081 = vst.msk [vmem:[%s3096_s8 + $0x50] sm:$0xf] %vm2060_vm3, %v2423_v3  ;;  %v1462_v6 = vadd.f32 %v2531_v57, %v1173_v23  ;;  %v1182_v7 = vpop.f32.mrb[57].mxu0  ;;  %v1453_v13 = vpop.f32.mrb[57].mxu1  ;;  %v1181_v29 = vadd.f32 %v3080_v53, %v1180_v1 }
 0x18b   : > { %v2424_v5 = vpack.c.bf16 %v1761_v15, %v1761_v15  ;;  %2084 = vst.msk [vmem:[%s3096_s8 + $0x5c] sm:$0xf] %vm2060_vm3, %v2426_v61  ;;  %v1454_v46 = vadd.f32 %v1453_v13, %v1165_v58  ;;  %v1183_v43 = vpop.f32.mrb[58].mxu0  ;;  %v2532_v59 = vpop.f32.mrb[58].mxu1 }
 0x18c   : > { %vm1638_vm11 = vcmp.ge.f32.partialorder %v1462_v6, 0.0  ;;  %v1702_v14 = vmul.f32 0.2, %v1462_v6  ;;  %v1465_v51 = vadd.f32 %v2532_v59, %v1176_v2  ;;  %v1185_v35 = vpop.f32.mrb[59].mxu0  ;;  %v1456_v17 = vpop.f32.mrb[59].mxu1  ;;  %v1184_v42 = vadd.f32 %v3080_v53, %v1183_v43 }
 0x18d   : > { %2082 = vst.msk [vmem:[%s3096_s8 + $0x54] sm:$0xf] %vm2060_vm3, %v2424_v5  ;;  %vm1636_vm12 = vcmp.ge.f32.partialorder %v1454_v46, 0.0  ;;  %v1700_v21 = vmul.f32 0.2, %v1454_v46  ;;  %v1457_v55 = vadd.f32 %v1456_v17, %v1168_v10 }
 0x18e   : > { %v1766_v47 = vsel %vm1638_vm11, %v1462_v6, %v1702_v14  ;;  %vm1639_vm13 = vcmp.ge.f32.partialorder %v1465_v51, 0.0  ;;  %v1703_v62 = vmul.f32 0.2, %v1465_v51 }
 0x18f   : > { %v2429_v63 = vpack.c.bf16 %v1766_v47, %v1766_v47  ;;  %v1764_v25 = vsel %vm1636_vm12, %v1454_v46, %v1700_v21  ;;  %vm1637_vm14 = vcmp.ge.f32.partialorder %v1457_v55, 0.0  ;;  %v1701_v26 = vmul.f32 0.2, %v1457_v55 }
 0x190   : > { %v2427_v27 = vpack.c.bf16 %v1764_v25, %v1764_v25  ;;  %v1767_v9 = vsel %vm1639_vm13, %v1465_v51, %v1703_v62 }
 0x191   : > { %2087 = vst.msk [vmem:[%s3096_s8 + $0x68] sm:$0xf] %vm2060_vm3, %v2429_v63  ;;  %v2430_v39 = vpack.c.bf16 %v1767_v9, %v1767_v9  ;;  %v1765_v30 = vsel %vm1637_vm14, %v1457_v55, %v1701_v26  ;;  %v1188_v22 = vpop.f32.mrb[60].mxu0  ;;  %v2535_v33 = vpop.f32.mrb[60].mxu1 }
 0x192   : > { %2085 = vst.msk [vmem:[%s3096_s8 + $0x60] sm:$0xf] %vm2060_vm3, %v2427_v27  ;;  %v2428_v19 = vpack.c.bf16 %v1765_v30, %v1765_v30  ;;  %v1189_v34 = vadd.f32 %v3080_v53, %v1188_v22  ;;  %v1190_v38 = vpop.f32.mrb[61].mxu0  ;;  %v1469_v18 = vpop.f32.mrb[61].mxu1 }
 0x193   : > { %2088 = vst.msk [vmem:[%s3096_s8 + $0x6c] sm:$0xf] %vm2060_vm3, %v2430_v39  ;;  %v1470_v31 = vadd.f32 %v1469_v18, %v1181_v29  ;;  %v1191_v45 = vpop.f32.mrb[62].mxu0  ;;  %v2536_v11 = vpop.f32.mrb[62].mxu1 }
 0x194   : > { %2086 = vst.msk [vmem:[%s3096_s8 + $0x64] sm:$0xf] %vm2060_vm3, %v2428_v19  ;;  %v1478_v37 = vadd.f32 %v2535_v33, %v1189_v34  ;;  %v1192_v49 = vadd.f32 %v3080_v53, %v1191_v45  ;;  %v1193_v50 = vpop.f32.mrb[63].mxu0  ;;  %v1472_v41 = vpop.f32.mrb[63].mxu1 }
 0x195   : > { %vm1640_vm15 = vcmp.ge.f32.partialorder %v1470_v31, 0.0  ;;  %v1704_v23 = vmul.f32 0.2, %v1470_v31  ;;  %v1473_v3 = vadd.f32 %v1472_v41, %v1184_v42 }
 0x196   : > { %vm1642_vm0 = vcmp.ge.f32.partialorder %v1478_v37, 0.0  ;;  %v1706_v54 = vmul.f32 0.2, %v1478_v37  ;;  %v1481_v58 = vadd.f32 %v2536_v11, %v1192_v49 }
 0x197   : > { %v1768_v61 = vsel %vm1640_vm15, %v1470_v31, %v1704_v23  ;;  %vm1641_vm1 = vcmp.ge.f32.partialorder %v1473_v3, 0.0  ;;  %v1705_v15 = vmul.f32 0.2, %v1473_v3 }
 0x198   : > { %v1770_v1 = vsel %vm1642_vm0, %v1478_v37, %v1706_v54  ;;  %v2431_v57 = vpack.c.bf16 %v1768_v61, %v1768_v61  ;;  %vm1643_vm2 = vcmp.ge.f32.partialorder %v1481_v58, 0.0  ;;  %v1707_v2 = vmul.f32 0.2, %v1481_v58 }
 0x199   : > { %v2433_v5 = vpack.c.bf16 %v1770_v1, %v1770_v1  ;;  %v1769_v6 = vsel %vm1641_vm1, %v1473_v3, %v1705_v15  ;;  %v1196_v7 = vpop.f32.mrb[64].mxu0  ;;  %v2539_v13 = vpop.f32.mrb[64].mxu1 }
 0x19a   : > { %2089 = vst.msk [vmem:[%s3096_s8 + $0x70] sm:$0xf] %vm2060_vm3, %v2431_v57  ;;  %v1771_v10 = vsel %vm1643_vm2, %v1481_v58, %v1707_v2  ;;  %v2432_v46 = vpack.c.bf16 %v1769_v6, %v1769_v6  ;;  %v1197_v43 = vadd.f32 %v3080_v53, %v1196_v7  ;;  %v1198_v59 = vpop.f32.mrb[65].mxu0  ;;  %v1485_v14 = vpop.f32.mrb[65].mxu1 }
 0x19b   : > { %2091 = vst.msk [vmem:[%s3096_s8 + $0x78] sm:$0xf] %vm2060_vm3, %v2433_v5  ;;  %v2434_v51 = vpack.c.bf16 %v1771_v10, %v1771_v10  ;;  %v1199_v35 = vpop.f32.mrb[66].mxu0  ;;  %v2540_v17 = vpop.f32.mrb[66].mxu1 }
 0x19c   : > { %2090 = vst.msk [vmem:[%s3096_s8 + $0x74] sm:$0xf] %vm2060_vm3, %v2432_v46  ;;  %v1486_v21 = vadd.f32 %v1485_v14, %v1197_v43  ;;  %v1200_v55 = vadd.f32 %v3080_v53, %v1199_v35  ;;  %v1201_v47 = vpop.f32.mrb[67].mxu0  ;;  %v1488_v62 = vpop.f32.mrb[67].mxu1 }
 0x19d   : > { %2092 = vst.msk [vmem:[%s3096_s8 + $0x7c] sm:$0xf] %vm2060_vm3, %v2434_v51 }
 0x19e   : > { %vm1644_vm4 = vcmp.ge.f32.partialorder %v1486_v21, 0.0  ;;  %v1708_v63 = vmul.f32 0.2, %v1486_v21  ;;  %v1489_v25 = vadd.f32 %v1488_v62, %v1200_v55 }
 0x1a0   : > { %v1772_v26 = vsel %vm1644_vm4, %v1486_v21, %v1708_v63  ;;  %vm1645_vm5 = vcmp.ge.f32.partialorder %v1489_v25, 0.0  ;;  %v1709_v27 = vmul.f32 0.2, %v1489_v25 }
 0x1a1   : > { %v2435_v9 = vpack.c.bf16 %v1772_v26, %v1772_v26  ;;  %v1204_v29 = vpop.f32.mrb[68].mxu0  ;;  %v2543_v39 = vpop.f32.mrb[68].mxu1 }
 0x1a2   : > { %v1773_v30 = vsel %vm1645_vm5, %v1489_v25, %v1709_v27  ;;  %v1205_v22 = vadd.f32 %v3080_v53, %v1204_v29  ;;  %v1206_v33 = vpop.f32.mrb[69].mxu0  ;;  %v1501_v19 = vpop.f32.mrb[69].mxu1 }
 0x1a3   : > { %2093 = vst.msk [vmem:[%s3096_s8 + $0x80] sm:$0xf] %vm2060_vm3, %v2435_v9  ;;  %v2436_v34 = vpack.c.bf16 %v1773_v30, %v1773_v30  ;;  %v1207_v38 = vpop.f32.mrb[70].mxu0  ;;  %v2544_v18 = vpop.f32.mrb[70].mxu1  ;;  %v1264_v33 = vadd.f32 %v3080_v53, %v3023_v56  ;;  %v1285_v56 = vadd.f32 %v3080_v53, %v3039_v12  ;;  %v3296_v12 = vadd.f32 %v3080_v53, %v3055_v28 }
 0x1a4   : > { %v1494_v42 = vadd.f32 %v2539_v13, %v1205_v22  ;;  %v1208_v31 = vadd.f32 %v3080_v53, %v1207_v38  ;;  %v1209_v45 = vpop.f32.mrb[71].mxu0  ;;  %v1504_v11 = vpop.f32.mrb[71].mxu1  ;;  %v1261_v22 = vadd.f32 %v3080_v53, %v3019_v52  ;;  %v1269_v38 = vadd.f32 %v3080_v53, %v3025_v60 }
 0x1a5   : > { %2094 = vst.msk [vmem:[%s3096_s8 + $0x84] sm:$0xf] %vm2060_vm3, %v2436_v34  ;;  %v3278_v52 = vadd.f32 %v3080_v53, %v3035_v8  ;;  %v3284_v60 = vadd.f32 %v3080_v53, %v3043_v16 }
 0x1a6   : > { %vm1646_vm6 = vcmp.ge.f32.partialorder %v1494_v42, 0.0  ;;  %v1710_v37 = vmul.f32 0.2, %v1494_v42  ;;  %v1497_v49 = vadd.f32 %v2540_v17, %v1208_v31 }
 0x1a8   : > { %v1774_v50 = vsel %vm1646_vm6, %v1494_v42, %v1710_v37  ;;  %vm1647_vm7 = vcmp.ge.f32.partialorder %v1497_v49, 0.0  ;;  %v1711_v41 = vmul.f32 0.2, %v1497_v49  ;;  %v3274_v42 = vadd.f32 %v3080_v53, %v3031_v4 }
 0x1a9   : > { %v2437_v23 = vpack.c.bf16 %v1774_v50, %v1774_v50  ;;  %v1212_v3 = vpop.f32.mrb[72].mxu0  ;;  %v3236_v54 = vpop.f32.mrb[72].mxu1  ;;  %v3292_v4 = vadd.f32 %v3080_v53, %v3051_v24  ;;  %v3305_v24 = vadd.f32 %v3080_v53, %v3063_v36 }
 0x1aa   : > { %v1775_v58 = vsel %vm1647_vm7, %v1497_v49, %v1711_v41  ;;  %v1213_v61 = vadd.f32 %v3080_v53, %v1212_v3  ;;  %v1214_v15 = vpop.f32.mrb[73].mxu0  ;;  %v3239_v1 = vpop.f32.mrb[73].mxu1 }
 0x1ab   : > { %2095 = vst.msk [vmem:[%s3096_s8 + $0x88] sm:$0xf] %vm2060_vm3, %v2437_v23  ;;  %v2438_v57 = vpack.c.bf16 %v1775_v58, %v1775_v58  ;;  %v1215_v2 = vpop.f32.mrb[74].mxu0  ;;  %v3243_v5 = vpop.f32.mrb[74].mxu1 }
 0x1ac   : > { %v1502_v6 = vadd.f32 %v1501_v19, %v1213_v61  ;;  %v1216_v7 = vadd.f32 %v3080_v53, %v1215_v2  ;;  %v1217_v13 = vpop.f32.mrb[75].mxu0  ;;  %v3246_v10 = vpop.f32.mrb[75].mxu1 }
 0x1ad   : > { %2096 = vst.msk [vmem:[%s3096_s8 + $0x8c] sm:$0xf] %vm2060_vm3, %v2438_v57 }
 0x1ae   : > { %vm1648_vm8 = vcmp.ge.f32.partialorder %v1502_v6, 0.0  ;;  %v1712_v46 = vmul.f32 0.2, %v1502_v6  ;;  %v1505_v43 = vadd.f32 %v1504_v11, %v1216_v7 }
 0x1b0   : > { %v1776_v59 = vsel %vm1648_vm8, %v1502_v6, %v1712_v46  ;;  %vm1649_vm9 = vcmp.ge.f32.partialorder %v1505_v43, 0.0  ;;  %v1713_v14 = vmul.f32 0.2, %v1505_v43 }
 0x1b1   : > { %v2439_v51 = vpack.c.bf16 %v1776_v59, %v1776_v59  ;;  %v1220_v35 = vpop.f32.mrb[76].mxu0  ;;  %v3250_v17 = vpop.f32.mrb[76].mxu1 }
 0x1b2   : > { %v1777_v21 = vsel %vm1649_vm9, %v1505_v43, %v1713_v14  ;;  %v1221_v55 = vadd.f32 %v3080_v53, %v1220_v35  ;;  %v1222_v47 = vpop.f32.mrb[77].mxu0  ;;  %v3253_v62 = vpop.f32.mrb[77].mxu1 }
 0x1b3   : > { %2097 = vst.msk [vmem:[%s3096_s8 + $0x90] sm:$0xf] %vm2060_vm3, %v2439_v51  ;;  %v2440_v63 = vpack.c.bf16 %v1777_v21, %v1777_v21  ;;  %v1223_v25 = vpop.f32.mrb[78].mxu0  ;;  %v3257_v26 = vpop.f32.mrb[78].mxu1 }
 0x1b4   : > { %v1510_v27 = vadd.f32 %v2543_v39, %v1221_v55  ;;  %v1224_v9 = vadd.f32 %v3080_v53, %v1223_v25  ;;  %v1225_v29 = vpop.f32.mrb[79].mxu0  ;;  %v3260_v30 = vpop.f32.mrb[79].mxu1  ;;  %v1272_v39 = vadd.f32 %v3080_v53, %v3027_v0  ;;  %v3288_v0 = vadd.f32 %v3080_v53, %v3047_v20 }
 0x1b5   : > { %2098 = vst.msk [vmem:[%s3096_s8 + $0x94] sm:$0xf] %vm2060_vm3, %v2440_v63  ;;  %v3301_v20 = vadd.f32 %v3080_v53, %v3059_v32 }
 0x1b6   : > { %vm1650_vm10 = vcmp.ge.f32.partialorder %v1510_v27, 0.0  ;;  %v1714_v19 = vmul.f32 0.2, %v1510_v27  ;;  %v1513_v34 = vadd.f32 %v2544_v18, %v1224_v9 }
 0x1b8   : > { %v1778_v31 = vsel %vm1650_vm10, %v1510_v27, %v1714_v19  ;;  %vm1651_vm11 = vcmp.ge.f32.partialorder %v1513_v34, 0.0  ;;  %v1715_v18 = vmul.f32 0.2, %v1513_v34 }
 0x1b9   : > { %v2441_v8 = vpack.c.bf16 %v1778_v31, %v1778_v31  ;;  %v1228_v45 = vpop.f32.mrb[80].mxu0  ;;  %v2555_v11 = vpop.f32.mrb[80].mxu1 }
 0x1ba   : > { %v1779_v37 = vsel %vm1651_vm11, %v1513_v34, %v1715_v18  ;;  %v1229_v49 = vadd.f32 %v3080_v53, %v1228_v45  ;;  %v1558_v16 = vadd.f32 %v2555_v11, %v1269_v38  ;;  %v1230_v50 = vpop.f32.mrb[81].mxu0  ;;  %v1549_v41 = vpop.f32.mrb[81].mxu1  ;;  %v3321_v34 = vadd.f32 %v3080_v53, %v3067_v40 }
 0x1bb   : > { %2099 = vst.msk [vmem:[%s3096_s8 + $0x98] sm:$0xf] %vm2060_vm3, %v2441_v8  ;;  %v2442_v23 = vpack.c.bf16 %v1779_v37, %v1779_v37  ;;  %v1550_v28 = vadd.f32 %v1549_v41, %v1261_v22  ;;  %v1231_v3 = vpop.f32.mrb[82].mxu0  ;;  %v2556_v58 = vpop.f32.mrb[82].mxu1 }
 0x1bc   : > { %v1518_v61 = vadd.f32 %v3239_v1, %v1229_v49  ;;  %vm1662_vm12 = vcmp.ge.f32.partialorder %v1558_v16, 0.0  ;;  %v1726_v15 = vmul.f32 0.2, %v1558_v16  ;;  %v1232_v57 = vadd.f32 %v3080_v53, %v1231_v3  ;;  %v1233_v2 = vpop.f32.mrb[83].mxu0  ;;  %v1552_v6 = vpop.f32.mrb[83].mxu1 }
 0x1bd   : > { %2100 = vst.msk [vmem:[%s3096_s8 + $0x9c] sm:$0xf] %vm2060_vm3, %v2442_v23  ;;  %vm1660_vm13 = vcmp.ge.f32.partialorder %v1550_v28, 0.0  ;;  %v1724_v32 = vmul.f32 0.2, %v1550_v28  ;;  %v1561_v36 = vadd.f32 %v2556_v58, %v1272_v39  ;;  %v1553_v7 = vadd.f32 %v1552_v6, %v1264_v33 }
 0x1be   : > { %vm1652_vm14 = vcmp.ge.f32.partialorder %v1518_v61, 0.0  ;;  %v1716_v13 = vmul.f32 0.2, %v1518_v61  ;;  %v1790_v46 = vsel %vm1662_vm12, %v1558_v16, %v1726_v15  ;;  %v1521_v43 = vadd.f32 %v3246_v10, %v1232_v57 }
 0x1bf   : > { %v2453_v1 = vpack.c.bf16 %v1790_v46, %v1790_v46  ;;  %v1788_v59 = vsel %vm1660_vm13, %v1550_v28, %v1724_v32  ;;  %vm1663_vm15 = vcmp.ge.f32.partialorder %v1561_v36, 0.0  ;;  %v1727_v14 = vmul.f32 0.2, %v1561_v36 }
 0x1c0   : > { %v1780_v51 = vsel %vm1652_vm14, %v1518_v61, %v1716_v13  ;;  %v2451_v35 = vpack.c.bf16 %v1788_v59, %v1788_v59  ;;  %vm1653_vm0 = vcmp.ge.f32.partialorder %v1521_v43, 0.0  ;;  %v1717_v21 = vmul.f32 0.2, %v1521_v43 }
 0x1c1   : > { %v2443_v55 = vpack.c.bf16 %v1780_v51, %v1780_v51  ;;  %2111 = vst.msk [vmem:[%s3096_s8 + $0xc8] sm:$0xf] %vm2060_vm3, %v2453_v1  ;;  %v1791_v47 = vsel %vm1663_vm15, %v1561_v36, %v1727_v14  ;;  %vm1661_vm1 = vcmp.ge.f32.partialorder %v1553_v7, 0.0  ;;  %v1725_v63 = vmul.f32 0.2, %v1553_v7  ;;  %v1236_v25 = vpop.f32.mrb[84].mxu0 }
 0x1c2   : > { %v2559_v27 = vpop.f32.mrb[84].mxu1  ;;  %2109 = vst.msk [vmem:[%s3096_s8 + $0xc0] sm:$0xf] %vm2060_vm3, %v2451_v35  ;;  %v1781_v10 = vsel %vm1653_vm0, %v1521_v43, %v1717_v21  ;;  %v2454_v9 = vpack.c.bf16 %v1791_v47, %v1791_v47  ;;  %v1237_v29 = vadd.f32 %v3080_v53, %v1236_v25  ;;  %v1238_v33 = vpop.f32.mrb[85].mxu0  ;;  %v3343_v32 = vadd.f32 %v3080_v53, %v3075_v48 }
 0x1c3   : > { %v1574_v22 = vadd.f32 %v2559_v27, %v1285_v56  ;;  %v1565_v19 = vpop.f32.mrb[85].mxu1  ;;  %2101 = vst.msk [vmem:[%s3096_s8 + $0xa0] sm:$0xf] %vm2060_vm3, %v2443_v55  ;;  %v2444_v38 = vpack.c.bf16 %v1781_v10, %v1781_v10  ;;  %v1789_v39 = vsel %vm1661_vm1, %v1553_v7, %v1725_v63  ;;  %v1239_v18 = vpop.f32.mrb[86].mxu0 }
 0x1c4   : > { %v1566_v31 = vadd.f32 %v1565_v19, %v3274_v42  ;;  %v2560_v8 = vpop.f32.mrb[86].mxu1  ;;  %2112 = vst.msk [vmem:[%s3096_s8 + $0xcc] sm:$0xf] %vm2060_vm3, %v2454_v9  ;;  %v2452_v45 = vpack.c.bf16 %v1789_v39, %v1789_v39  ;;  %v1526_v56 = vadd.f32 %v3236_v54, %v1237_v29  ;;  %v1241_v37 = vpop.f32.mrb[87].mxu0  ;;  %v1240_v16 = vadd.f32 %v3080_v53, %v1239_v18 }
 0x1c5   : > { %vm1666_vm2 = vcmp.ge.f32.partialorder %v1574_v22, 0.0  ;;  %v1730_v11 = vmul.f32 0.2, %v1574_v22  ;;  %v1568_v49 = vpop.f32.mrb[87].mxu1  ;;  %2102 = vst.msk [vmem:[%s3096_s8 + $0xa4] sm:$0xf] %vm2060_vm3, %v2444_v38  ;;  %v1577_v42 = vadd.f32 %v2560_v8, %v3284_v60 }
 0x1c6   : > { %vm1664_vm4 = vcmp.ge.f32.partialorder %v1566_v31, 0.0  ;;  %v1728_v40 = vmul.f32 0.2, %v1566_v31  ;;  %2110 = vst.msk [vmem:[%s3096_s8 + $0xc4] sm:$0xf] %vm2060_vm3, %v2452_v45  ;;  %vm1654_vm5 = vcmp.ge.f32.partialorder %v1526_v56, 0.0  ;;  %v1569_v54 = vadd.f32 %v1568_v49, %v3278_v52 }
 0x1c7   : > { %v1718_v50 = vmul.f32 0.2, %v1526_v56  ;;  %v1794_v41 = vsel %vm1666_vm2, %v1574_v22, %v1730_v11  ;;  %v1529_v3 = vadd.f32 %v3243_v5, %v1240_v16  ;;  %vm1667_vm6 = vcmp.ge.f32.partialorder %v1577_v42, 0.0  ;;  %v2757_v45 = vld [vmem:[%s3401_s2] ss:$0 sm:$0xff] }
 0x1c8   : > { %v2457_v23 = vpack.c.bf16 %v1794_v41, %v1794_v41  ;;  %v1792_v28 = vsel %vm1664_vm4, %v1566_v31, %v1728_v40  ;;  %v1731_v15 = vmul.f32 0.2, %v1577_v42  ;;  %vm1665_vm7 = vcmp.ge.f32.partialorder %v1569_v54, 0.0 }
 0x1c9   : > { %v1782_v58 = vsel %vm1654_vm5, %v1526_v56, %v1718_v50  ;;  %v2455_v61 = vpack.c.bf16 %v1792_v28, %v1792_v28  ;;  %vm1655_vm8 = vcmp.ge.f32.partialorder %v1529_v3, 0.0  ;;  %v1719_v60 = vmul.f32 0.2, %v1529_v3  ;;  %v1244_v6 = vpop.f32.mrb[88].mxu0  ;;  %v2563_v7 = vpop.f32.mrb[88].mxu1 }
 0x1ca   : > { %v2445_v57 = vpack.c.bf16 %v1782_v58, %v1782_v58  ;;  %2115 = vst.msk [vmem:[%s3096_s8 + $0xd8] sm:$0xf] %vm2060_vm3, %v2457_v23  ;;  %v1729_v2 = vmul.f32 0.2, %v1569_v54  ;;  %v1317_v52 = vadd.f32 %v3080_v53, %v3071_v44  ;;  %v1795_v5 = vsel %vm1667_vm6, %v1577_v42, %v1731_v15  ;;  %v1246_v13 = vpop.f32.mrb[89].mxu0  ;;  %v1581_v48 = vpop.f32.mrb[89].mxu1 }
 0x1cb   : > { %2113 = vst.msk [vmem:[%s3096_s8 + $0xd0] sm:$0xf] %vm2060_vm3, %v2455_v61  ;;  %v1245_v36 = vadd.f32 %v3080_v53, %v1244_v6  ;;  %v1783_v46 = vsel %vm1655_vm8, %v1529_v3, %v1719_v60  ;;  %v2458_v43 = vpack.c.bf16 %v1795_v5, %v1795_v5  ;;  %v1590_v44 = vadd.f32 %v2563_v7, %v3296_v12  ;;  %v1247_v59 = vpop.f32.mrb[90].mxu0  ;;  %v2564_v55 = vpop.f32.mrb[90].mxu1 }
 0x1cc   : > { %2103 = vst.msk [vmem:[%s3096_s8 + $0xa8] sm:$0xf] %vm2060_vm3, %v2445_v57  ;;  %v1793_v1 = vsel %vm1665_vm7, %v1569_v54, %v1729_v2  ;;  %v2446_v14 = vpack.c.bf16 %v1783_v46, %v1783_v46  ;;  %v1582_v21 = vadd.f32 %v1581_v48, %v3288_v0  ;;  %v1249_v47 = vpop.f32.mrb[91].mxu0  ;;  %v1248_v25 = vadd.f32 %v3080_v53, %v1247_v59  ;;  %v1584_v12 = vpop.f32.mrb[91].mxu1 }
 0x1cd   : > { %v2456_v51 = vpack.c.bf16 %v1793_v1, %v1793_v1  ;;  %v1534_v35 = vadd.f32 %v3253_v62, %v1245_v36  ;;  %2116 = vst.msk [vmem:[%s3096_s8 + $0xdc] sm:$0xf] %vm2060_vm3, %v2458_v43  ;;  %vm1670_vm9 = vcmp.ge.f32.partialorder %v1590_v44, 0.0  ;;  %v1734_v63 = vmul.f32 0.2, %v1590_v44 }
 0x1ce   : > { %v1593_v27 = vadd.f32 %v2564_v55, %v3301_v20  ;;  %2104 = vst.msk [vmem:[%s3096_s8 + $0xac] sm:$0xf] %vm2060_vm3, %v2446_v14  ;;  %vm1668_vm11 = vcmp.ge.f32.partialorder %v1582_v21, 0.0  ;;  %v1732_v62 = vmul.f32 0.2, %v1582_v21  ;;  %v1537_v9 = vadd.f32 %v3260_v30, %v1248_v25 }
 0x1cf   : > { %2114 = vst.msk [vmem:[%s3096_s8 + $0xd4] sm:$0xf] %vm2060_vm3, %v2456_v51  ;;  %vm1656_vm10 = vcmp.ge.f32.partialorder %v1534_v35, 0.0  ;;  %v1720_v10 = vmul.f32 0.2, %v1534_v35  ;;  %v1798_v0 = vsel %vm1670_vm9, %v1590_v44, %v1734_v63  ;;  %v1585_v20 = vadd.f32 %v1584_v12, %v3292_v4 }
 0x1d0   : > { %vm1671_vm12 = vcmp.ge.f32.partialorder %v1593_v27, 0.0  ;;  %v1735_v29 = vmul.f32 0.2, %v1593_v27  ;;  %v2461_v33 = vpack.c.bf16 %v1798_v0, %v1798_v0  ;;  %v1796_v53 = vsel %vm1668_vm11, %v1582_v21, %v1732_v62 }
 0x1d1   : > { %v1784_v22 = vsel %vm1656_vm10, %v1534_v35, %v1720_v10  ;;  %v2459_v38 = vpack.c.bf16 %v1796_v53, %v1796_v53  ;;  %vm1657_vm13 = vcmp.ge.f32.partialorder %v1537_v9, 0.0  ;;  %v1721_v39 = vmul.f32 0.2, %v1537_v9  ;;  %v1252_v31 = vpop.f32.mrb[92].mxu0  ;;  %v2567_v18 = vpop.f32.mrb[92].mxu1 }
 0x1d2   : > { %v2447_v19 = vpack.c.bf16 %v1784_v22, %v1784_v22  ;;  %2119 = vst.msk [vmem:[%s3096_s8 + $0xe8] sm:$0xf] %vm2060_vm3, %v2461_v33  ;;  %v1799_v8 = vsel %vm1671_vm12, %v1593_v27, %v1735_v29  ;;  %vm1669_vm14 = vcmp.ge.f32.partialorder %v1585_v20, 0.0  ;;  %v1733_v30 = vmul.f32 0.2, %v1585_v20  ;;  %v1254_v11 = vpop.f32.mrb[93].mxu0 }
 0x1d3   : > { %v1253_v56 = vadd.f32 %v2757_v45, %v1252_v31  ;;  %v1597_v4 = vpop.f32.mrb[93].mxu1  ;;  %2117 = vst.msk [vmem:[%s3096_s8 + $0xe0] sm:$0xf] %vm2060_vm3, %v2459_v38  ;;  %v1785_v37 = vsel %vm1657_vm13, %v1537_v9, %v1721_v39  ;;  %v2462_v49 = vpack.c.bf16 %v1799_v8, %v1799_v8  ;;  %v1606_v40 = vadd.f32 %v2567_v18, %v1317_v52  ;;  %v1255_v42 = vpop.f32.mrb[94].mxu0 }
 0x1d4   : > { %2105 = vst.msk [vmem:[%s3096_s8 + $0xb0] sm:$0xf] %vm2060_vm3, %v2447_v19  ;;  %v1598_v16 = vadd.f32 %v1597_v4, %v3305_v24  ;;  %v2568_v50 = vpop.f32.mrb[94].mxu1  ;;  %v2448_v41 = vpack.c.bf16 %v1785_v37, %v1785_v37  ;;  %v1797_v54 = vsel %vm1669_vm14, %v1585_v20, %v1733_v30  ;;  %v1256_v28 = vadd.f32 %v2757_v45, %v1255_v42  ;;  %v1257_v3 = vpop.f32.mrb[95].mxu0 }
 0x1d5   : > { %v1542_v23 = vadd.f32 %v3250_v17, %v1253_v56  ;;  %v1600_v58 = vpop.f32.mrb[95].mxu1  ;;  %2120 = vst.msk [vmem:[%s3096_s8 + $0xec] sm:$0xf] %vm2060_vm3, %v2462_v49  ;;  %v2460_v61 = vpack.c.bf16 %v1797_v54, %v1797_v54  ;;  %vm1674_vm15 = vcmp.ge.f32.partialorder %v1606_v40, 0.0  ;;  %v1738_v15 = vmul.f32 0.2, %v1606_v40 }
 0x1d6   : > { %vm1672_vm0 = vcmp.ge.f32.partialorder %v1598_v16, 0.0  ;;  %2106 = vst.msk [vmem:[%s3096_s8 + $0xb4] sm:$0xf] %vm2060_vm3, %v2448_v41  ;;  %v1736_v57 = vmul.f32 0.2, %v1598_v16  ;;  %v1545_v60 = vadd.f32 %v3257_v26, %v1256_v28  ;;  %v1609_v2 = vadd.f32 %v2568_v50, %v3343_v32 }
 0x1d7   : > { %vm1658_vm1 = vcmp.ge.f32.partialorder %v1542_v23, 0.0  ;;  %v1722_v24 = vmul.f32 0.2, %v1542_v23  ;;  %2118 = vst.msk [vmem:[%s3096_s8 + $0xe4] sm:$0xf] %vm2060_vm3, %v2460_v61  ;;  %v1802_v17 = vsel %vm1674_vm15, %v1606_v40, %v1738_v15  ;;  %v1601_v6 = vadd.f32 %v1600_v58, %v3321_v34 }
 0x1d8   : > { %v2465_v5 = vpack.c.bf16 %v1802_v17, %v1802_v17  ;;  %v1800_v36 = vsel %vm1672_vm0, %v1598_v16, %v1736_v57  ;;  %vm1659_vm2 = vcmp.ge.f32.partialorder %v1545_v60, 0.0  ;;  %v1723_v46 = vmul.f32 0.2, %v1545_v60 }
 0x1d9   : > { %v1786_v52 = vsel %vm1658_vm1, %v1542_v23, %v1722_v24  ;;  %v2463_v13 = vpack.c.bf16 %v1800_v36, %v1800_v36  ;;  %vm1675_vm4 = vcmp.ge.f32.partialorder %v1609_v2, 0.0  ;;  %v1739_v26 = vmul.f32 0.2, %v1609_v2 }
 0x1da   : > { %v2449_v7 = vpack.c.bf16 %v1786_v52, %v1786_v52  ;;  %2123 = vst.msk [vmem:[%s3096_s8 + $0xf8] sm:$0xf] %vm2060_vm3, %v2465_v5  ;;  %vm1673_vm5 = vcmp.ge.f32.partialorder %v1601_v6, 0.0  ;;  %v1737_v43 = vmul.f32 0.2, %v1601_v6  ;;  %v1787_v34 = vsel %vm1659_vm2, %v1545_v60, %v1723_v46 }
 0x1db   : > { %2121 = vst.msk [vmem:[%s3096_s8 + $0xf0] sm:$0xf] %vm2060_vm3, %v2463_v13  ;;  %v2450_v32 = vpack.c.bf16 %v1787_v34, %v1787_v34  ;;  %v1803_v1 = vsel %vm1675_vm4, %v1609_v2, %v1739_v26 }
 0x1dc   : > { %2107 = vst.msk [vmem:[%s3096_s8 + $0xb8] sm:$0xf] %vm2060_vm3, %v2449_v7  ;;  %v1801_v44 = vsel %vm1673_vm5, %v1601_v6, %v1737_v43  ;;  %v2466_v48 = vpack.c.bf16 %v1803_v1, %v1803_v1 }
 0x1dd   : > { %v2464_v59 = vpack.c.bf16 %v1801_v44, %v1801_v44  ;;  %2108 = vst.msk [vmem:[%s3096_s8 + $0xbc] sm:$0xf] %vm2060_vm3, %v2450_v32 }
 0x1de   : > { %2124 = vst.msk [vmem:[%s3096_s8 + $0xfc] sm:$0xf] %vm2060_vm3, %v2466_v48 }
 0x1df   : > { %2122 = vst.msk [vmem:[%s3096_s8 + $0xf4] sm:$0xf] %vm2060_vm3, %v2464_v59 }
 0x1e0 PF: > { %s13_s12 = sadd.s32 1, %s2764_s12  }
 0x1e1   : > { %p10_p4 = scmp.ge.s32.totalorder %s13_s12, 4  }
 0x1e3   :  { %12 = sbr.rel (!%p10_p4) target bundleno = 1 (0x1), region = 62 }

// kernel: encoder_forward.7
= control target key start
LH: loop header
LB: loop body
LE: loop exit
PB: predicated region body
PF: predicated region fallthrough
CT: control target
= control target key end

     0   :  { %s1697_s12 = smov 0   ;;  %s1948_s0 = inlined_call_operand.vmem [shape: bf16[256,576], index: 0, kind: input, shape index: {}]   ;;  %s1949_s1 = inlined_call_operand.vmem [shape: bf16[576,128], index: 1, kind: input, shape index: {}]   ;;  %s1950_s2 = inlined_call_operand.vmem [shape: f32[1,128], index: 2, kind: input, shape index: {}]   ;;  %s1951_s3 = inlined_call_operand.vmem [shape: bf16[256,128], index: 3, kind: output, shape index: {}]  }
   0x1 LB: > { %s1221_s13 = sadd.s32 4294967295, %s1675_s12   ;;  %p1225_p0 = scmp.ge.s32.totalorder %s1675_s12, 1  ;;  %s1675_s12 = sphi %s1697_s12, %s13_s12  }
   0x2   : > { %p139_p1 = scmp.lt.s32.totalorder %s1675_s12, 3 }
   0x4   : > { %p140_p2 = pnand %p1225_p0, %p139_p1 }
   0x5   : > { %v1577_v0 = vld [vmem:[%s1949_s1 + $0x40] sm:$0xff] (!%p140_p2)   ;;  %v1581_v4 = vld [vmem:[%s1949_s1 + $0x48] sm:$0xff] (!%p140_p2)   ;;  %v1585_v8 = vld [vmem:[%s1949_s1 + $0x50] sm:$0xff] (!%p140_p2)   ;;  %s1226_s19 = sshll.u32 (!%p140_p2), %s1221_s13, 4  ;;  %vm721_vm0 = vcmask (!%p140_p2), 523264  }
   0x6   : > { %143 = sbr.rel (%p140_p2) target bundleno = 337 (0x151), region = 32  ;;  %v1578_v1 = vld [vmem:[%s1949_s1 + $0xc0] sm:$0xff] (!%p140_p2)   ;;  %1396 = vmatprep.subr.bf16.mxu0 (!%p140_p2), %v1577_v0  ;;  %v1582_v5 = vld [vmem:[%s1949_s1 + $0xc8] sm:$0xff] (!%p140_p2)   ;;  %v1586_v9 = vld [vmem:[%s1949_s1 + $0xd0] sm:$0xff] (!%p140_p2)   ;;  %p165_p3 = scmp.lt.s32.totalorder (!%p140_p2), %s1226_s19, 31 }
   0x7   : > { %v1579_v2 = vld [vmem:[%s1949_s1] sm:$0xff] (!%p140_p2)   ;;  %1460 = vmatprep.subr.bf16.mxu1 (!%p140_p2), %v1578_v1  ;;  %v1583_v6 = vld [vmem:[%s1949_s1 + $0x8] sm:$0xff] (!%p140_p2)   ;;  %v1587_v10 = vld [vmem:[%s1949_s1 + $0x10] sm:$0xff] (!%p140_p2)  }
   0x8   : > { %v1580_v3 = vld [vmem:[%s1949_s1 + $0x80] sm:$0xff] (!%p140_p2)   ;;  %1397 = vmatpush3.bf16.msra.mxu0 (!%p140_p2), %v1579_v2  ;;  %v1584_v7 = vld [vmem:[%s1949_s1 + $0x88] sm:$0xff] (!%p140_p2)   ;;  %v1588_v11 = vld [vmem:[%s1949_s1 + $0x90] sm:$0xff] (!%p140_p2)  }
   0x9   : > { %1461 = vmatpush3.bf16.msra.mxu1 (!%p140_p2), %v1580_v3  ;;  %1398 = vmatprep.subr.bf16.mxu0 (!%p140_p2), %v1581_v4  ;;  %v1589_v12 = vld [vmem:[%s1949_s1 + $0x58] sm:$0xff] (!%p140_p2)   ;;  %v1593_v16 = vld [vmem:[%s1949_s1 + $0x60] sm:$0xff] (!%p140_p2)   ;;  %v1597_v20 = vld [vmem:[%s1949_s1 + $0x68] sm:$0xff] (!%p140_p2)  }
   0xa   : > { %1462 = vmatprep.subr.bf16.mxu1 (!%p140_p2), %v1582_v5  ;;  %v1590_v13 = vld [vmem:[%s1949_s1 + $0xd8] sm:$0xff] (!%p140_p2)   ;;  %v1594_v17 = vld [vmem:[%s1949_s1 + $0xe0] sm:$0xff] (!%p140_p2)   ;;  %v1598_v21 = vld [vmem:[%s1949_s1 + $0xe8] sm:$0xff] (!%p140_p2)  }
   0xb   : > { %v1591_v14 = vld [vmem:[%s1949_s1 + $0x18] sm:$0xff] (!%p140_p2)   ;;  %v1595_v18 = vld [vmem:[%s1949_s1 + $0x20] sm:$0xff] (!%p140_p2)   ;;  %v1599_v22 = vld [vmem:[%s1949_s1 + $0x28] sm:$0xff] (!%p140_p2)  }
   0xc   : > { %1399 = vmatpush3.bf16.msra.mxu0 (!%p140_p2), %v1583_v6  ;;  %v1592_v15 = vld [vmem:[%s1949_s1 + $0x98] sm:$0xff] (!%p140_p2)   ;;  %v1596_v19 = vld [vmem:[%s1949_s1 + $0xa0] sm:$0xff] (!%p140_p2)   ;;  %v1600_v23 = vld [vmem:[%s1949_s1 + $0xa8] sm:$0xff] (!%p140_p2)  }
   0xd   : > { %1463 = vmatpush3.bf16.msra.mxu1 %v1584_v7  ;;  %1400 = vmatprep.subr.bf16.mxu0 %v1585_v8  ;;  %s1953_s19 = smov (!%p165_p3, %s1226_s19), 31  ;;  %v1601_v24 = vld [vmem:[%s1949_s1 + $0x70] sm:$0xff]   ;;  %v1605_v28 = vld [vmem:[%s1949_s1 + $0x78] sm:$0xff]   ;;  %v1615_v36 = vld [vmem:[%s1949_s1 + $0x100] sm:$0xff]  }
   0xe   : > { %1464 = vmatprep.subr.bf16.mxu1 %v1586_v9  ;;  %v1602_v25 = vld [vmem:[%s1949_s1 + $0xf0] sm:$0xff]   ;;  %s1568_s16 = smul.u32 20, %s1953_s19  ;;  %v1606_v29 = vld [vmem:[%s1949_s1 + $0xf8] sm:$0xff]   ;;  %v1628_v42 = vld [vmem:[%s1949_s1 + $0x108] sm:$0xff]   ;;  %s1229_s17 = sshll.u32 %s1953_s19, 2 }
   0xf   : > { %v1603_v26 = vld [vmem:[%s1949_s1 + $0x30] sm:$0xff]   ;;  %v1607_v30 = vld [vmem:[%s1949_s1 + $0x38] sm:$0xff]   ;;  %s1925_s21 = scalar_lea.vmem %s1951_s3, %s1229_s17 }
  0x10   : > { %1401 = vmatpush3.bf16.msra.mxu0 %v1587_v10  ;;  %v1604_v27 = vld [vmem:[%s1949_s1 + $0xb0] sm:$0xff]   ;;  %s1803_s13 = scalar_lea.vmem %s1948_s0, %s1568_s16  ;;  %v1608_v31 = vld [vmem:[%s1949_s1 + $0xb8] sm:$0xff]  }
  0x11   : > { %1465 = vmatpush3.bf16.msra.mxu1 %v1588_v11  ;;  %1402 = vmatprep.subr.bf16.mxu0 %v1589_v12  ;;  %v1609_v32 = vld [vmem:[%s1803_s13] ss:$20 sps:$4 sm:$0xff]   ;;  %v1611_v33 = vld [vmem:[%s1803_s13 + $0x4] ss:$20 sps:$4 sm:$0xff]   ;;  %v1612_v34 = vld [vmem:[%s1803_s13 + $0x8] ss:$20 sps:$4 sm:$0xff]  }
  0x12   : > { %1466 = vmatprep.subr.bf16.mxu1 %v1590_v13  ;;  %v1614_v35 = vld [vmem:[%s1803_s13 + $0xc] ss:$20 sps:$4 sm:$0xff]   ;;  %778 = vmatprep.mubr.bf16.mxu0 %v1611_v33  ;;  %v1618_v38 = vld [vmem:[%s1803_s13 + $0x34] ss:$20 sps:$4 sm:$0xff]   ;;  %v1621_v40 = vld [vmem:[%s1803_s13 + $0x30] ss:$20 sps:$4 sm:$0xff]  }
  0x13   : > { %875 = vmatprep.mubr.bf16.mxu1 %v1614_v35  ;;  %v1616_v37 = vld [vmem:[%s1803_s13 + $0x2c] ss:$20 sps:$4 sm:$0xff]   ;;  %v1620_v39 = vld [vmem:[%s1803_s13 + $0x28] ss:$20 sps:$4 sm:$0xff]   ;;  %v1626_v44 = vld [vmem:[%s1803_s13 + $0x50] ss:$20 sps:$4 sm:$0xff]  }
  0x14   : > { %1403 = vmatpush3.bf16.msra.mxu0 %v1591_v14  ;;  %v1622_v41 = vld [vmem:[%s1803_s13 + $0x54] ss:$20 sps:$4 sm:$0xff]   ;;  %v1624_v43 = vld [vmem:[%s1803_s13 + $0x5c] ss:$20 sps:$4 sm:$0xff]   ;;  %v1627_v45 = vld [vmem:[%s1803_s13 + $0x58] ss:$20 sps:$4 sm:$0xff]  }
  0x15   : > { %1467 = vmatpush3.bf16.msra.mxu1 %v1592_v15  ;;  %1404 = vmatprep.subr.bf16.mxu0 %v1593_v16  ;;  %v1641_v46 = vld [vmem:[%s1949_s1 + $0x110] sm:$0xff]   ;;  %v1631_v48 = vld [vmem:[%s1803_s13 + $0x84] ss:$20 sps:$4 sm:$0xff]   ;;  %v1637_v53 = vld [vmem:[%s1803_s13 + $0xac] ss:$20 sps:$4 sm:$0xff]  }
  0x16   : > { %1468 = vmatprep.subr.bf16.mxu1 %v1594_v17  ;;  %v1629_v47 = vld [vmem:[%s1803_s13 + $0x7c] ss:$20 sps:$4 sm:$0xff]   ;;  %v1633_v50 = vld [vmem:[%s1803_s13 + $0x78] ss:$20 sps:$4 sm:$0xff]   ;;  %v1634_v51 = vld [vmem:[%s1803_s13 + $0x80] ss:$20 sps:$4 sm:$0xff]  }
  0x17   : > { %v1654_v49 = vld [vmem:[%s1949_s1 + $0x118] sm:$0xff]   ;;  %v1639_v54 = vld [vmem:[%s1803_s13 + $0xa0] ss:$20 sps:$4 sm:$0xff]   ;;  %v1647_v59 = vld [vmem:[%s1803_s13 + $0xd0] ss:$20 sps:$4 sm:$0xff]  }
  0x18   : > { %1405 = vmatpush3.bf16.msra.mxu0 %v1595_v18  ;;  %v1635_v52 = vld [vmem:[%s1803_s13 + $0xa4] ss:$20 sps:$4 sm:$0xff]   ;;  %v1640_v55 = vld [vmem:[%s1803_s13 + $0xa8] ss:$20 sps:$4 sm:$0xff]   ;;  %v1642_v56 = vld [vmem:[%s1803_s13 + $0xcc] ss:$20 sps:$4 sm:$0xff]  }
  0x19   : > { %1469 = vmatpush3.bf16.msra.mxu1 %v1596_v19  ;;  %1406 = vmatprep.subr.bf16.mxu0 %v1597_v20  ;;  %v1644_v57 = vld [vmem:[%s1803_s13 + $0xd4] ss:$20 sps:$4 sm:$0xff]   ;;  %v1650_v61 = vld [vmem:[%s1803_s13 + $0xfc] ss:$20 sps:$4 sm:$0xff]   ;;  %v1653_v63 = vld [vmem:[%s1803_s13 + $0xf8] ss:$20 sps:$4 sm:$0xff]  }
  0x1a   : > { %1470 = vmatprep.subr.bf16.mxu1 %v1598_v21  ;;  %v1646_v58 = vld [vmem:[%s1803_s13 + $0xc8] ss:$20 sps:$4 sm:$0xff]   ;;  %v1652_v62 = vld [vmem:[%s1803_s13 + $0xf0] ss:$20 sps:$4 sm:$0xff]   ;;  %v1659_v2 = vld [vmem:[%s1803_s13 + $0x118] ss:$20 sps:$4 sm:$0xff]  }
  0x1b   : > { %v1648_v60 = vld [vmem:[%s1803_s13 + $0xf4] ss:$20 sps:$4 sm:$0xff]   ;;  %v1655_v0 = vld [vmem:[%s1803_s13 + $0x11c] ss:$20 sps:$4 sm:$0xff]   ;;  %v1657_v1 = vld [vmem:[%s1803_s13 + $0x124] ss:$20 sps:$4 sm:$0xff]  }
  0x1c   : > { %1407 = vmatpush3.bf16.msra.mxu0 %v1599_v22  ;;  %v1660_v3 = vld [vmem:[%s1803_s13 + $0x120] ss:$20 sps:$4 sm:$0xff]   ;;  %v1661_v4 = vld [vmem:[%s1803_s13 + $0x10] ss:$20 sps:$4 sm:$0xff]   ;;  %v1663_v6 = vld [vmem:[%s1803_s13 + $0x38] ss:$20 sps:$4 sm:$0xff]  }
  0x1d   : > { %1471 = vmatpush3.bf16.msra.mxu1 %v1600_v23  ;;  %1408 = vmatprep.subr.bf16.mxu0 %v1601_v24  ;;  %v1662_v5 = vld [vmem:[%s1803_s13 + $0xb0] ss:$20 sps:$4 sm:$0xff]   ;;  %v1664_v7 = vld [vmem:[%s1803_s13 + $0xd8] ss:$20 sps:$4 sm:$0xff]   ;;  %v1665_v8 = vld [vmem:[%s1803_s13 + $0x60] ss:$20 sps:$4 sm:$0xff]  }
  0x1e   : > { %1472 = vmatprep.subr.bf16.mxu1 %v1602_v25  ;;  %v1666_v9 = vld [vmem:[%s1803_s13 + $0x100] ss:$20 sps:$4 sm:$0xff]   ;;  %v1667_v10 = vld [vmem:[%s1803_s13 + $0x88] ss:$20 sps:$4 sm:$0xff]  }
  0x1f   : > { %v1668_v11 = vld [vmem:[%s1803_s13 + $0x128] ss:$20 sps:$4 sm:$0xff]   ;;  %v1874_v14 = vld [vmem:[%s1950_s2] ss:$0 sm:$0xff] }
  0x20   : > { %1409 = vmatpush3.bf16.msra.mxu0 %v1603_v26 }
  0x21   : > { %1473 = vmatpush3.bf16.msra.mxu1 %v1604_v27  ;;  %1410 = vmatprep.subr.bf16.mxu0 %v1605_v28 }
  0x22   : > { %1474 = vmatprep.subr.bf16.mxu1 %v1606_v29 }
  0x24   : > { %1411 = vmatpush3.bf16.msra.mxu0 %v1607_v30 }
  0x25   : > { %1475 = vmatpush3.bf16.msra.mxu1 %v1608_v31  ;;  %1536 = vmatprep.subr.bf16.mxu0 %v1615_v36 }
  0x26   : > { %1560 = vmatprep.subr.bf16.mxu1 %v1615_v36 }
  0x27   : > { %779 = vmatmul.mubr.bf16.vlgmr.msra.gmra.mrb[0].mxu0 %v1609_v32 }
  0x28   : > { %876 = vmatmul.mubr.bf16.vlgmr.msra.gmra.mrb[0].mxu1 %v1612_v34  ;;  %1537 = vmatpush3.bf16.msra.mxu0 %v1615_v36 }
  0x29   : > { %1564 = vmatpush3.bf16.msra.mxu1 %v1615_v36  ;;  %786 = vmatprep.mubr.bf16.mxu0 %v1616_v37 }
  0x2a   : > { %883 = vmatprep.mubr.bf16.mxu1 %v1618_v38  ;;  %1538 = vmatprep.subr.bf16.mxu0 %v1628_v42 }
  0x2b   : > { %1561 = vmatprep.subr.bf16.mxu1 %v1628_v42 }
  0x2c   : > { %1539 = vmatpush3.bf16.msra.mxu0 %v1628_v42 }
  0x2d   : > { %1565 = vmatpush3.bf16.msra.mxu1 %v1628_v42  ;;  %1540 = vmatprep.subr.bf16.mxu0 %v1641_v46 }
  0x2e   : > { %1562 = vmatprep.subr.bf16.mxu1 %v1641_v46 }
  0x2f   : > { %787 = vmatmul.mubr.bf16.gmra.mrb[4].mxu0 %v1620_v39 }
  0x30   : > { %884 = vmatmul.mubr.bf16.gmra.mrb[4].mxu1 %v1621_v40  ;;  %794 = vmatprep.mubr.bf16.mxu0 %v1622_v41 }
  0x31   : > { %891 = vmatprep.mubr.bf16.mxu1 %v1624_v43  ;;  %1541 = vmatpush3.bf16.msra.mxu0 %v1641_v46 }
  0x32   : > { %1566 = vmatpush3.bf16.msra.mxu1 %v1641_v46  ;;  %1542 = vmatprep.subr.bf16.mxu0 %v1654_v49 }
  0x33   : > { %1563 = vmatprep.subr.bf16.mxu1 %v1654_v49 }
  0x35   : > { %1543 = vmatpush3.bf16.msra.mxu0 %v1654_v49 }
  0x36   : > { %1567 = vmatpush3.bf16.msra.mxu1 %v1654_v49 }
  0x37   : > { %795 = vmatmul.mubr.bf16.gmra.mrb[8].mxu0 %v1626_v44 }
  0x38   : > { %892 = vmatmul.mubr.bf16.gmra.mrb[8].mxu1 %v1627_v45  ;;  %802 = vmatprep.mubr.bf16.mxu0 %v1629_v47 }
  0x39   : > { %899 = vmatprep.mubr.bf16.mxu1 %v1631_v48 }
  0x3f   : > { %803 = vmatmul.mubr.bf16.gmra.mrb[12].mxu0 %v1633_v50 }
  0x40   : > { %900 = vmatmul.mubr.bf16.gmra.mrb[12].mxu1 %v1634_v51  ;;  %810 = vmatprep.mubr.bf16.mxu0 %v1635_v52 }
  0x41   : > { %907 = vmatprep.mubr.bf16.mxu1 %v1637_v53 }
  0x47   : > { %811 = vmatmul.mubr.bf16.gmra.mrb[16].mxu0 %v1639_v54 }
  0x48   : > { %908 = vmatmul.mubr.bf16.gmra.mrb[16].mxu1 %v1640_v55  ;;  %818 = vmatprep.mubr.bf16.mxu0 %v1642_v56 }
  0x49   : > { %915 = vmatprep.mubr.bf16.mxu1 %v1644_v57 }
  0x4f   : > { %819 = vmatmul.mubr.bf16.gmra.mrb[20].mxu0 %v1646_v58 }
  0x50   : > { %916 = vmatmul.mubr.bf16.gmra.mrb[20].mxu1 %v1647_v59  ;;  %826 = vmatprep.mubr.bf16.mxu0 %v1648_v60 }
  0x51   : > { %923 = vmatprep.mubr.bf16.mxu1 %v1650_v61 }
  0x57   : > { %827 = vmatmul.mubr.bf16.gmra.mrb[24].mxu0 %v1652_v62 }
  0x58   : > { %924 = vmatmul.mubr.bf16.gmra.mrb[24].mxu1 %v1653_v63  ;;  %834 = vmatprep.mubr.bf16.mxu0 %v1655_v0 }
  0x59   : > { %931 = vmatprep.mubr.bf16.mxu1 %v1657_v1 }
  0x5f   : > { %835 = vmatmul.mubr.bf16.gmra.mrb[28].mxu0 %v1659_v2 }
  0x60   : > { %932 = vmatmul.mubr.bf16.gmra.mrb[28].mxu1 %v1660_v3  ;;  %1544 = vmatprep.mubr.msk.bf16.mxu0 %vm721_vm0, %v1661_v4 }
  0x61   : > { %1552 = vmatprep.mubr.msk.bf16.mxu1 %vm721_vm0, %v1662_v5 }
  0x67   : > { %1545 = vmatmul.mubr.msk.bf16.vlgmr.msra.gmra.mrb[32].mxu0 %vm721_vm0, %v1663_v6 }
  0x68   : > { %1553 = vmatmul.mubr.msk.bf16.vlgmr.msra.gmra.mrb[32].mxu1 %vm721_vm0, %v1664_v7  ;;  %1548 = vmatprep.mubr.msk.bf16.mxu0 %vm721_vm0, %v1665_v8 }
  0x69   : > { %1556 = vmatprep.mubr.msk.bf16.mxu1 %vm721_vm0, %v1666_v9 }
  0x6f   : > { %1549 = vmatmul.mubr.msk.bf16.gmra.mrb[36].mxu0 %vm721_vm0, %v1667_v10 }
  0x70   : > { %1557 = vmatmul.mubr.msk.bf16.gmra.mrb[36].mxu1 %vm721_vm0, %v1668_v11 }
  0xfa   : > { %v1412_v12 = vpop.f32.mrb[0].mxu0 }
  0xfb   : > { %v1476_v13 = vpop.f32.mrb[0].mxu1  ;;  %v1413_v15 = vpop.f32.mrb[1].mxu0 }
  0xfc   : > { %v1414_v16 = vadd.f32 %v1413_v15, %v1412_v12  ;;  %v1477_v17 = vpop.f32.mrb[1].mxu1  ;;  %v1415_v18 = vpop.f32.mrb[2].mxu0 }
  0xfd   : > { %v1478_v19 = vadd.f32 %v1477_v17, %v1476_v13  ;;  %v1479_v20 = vpop.f32.mrb[2].mxu1  ;;  %v1416_v21 = vpop.f32.mrb[3].mxu0 }
  0xfe   : > { %v781_v22 = vadd.f32 %v1414_v16, %v1874_v14  ;;  %v1417_v23 = vadd.f32 %v1416_v21, %v1415_v18  ;;  %v1480_v24 = vpop.f32.mrb[3].mxu1 }
  0xff   : > { %v1481_v25 = vadd.f32 %v1480_v24, %v1479_v20 }
 0x100   : > { %v784_v26 = vadd.f32 %v1417_v23, %v1874_v14  ;;  %v1878_v27 = vadd.f32 %v1478_v19, %v781_v22 }
 0x102   : > { %v1418_v28 = vpop.f32.mrb[4].mxu0  ;;  %v1880_v29 = vadd.f32 %v1481_v25, %v784_v26 }
 0x103   : > { %v1482_v30 = vpop.f32.mrb[4].mxu1  ;;  %v1419_v31 = vpop.f32.mrb[5].mxu0 }
 0x104   : > { %v1420_v32 = vadd.f32 %v1419_v31, %v1418_v28  ;;  %v1483_v33 = vpop.f32.mrb[5].mxu1  ;;  %v1421_v34 = vpop.f32.mrb[6].mxu0 }
 0x105   : > { %v1484_v35 = vadd.f32 %v1483_v33, %v1482_v30  ;;  %v1485_v36 = vpop.f32.mrb[6].mxu1  ;;  %v1422_v37 = vpop.f32.mrb[7].mxu0 }
 0x106   : > { %v789_v38 = vadd.f32 %v1420_v32, %v1874_v14  ;;  %v1423_v39 = vadd.f32 %v1422_v37, %v1421_v34  ;;  %v1486_v40 = vpop.f32.mrb[7].mxu1 }
 0x107   : > { %v1487_v41 = vadd.f32 %v1486_v40, %v1485_v36 }
 0x108   : > { %v792_v42 = vadd.f32 %v1423_v39, %v1874_v14  ;;  %v1884_v43 = vadd.f32 %v1484_v35, %v789_v38 }
 0x10a   : > { %v1424_v44 = vpop.f32.mrb[8].mxu0  ;;  %v1886_v45 = vadd.f32 %v1487_v41, %v792_v42 }
 0x10b   : > { %v1488_v46 = vpop.f32.mrb[8].mxu1  ;;  %v1425_v47 = vpop.f32.mrb[9].mxu0 }
 0x10c   : > { %v1426_v48 = vadd.f32 %v1425_v47, %v1424_v44  ;;  %v1489_v49 = vpop.f32.mrb[9].mxu1  ;;  %v1427_v50 = vpop.f32.mrb[10].mxu0 }
 0x10d   : > { %v1490_v51 = vadd.f32 %v1489_v49, %v1488_v46  ;;  %v1491_v52 = vpop.f32.mrb[10].mxu1  ;;  %v1428_v53 = vpop.f32.mrb[11].mxu0 }
 0x10e   : > { %v797_v54 = vadd.f32 %v1426_v48, %v1874_v14  ;;  %v1429_v55 = vadd.f32 %v1428_v53, %v1427_v50  ;;  %v1492_v56 = vpop.f32.mrb[11].mxu1 }
 0x10f   : > { %v1493_v57 = vadd.f32 %v1492_v56, %v1491_v52 }
 0x110   : > { %v800_v58 = vadd.f32 %v1429_v55, %v1874_v14  ;;  %v1890_v59 = vadd.f32 %v1490_v51, %v797_v54 }
 0x112   : > { %v1430_v60 = vpop.f32.mrb[12].mxu0  ;;  %v1892_v61 = vadd.f32 %v1493_v57, %v800_v58 }
 0x113   : > { %v1494_v62 = vpop.f32.mrb[12].mxu1  ;;  %v1431_v63 = vpop.f32.mrb[13].mxu0 }
 0x114   : > { %v1432_v0 = vadd.f32 %v1431_v63, %v1430_v60  ;;  %v1495_v1 = vpop.f32.mrb[13].mxu1  ;;  %v1433_v2 = vpop.f32.mrb[14].mxu0 }
 0x115   : > { %v1496_v3 = vadd.f32 %v1495_v1, %v1494_v62  ;;  %v1497_v4 = vpop.f32.mrb[14].mxu1  ;;  %v1434_v5 = vpop.f32.mrb[15].mxu0 }
 0x116   : > { %v805_v6 = vadd.f32 %v1432_v0, %v1874_v14  ;;  %v1435_v7 = vadd.f32 %v1434_v5, %v1433_v2  ;;  %v1498_v8 = vpop.f32.mrb[15].mxu1 }
 0x117   : > { %v1499_v9 = vadd.f32 %v1498_v8, %v1497_v4 }
 0x118   : > { %v808_v10 = vadd.f32 %v1435_v7, %v1874_v14  ;;  %v1896_v11 = vadd.f32 %v1496_v3, %v805_v6 }
 0x11a   : > { %v1436_v12 = vpop.f32.mrb[16].mxu0  ;;  %v1898_v13 = vadd.f32 %v1499_v9, %v808_v10 }
 0x11b   : > { %v1500_v15 = vpop.f32.mrb[16].mxu1  ;;  %v1437_v16 = vpop.f32.mrb[17].mxu0 }
 0x11c   : > { %v1438_v17 = vadd.f32 %v1437_v16, %v1436_v12  ;;  %v1501_v18 = vpop.f32.mrb[17].mxu1  ;;  %v1439_v19 = vpop.f32.mrb[18].mxu0 }
 0x11d   : > { %v1502_v20 = vadd.f32 %v1501_v18, %v1500_v15  ;;  %v1503_v21 = vpop.f32.mrb[18].mxu1  ;;  %v1440_v22 = vpop.f32.mrb[19].mxu0 }
 0x11e   : > { %v813_v23 = vadd.f32 %v1438_v17, %v1874_v14  ;;  %v1441_v24 = vadd.f32 %v1440_v22, %v1439_v19  ;;  %v1504_v25 = vpop.f32.mrb[19].mxu1 }
 0x11f   : > { %v1505_v26 = vadd.f32 %v1504_v25, %v1503_v21 }
 0x120   : > { %v816_v28 = vadd.f32 %v1441_v24, %v1874_v14  ;;  %v910_v30 = vadd.f32 %v1502_v20, %v813_v23 }
 0x122   : > { %v1442_v31 = vpop.f32.mrb[20].mxu0  ;;  %v1902_v32 = vadd.f32 %v1505_v26, %v816_v28 }
 0x123   : > { %v1506_v33 = vpop.f32.mrb[20].mxu1  ;;  %v1443_v34 = vpop.f32.mrb[21].mxu0 }
 0x124   : > { %v1444_v35 = vadd.f32 %v1443_v34, %v1442_v31  ;;  %v1507_v36 = vpop.f32.mrb[21].mxu1  ;;  %v1445_v37 = vpop.f32.mrb[22].mxu0 }
 0x125   : > { %v1508_v38 = vadd.f32 %v1507_v36, %v1506_v33  ;;  %v1509_v39 = vpop.f32.mrb[22].mxu1  ;;  %v1446_v40 = vpop.f32.mrb[23].mxu0 }
 0x126   : > { %v821_v41 = vadd.f32 %v1444_v35, %v1874_v14  ;;  %v1447_v42 = vadd.f32 %v1446_v40, %v1445_v37  ;;  %v1510_v44 = vpop.f32.mrb[23].mxu1 }
 0x127   : > { %v1511_v46 = vadd.f32 %v1510_v44, %v1509_v39 }
 0x128   : > { %v824_v47 = vadd.f32 %v1447_v42, %v1874_v14  ;;  %v918_v48 = vadd.f32 %v1508_v38, %v821_v41 }
 0x12a   : > { %v1448_v49 = vpop.f32.mrb[24].mxu0  ;;  %v921_v50 = vadd.f32 %v1511_v46, %v824_v47 }
 0x12b   : > { %v1512_v51 = vpop.f32.mrb[24].mxu1  ;;  %v1449_v52 = vpop.f32.mrb[25].mxu0 }
 0x12c   : > { %v1450_v53 = vadd.f32 %v1449_v52, %v1448_v49  ;;  %v1513_v54 = vpop.f32.mrb[25].mxu1  ;;  %v1451_v55 = vpop.f32.mrb[26].mxu0 }
 0x12d   : > { %v1514_v56 = vadd.f32 %v1513_v54, %v1512_v51  ;;  %v1515_v57 = vpop.f32.mrb[26].mxu1  ;;  %v1452_v58 = vpop.f32.mrb[27].mxu0 }
 0x12e   : > { %v829_v60 = vadd.f32 %v1450_v53, %v1874_v14  ;;  %v1453_v62 = vadd.f32 %v1452_v58, %v1451_v55  ;;  %v1516_v63 = vpop.f32.mrb[27].mxu1 }
 0x12f   : > { %v1517_v0 = vadd.f32 %v1516_v63, %v1515_v57 }
 0x130   : > { %v832_v1 = vadd.f32 %v1453_v62, %v1874_v14  ;;  %v1908_v2 = vadd.f32 %v1514_v56, %v829_v60 }
 0x132   : > { %v1454_v3 = vpop.f32.mrb[28].mxu0  ;;  %v1910_v4 = vadd.f32 %v1517_v0, %v832_v1 }
 0x133   : > { %v1518_v5 = vpop.f32.mrb[28].mxu1  ;;  %v1455_v6 = vpop.f32.mrb[29].mxu0 }
 0x134   : > { %v1456_v7 = vadd.f32 %v1455_v6, %v1454_v3  ;;  %v1519_v8 = vpop.f32.mrb[29].mxu1  ;;  %v1457_v9 = vpop.f32.mrb[30].mxu0 }
 0x135   : > { %v1520_v10 = vadd.f32 %v1519_v8, %v1518_v5  ;;  %v1521_v12 = vpop.f32.mrb[30].mxu1  ;;  %v1458_v15 = vpop.f32.mrb[31].mxu0 }
 0x136   : > { %v837_v16 = vadd.f32 %v1456_v7, %v1874_v14  ;;  %v1459_v17 = vadd.f32 %v1458_v15, %v1457_v9  ;;  %v1522_v18 = vpop.f32.mrb[31].mxu1 }
 0x137   : > { %v1523_v19 = vadd.f32 %v1522_v18, %v1521_v12 }
 0x138   : > { %v840_v20 = vadd.f32 %v1459_v17, %v1874_v14  ;;  %v934_v21 = vadd.f32 %v1520_v10, %v837_v16 }
 0x13a   : > { %v1546_v22 = vpop.f32.mrb[32].mxu0  ;;  %v1914_v23 = vadd.f32 %v1523_v19, %v840_v20 }
 0x13b   : > { %v983_v24 = vadd.f32 %v1546_v22, %v1884_v43  ;;  %v1554_v25 = vpop.f32.mrb[32].mxu1  ;;  %v974_v26 = vpop.f32.mrb[33].mxu0 }
 0x13c   : > { %v1015_v28 = vadd.f32 %v1554_v25, %v918_v48  ;;  %v975_v31 = vadd.f32 %v974_v26, %v1878_v27  ;;  %v1006_v33 = vpop.f32.mrb[33].mxu1  ;;  %v1547_v34 = vpop.f32.mrb[34].mxu0 }
 0x13d   : > { %vm1039_vm1 = vcmp.ge.f32.partialorder %v983_v24, 0.0  ;;  %v1055_v35 = vmul.f32 0.2, %v983_v24  ;;  %v1007_v36 = vadd.f32 %v1006_v33, %v910_v30  ;;  %v986_v37 = vadd.f32 %v1547_v34, %v1886_v45  ;;  %v1555_v14 = vpop.f32.mrb[34].mxu1  ;;  %v977_v38 = vpop.f32.mrb[35].mxu0 }
 0x13e   : > { %vm1047_vm2 = vcmp.ge.f32.partialorder %v1015_v28, 0.0  ;;  %v1063_v39 = vmul.f32 0.2, %v1015_v28  ;;  %v1053_v40 = vmul.f32 0.2, %v975_v31  ;;  %vm1037_vm3 = vcmp.ge.f32.partialorder %v975_v31, 0.0 }
 0x13f   : > { %vm1040_vm4 = vcmp.ge.f32.partialorder %v986_v37, 0.0  ;;  %v1009_v43 = vpop.f32.mrb[35].mxu1  ;;  %v1071_v41 = vsel %vm1039_vm1, %v983_v24, %v1055_v35  ;;  %vm1045_vm5 = vcmp.ge.f32.partialorder %v1007_v36, 0.0  ;;  %v1056_v42 = vmul.f32 0.2, %v986_v37 }
 0x140   : > { %v1018_v27 = vadd.f32 %v1555_v14, %v921_v50  ;;  %v1079_v44 = vsel %vm1047_vm2, %v1015_v28, %v1063_v39  ;;  %v1061_v46 = vmul.f32 0.2, %v1007_v36  ;;  %v978_v47 = vadd.f32 %v977_v38, %v1880_v29 }
 0x141   : > { %v1010_v30 = vadd.f32 %v1009_v43, %v1902_v32  ;;  %v1069_v45 = vsel %vm1037_vm3, %v975_v31, %v1053_v40  ;;  %v1072_v48 = vsel %vm1040_vm4, %v986_v37, %v1056_v42 }
 0x142   : > { %vm1048_vm6 = vcmp.ge.f32.partialorder %v1018_v27, 0.0  ;;  %v1064_v49 = vmul.f32 0.2, %v1018_v27  ;;  %v1550_v51 = vpop.f32.mrb[36].mxu0  ;;  %v1357_v52 = vpack.c.bf16 %v1072_v48, %v1071_v41  ;;  %vm1038_vm7 = vcmp.ge.f32.partialorder %v978_v47, 0.0 }
 0x143   : > { %v1054_v50 = vmul.f32 0.2, %v978_v47  ;;  %vm1046_vm8 = vcmp.ge.f32.partialorder %v1010_v30, 0.0  ;;  %v1558_v53 = vpop.f32.mrb[36].mxu1  ;;  %v990_v54 = vpop.f32.mrb[37].mxu0  ;;  %v999_v32 = vadd.f32 %v1550_v51, %v1896_v11  ;;  %v1077_v5 = vsel %vm1045_vm5, %v1007_v36, %v1061_v46 }
 0x144   : > { %v1080_v29 = vsel %vm1048_vm6, %v1018_v27, %v1064_v49  ;;  %v1062_v55 = vmul.f32 0.2, %v1010_v30  ;;  %v1031_v56 = vadd.f32 %v1558_v53, %v934_v21  ;;  %v1022_v57 = vpop.f32.mrb[37].mxu1  ;;  %v1551_v58 = vpop.f32.mrb[38].mxu0  ;;  %1389 = vst [vmem:[%s1925_s21 + $0x8] sm:$0xff] %v1357_v52   ;;  %v991_v63 = vadd.f32 %v990_v54, %v1890_v59 }
 0x145   : > { %v1377_v60 = vpack.c.bf16 %v1080_v29, %v1079_v44  ;;  %v1070_v62 = vsel %vm1038_vm7, %v978_v47, %v1054_v50  ;;  %v1023_v0 = vadd.f32 %v1022_v57, %v1908_v2  ;;  %v1559_v1 = vpop.f32.mrb[38].mxu1  ;;  %v993_v3 = vpop.f32.mrb[39].mxu0  ;;  %v1059_v7 = vmul.f32 0.2, %v999_v32 }
 0x146   : > { %v1352_v6 = vpack.c.bf16 %v1070_v62, %v1069_v45  ;;  %v1078_v11 = vsel %vm1046_vm8, %v1010_v30, %v1062_v55  ;;  %v1025_v8 = vpop.f32.mrb[39].mxu1  ;;  %vm1043_vm9 = vcmp.ge.f32.partialorder %v999_v32, 0.0  ;;  %vm1051_vm10 = vcmp.ge.f32.partialorder %v1031_v56, 0.0 }
 0x147   : > { %1393 = vst [vmem:[%s1925_s21 + $0x28] sm:$0xff] %v1377_v60   ;;  %v1372_v9 = vpack.c.bf16 %v1078_v11, %v1077_v5  ;;  %v1067_v10 = vmul.f32 0.2, %v1031_v56  ;;  %vm1041_vm11 = vcmp.ge.f32.partialorder %v991_v63, 0.0  ;;  %v1057_v59 = vmul.f32 0.2, %v991_v63 }
 0x148   : > { %1353 = vst [vmem:[%s1925_s21] sm:$0xff] %v1352_v6   ;;  %v1065_v2 = vmul.f32 0.2, %v1023_v0  ;;  %v1002_v12 = vadd.f32 %v1551_v58, %v1898_v13  ;;  %v1034_v15 = vadd.f32 %v1559_v1, %v1914_v23  ;;  %v994_v16 = vadd.f32 %v993_v3, %v1892_v61 }
 0x149   : > { %1392 = vst [vmem:[%s1925_s21 + $0x20] sm:$0xff] %v1372_v9   ;;  %v1075_v17 = vsel %vm1043_vm9, %v999_v32, %v1059_v7  ;;  %v1083_v18 = vsel %vm1051_vm10, %v1031_v56, %v1067_v10  ;;  %vm1049_vm12 = vcmp.ge.f32.partialorder %v1023_v0, 0.0  ;;  %v1026_v19 = vadd.f32 %v1025_v8, %v1910_v4 }
 0x14a   : > { %vm1044_vm13 = vcmp.ge.f32.partialorder %v1002_v12, 0.0  ;;  %v1060_v20 = vmul.f32 0.2, %v1002_v12  ;;  %vm1052_vm14 = vcmp.ge.f32.partialorder %v1034_v15, 0.0  ;;  %v1068_v21 = vmul.f32 0.2, %v1034_v15 }
 0x14b   : > { %vm1042_vm15 = vcmp.ge.f32.partialorder %v994_v16, 0.0  ;;  %v1058_v22 = vmul.f32 0.2, %v994_v16  ;;  %vm1050_vm0 = vcmp.ge.f32.partialorder %v1026_v19, 0.0  ;;  %v1066_v13 = vmul.f32 0.2, %v1026_v19 }
 0x14c   : > { %v1073_v23 = vsel %vm1041_vm11, %v991_v63, %v1057_v59  ;;  %v1081_v61 = vsel %vm1049_vm12, %v1023_v0, %v1065_v2  ;;  %v1076_v24 = vsel %vm1044_vm13, %v1002_v12, %v1060_v20  ;;  %v1084_v25 = vsel %vm1052_vm14, %v1034_v15, %v1068_v21 }
 0x14d   : > { %v1367_v26 = vpack.c.bf16 %v1076_v24, %v1075_v17  ;;  %v1387_v28 = vpack.c.bf16 %v1084_v25, %v1083_v18  ;;  %v1074_v4 = vsel %vm1042_vm15, %v994_v16, %v1058_v22  ;;  %v1082_v31 = vsel %vm1050_vm0, %v1026_v19, %v1066_v13 }
 0x14e   : > { %v1362_v33 = vpack.c.bf16 %v1074_v4, %v1073_v23  ;;  %v1382_v34 = vpack.c.bf16 %v1082_v31, %v1081_v61 }
 0x14f   : > { %1391 = vst [vmem:[%s1925_s21 + $0x18] sm:$0xff] %v1367_v26   ;;  %1395 = vst [vmem:[%s1925_s21 + $0x38] sm:$0xff] %v1387_v28  }
 0x150   : > { %1390 = vst [vmem:[%s1925_s21 + $0x10] sm:$0xff] %v1362_v33   ;;  %1394 = vst [vmem:[%s1925_s21 + $0x30] sm:$0xff] %v1382_v34  }
 0x151 PF: > { %s13_s12 = sadd.s32 1, %s1675_s12  }
 0x152   : > { %p10_p4 = scmp.ge.s32.totalorder %s13_s12, 4  }
 0x154   :  { %12 = sbr.rel (!%p10_p4) target bundleno = 1 (0x1), region = 62 }

// kernel: encoder_forward.8
= control target key start
LH: loop header
LB: loop body
LE: loop exit
PB: predicated region body
PF: predicated region fallthrough
CT: control target
= control target key end

     0   :  { %s2063_s12 = smov 0   ;;  %s2541_s0 = inlined_call_operand.vmem [shape: bf16[64,1152], index: 0, kind: input, shape index: {}]   ;;  %s2542_s1 = inlined_call_operand.vmem [shape: bf16[1152,256], index: 1, kind: input, shape index: {}]   ;;  %s2543_s2 = inlined_call_operand.vmem [shape: f32[1,256], index: 2, kind: input, shape index: {}]   ;;  %s2544_s3 = inlined_call_operand.vmem [shape: bf16[64,256], index: 3, kind: output, shape index: {}]  }
   0x1 LB: > { %s1543_s13 = sadd.s32 4294967295, %s2040_s12   ;;  %p1547_p0 = scmp.ge.s32.totalorder %s2040_s12, 1  ;;  %s2040_s12 = sphi %s2063_s12, %s13_s12  }
   0x2   : > { %p139_p1 = scmp.lt.s32.totalorder %s2040_s12, 3 }
   0x4   : > { %p140_p2 = pnand %p1547_p0, %p139_p1 }
   0x5   : > { %v1792_v0 = vld [vmem:[%s2542_s1 + $0x4] ss:$8 sps:$4 sm:$0xff] (!%p140_p2)   ;;  %v1796_v2 = vld [vmem:[%s2542_s1] ss:$8 sps:$4 sm:$0xff] (!%p140_p2)   ;;  %v1798_v4 = vld [vmem:[%s2542_s1 + $0x14] ss:$8 sps:$4 sm:$0xff] (!%p140_p2)  }
   0x6   : > { %143 = sbr.rel (%p140_p2) target bundleno = 392 (0x188), region = 32  ;;  %v1794_v1 = vld [vmem:[%s2542_s1 + $0x204] ss:$8 sps:$4 sm:$0xff] (!%p140_p2)   ;;  %1168 = vmatprep.subr.bf16.mxu1 (!%p140_p2), %v1792_v0  ;;  %v1797_v3 = vld [vmem:[%s2542_s1 + $0x200] ss:$8 sps:$4 sm:$0xff] (!%p140_p2)   ;;  %s1548_s24 = sshll.u32 (!%p140_p2), %s1543_s13, 2 }
   0x7   : > { %1274 = vmatprep.subr.bf16.mxu0 (!%p140_p2), %v1794_v1  ;;  %1169 = vmatpush1.bf16.msra.mxu1 (!%p140_p2), %v1796_v2  ;;  %v1800_v5 = vld [vmem:[%s2542_s1 + $0x214] ss:$8 sps:$4 sm:$0xff] (!%p140_p2)   ;;  %v1802_v6 = vld [vmem:[%s2542_s1 + $0x10] ss:$8 sps:$4 sm:$0xff] (!%p140_p2)   ;;  %v1804_v8 = vld [vmem:[%s2542_s1 + $0x24] ss:$8 sps:$4 sm:$0xff] (!%p140_p2)  }
   0x8   : > { %1275 = vmatpush1.bf16.msra.mxu0 (!%p140_p2), %v1797_v3  ;;  %1170 = vmatprep.subr.bf16.mxu1 (!%p140_p2), %v1798_v4  ;;  %v1803_v7 = vld [vmem:[%s2542_s1 + $0x210] ss:$8 sps:$4 sm:$0xff] (!%p140_p2)   ;;  %v1806_v9 = vld [vmem:[%s2542_s1 + $0x224] ss:$8 sps:$4 sm:$0xff] (!%p140_p2)   ;;  %v1808_v10 = vld [vmem:[%s2542_s1 + $0x20] ss:$8 sps:$4 sm:$0xff] (!%p140_p2)  }
   0x9   : > { %1276 = vmatprep.subr.bf16.mxu0 (!%p140_p2), %v1800_v5  ;;  %v1809_v11 = vld [vmem:[%s2542_s1 + $0x220] ss:$8 sps:$4 sm:$0xff] (!%p140_p2)   ;;  %v1810_v12 = vld [vmem:[%s2542_s1 + $0x34] ss:$8 sps:$4 sm:$0xff] (!%p140_p2)   ;;  %v1814_v14 = vld [vmem:[%s2542_s1 + $0x30] ss:$8 sps:$4 sm:$0xff] (!%p140_p2)  }
   0xa   : > { %v1812_v13 = vld [vmem:[%s2542_s1 + $0x234] ss:$8 sps:$4 sm:$0xff] (!%p140_p2)   ;;  %v1815_v15 = vld [vmem:[%s2542_s1 + $0x230] ss:$8 sps:$4 sm:$0xff] (!%p140_p2)   ;;  %v1816_v16 = vld [vmem:[%s2542_s1 + $0x44] ss:$8 sps:$4 sm:$0xff] (!%p140_p2)  }
   0xb   : > { %1171 = vmatpush1.bf16.msra.mxu1 (!%p140_p2), %v1802_v6  ;;  %v1818_v17 = vld [vmem:[%s2542_s1 + $0x244] ss:$8 sps:$4 sm:$0xff] (!%p140_p2)   ;;  %v1820_v18 = vld [vmem:[%s2542_s1 + $0x40] ss:$8 sps:$4 sm:$0xff] (!%p140_p2)   ;;  %v1822_v20 = vld [vmem:[%s2542_s1 + $0x54] ss:$8 sps:$4 sm:$0xff] (!%p140_p2)  }
   0xc   : > { %1277 = vmatpush1.bf16.msra.mxu0 (!%p140_p2), %v1803_v7  ;;  %1172 = vmatprep.subr.bf16.mxu1 (!%p140_p2), %v1804_v8  ;;  %v1821_v19 = vld [vmem:[%s2542_s1 + $0x240] ss:$8 sps:$4 sm:$0xff] (!%p140_p2)   ;;  %v1824_v21 = vld [vmem:[%s2542_s1 + $0x254] ss:$8 sps:$4 sm:$0xff] (!%p140_p2)   ;;  %v1826_v22 = vld [vmem:[%s2542_s1 + $0x50] ss:$8 sps:$4 sm:$0xff] (!%p140_p2)  }
   0xd   : > { %1278 = vmatprep.subr.bf16.mxu0 %v1806_v9  ;;  %v1827_v23 = vld [vmem:[%s2542_s1 + $0x250] ss:$8 sps:$4 sm:$0xff]   ;;  %v1828_v24 = vld [vmem:[%s2542_s1 + $0x64] ss:$8 sps:$4 sm:$0xff]   ;;  %v1832_v26 = vld [vmem:[%s2542_s1 + $0x60] ss:$8 sps:$4 sm:$0xff]  }
   0xe   : > { %v1830_v25 = vld [vmem:[%s2542_s1 + $0x264] ss:$8 sps:$4 sm:$0xff]   ;;  %v1833_v27 = vld [vmem:[%s2542_s1 + $0x260] ss:$8 sps:$4 sm:$0xff]   ;;  %v1834_v28 = vld [vmem:[%s2542_s1 + $0x74] ss:$8 sps:$4 sm:$0xff]  }
   0xf   : > { %1173 = vmatpush1.bf16.msra.mxu1 %v1808_v10  ;;  %v1836_v29 = vld [vmem:[%s2542_s1 + $0x274] ss:$8 sps:$4 sm:$0xff]   ;;  %v1838_v30 = vld [vmem:[%s2542_s1 + $0x70] ss:$8 sps:$4 sm:$0xff]   ;;  %v1840_v32 = vld [vmem:[%s2542_s1 + $0x84] ss:$8 sps:$4 sm:$0xff]  }
  0x10   : > { %1279 = vmatpush1.bf16.msra.mxu0 %v1809_v11  ;;  %1174 = vmatprep.subr.bf16.mxu1 %v1810_v12  ;;  %v1839_v31 = vld [vmem:[%s2542_s1 + $0x270] ss:$8 sps:$4 sm:$0xff]   ;;  %p166_p3 = scmp.lt.s32.totalorder %s1548_s24, 7  ;;  %v1842_v33 = vld [vmem:[%s2542_s1 + $0x284] ss:$8 sps:$4 sm:$0xff]  }
  0x11   : > { %1280 = vmatprep.subr.bf16.mxu0 %v1812_v13  ;;  %v1844_v34 = vld [vmem:[%s2542_s1 + $0x80] ss:$8 sps:$4 sm:$0xff]   ;;  %v1846_v36 = vld [vmem:[%s2542_s1 + $0x94] ss:$8 sps:$4 sm:$0xff]   ;;  %v1850_v38 = vld [vmem:[%s2542_s1 + $0x90] ss:$8 sps:$4 sm:$0xff]  }
  0x12   : > { %v1845_v35 = vld [vmem:[%s2542_s1 + $0x280] ss:$8 sps:$4 sm:$0xff]   ;;  %s2546_s24 = smov (!%p166_p3, %s1548_s24), 7  ;;  %v1848_v37 = vld [vmem:[%s2542_s1 + $0x294] ss:$8 sps:$4 sm:$0xff]  }
  0x13   : > { %1175 = vmatpush1.bf16.msra.mxu1 %v1814_v14  ;;  %v1851_v39 = vld [vmem:[%s2542_s1 + $0x290] ss:$8 sps:$4 sm:$0xff]   ;;  %v1852_v40 = vld [vmem:[%s2542_s1 + $0xa4] ss:$8 sps:$4 sm:$0xff]   ;;  %s1782_s21 = smul.u32 36, %s2546_s24 }
  0x14   : > { %1281 = vmatpush1.bf16.msra.mxu0 %v1815_v15  ;;  %1176 = vmatprep.subr.bf16.mxu1 %v1816_v16  ;;  %v1854_v41 = vld [vmem:[%s2542_s1 + $0x2a4] ss:$8 sps:$4 sm:$0xff]   ;;  %v1856_v42 = vld [vmem:[%s2542_s1 + $0xa0] ss:$8 sps:$4 sm:$0xff]   ;;  %v1858_v44 = vld [vmem:[%s2542_s1 + $0xb4] ss:$8 sps:$4 sm:$0xff]  }
  0x15   : > { %1282 = vmatprep.subr.bf16.mxu0 %v1818_v17  ;;  %v1857_v43 = vld [vmem:[%s2542_s1 + $0x2a0] ss:$8 sps:$4 sm:$0xff]   ;;  %s2214_s13 = scalar_lea.vmem %s2541_s0, %s1782_s21  ;;  %v1860_v45 = vld [vmem:[%s2542_s1 + $0x2b4] ss:$8 sps:$4 sm:$0xff]   ;;  %v1862_v46 = vld [vmem:[%s2542_s1 + $0xb0] ss:$8 sps:$4 sm:$0xff]  }
  0x16   : > { %v1863_v47 = vld [vmem:[%s2542_s1 + $0x2b0] ss:$8 sps:$4 sm:$0xff]   ;;  %v1890_v48 = vld [vmem:[%s2214_s13 + $0x4] ss:$36 sps:$4 sm:$0xff]   ;;  %v1870_v54 = vld [vmem:[%s2542_s1 + $0xd4] ss:$8 sps:$4 sm:$0xff]  }
  0x17   : > { %1177 = vmatpush1.bf16.msra.mxu1 %v1820_v18  ;;  %v1864_v49 = vld [vmem:[%s2542_s1 + $0xc4] ss:$8 sps:$4 sm:$0xff]   ;;  %1200 = vmatprep.mubr.bf16.mxu1 %v1890_v48  ;;  %v1896_v51 = vld [vmem:[%s2214_s13 + $0x14] ss:$36 sps:$4 sm:$0xff]   ;;  %v1868_v52 = vld [vmem:[%s2542_s1 + $0xc0] ss:$8 sps:$4 sm:$0xff]  }
  0x18   : > { %1283 = vmatpush1.bf16.msra.mxu0 %v1821_v19  ;;  %1178 = vmatprep.subr.bf16.mxu1 %v1822_v20  ;;  %v1866_v50 = vld [vmem:[%s2542_s1 + $0x2c4] ss:$8 sps:$4 sm:$0xff]   ;;  %v1869_v53 = vld [vmem:[%s2542_s1 + $0x2c0] ss:$8 sps:$4 sm:$0xff]   ;;  %v1872_v55 = vld [vmem:[%s2542_s1 + $0x2d4] ss:$8 sps:$4 sm:$0xff]  }
  0x19   : > { %1284 = vmatprep.subr.bf16.mxu0 %v1824_v21  ;;  %1306 = vmatprep.mubr.bf16.mxu0 %v1896_v51  ;;  %v1874_v56 = vld [vmem:[%s2542_s1 + $0xd0] ss:$8 sps:$4 sm:$0xff]   ;;  %v1876_v58 = vld [vmem:[%s2542_s1 + $0xe4] ss:$8 sps:$4 sm:$0xff]   ;;  %v1880_v60 = vld [vmem:[%s2542_s1 + $0xe0] ss:$8 sps:$4 sm:$0xff]  }
  0x1a   : > { %v1875_v57 = vld [vmem:[%s2542_s1 + $0x2d0] ss:$8 sps:$4 sm:$0xff]   ;;  %v1878_v59 = vld [vmem:[%s2542_s1 + $0x2e4] ss:$8 sps:$4 sm:$0xff]   ;;  %v1881_v61 = vld [vmem:[%s2542_s1 + $0x2e0] ss:$8 sps:$4 sm:$0xff]  }
  0x1b   : > { %1179 = vmatpush1.bf16.msra.mxu1 %v1826_v22  ;;  %v1882_v62 = vld [vmem:[%s2542_s1 + $0xf4] ss:$8 sps:$4 sm:$0xff]   ;;  %v1886_v0 = vld [vmem:[%s2542_s1 + $0xf0] ss:$8 sps:$4 sm:$0xff]   ;;  %v1893_v2 = vld [vmem:[%s2542_s1 + $0x104] ss:$8 sps:$4 sm:$0xff]  }
  0x1c   : > { %1285 = vmatpush1.bf16.msra.mxu0 %v1827_v23  ;;  %1180 = vmatprep.subr.bf16.mxu1 %v1828_v24  ;;  %v1884_v63 = vld [vmem:[%s2542_s1 + $0x2f4] ss:$8 sps:$4 sm:$0xff]   ;;  %v1887_v1 = vld [vmem:[%s2542_s1 + $0x2f0] ss:$8 sps:$4 sm:$0xff]   ;;  %v1899_v3 = vld [vmem:[%s2542_s1 + $0x304] ss:$8 sps:$4 sm:$0xff]  }
  0x1d   : > { %1286 = vmatprep.subr.bf16.mxu0 %v1830_v25  ;;  %v1888_v4 = vld [vmem:[%s2214_s13] ss:$36 sps:$4 sm:$0xff]   ;;  %v1894_v6 = vld [vmem:[%s2214_s13 + $0x10] ss:$36 sps:$4 sm:$0xff]  }
  0x1e   : > { %v1891_v5 = vld [vmem:[%s2542_s1 + $0x100] ss:$8 sps:$4 sm:$0xff]   ;;  %v1902_v8 = vld [vmem:[%s2542_s1 + $0x114] ss:$8 sps:$4 sm:$0xff]   ;;  %v1900_v10 = vld [vmem:[%s2542_s1 + $0x110] ss:$8 sps:$4 sm:$0xff]  }
  0x1f   : > { %1181 = vmatpush1.bf16.msra.mxu1 %v1832_v26  ;;  %v1897_v7 = vld [vmem:[%s2542_s1 + $0x300] ss:$8 sps:$4 sm:$0xff]   ;;  %v1905_v9 = vld [vmem:[%s2542_s1 + $0x314] ss:$8 sps:$4 sm:$0xff]   ;;  %v1903_v11 = vld [vmem:[%s2542_s1 + $0x310] ss:$8 sps:$4 sm:$0xff]  }
  0x20   : > { %1287 = vmatpush1.bf16.msra.mxu0 %v1833_v27  ;;  %1182 = vmatprep.subr.bf16.mxu1 %v1834_v28  ;;  %v1908_v12 = vld [vmem:[%s2542_s1 + $0x124] ss:$8 sps:$4 sm:$0xff]   ;;  %v1906_v14 = vld [vmem:[%s2542_s1 + $0x120] ss:$8 sps:$4 sm:$0xff]   ;;  %v1914_v16 = vld [vmem:[%s2542_s1 + $0x134] ss:$8 sps:$4 sm:$0xff]  }
  0x21   : > { %1288 = vmatprep.subr.bf16.mxu0 %v1836_v29  ;;  %v1911_v13 = vld [vmem:[%s2542_s1 + $0x324] ss:$8 sps:$4 sm:$0xff]   ;;  %v1909_v15 = vld [vmem:[%s2542_s1 + $0x320] ss:$8 sps:$4 sm:$0xff]   ;;  %v1917_v17 = vld [vmem:[%s2542_s1 + $0x334] ss:$8 sps:$4 sm:$0xff]  }
  0x22   : > { %v1912_v18 = vld [vmem:[%s2542_s1 + $0x130] ss:$8 sps:$4 sm:$0xff]   ;;  %v1920_v20 = vld [vmem:[%s2542_s1 + $0x144] ss:$8 sps:$4 sm:$0xff]   ;;  %v1918_v22 = vld [vmem:[%s2542_s1 + $0x140] ss:$8 sps:$4 sm:$0xff]  }
  0x23   : > { %1183 = vmatpush1.bf16.msra.mxu1 %v1838_v30  ;;  %v1915_v19 = vld [vmem:[%s2542_s1 + $0x330] ss:$8 sps:$4 sm:$0xff]   ;;  %v1923_v21 = vld [vmem:[%s2542_s1 + $0x344] ss:$8 sps:$4 sm:$0xff]   ;;  %v1921_v23 = vld [vmem:[%s2542_s1 + $0x340] ss:$8 sps:$4 sm:$0xff]  }
  0x24   : > { %1289 = vmatpush1.bf16.msra.mxu0 %v1839_v31  ;;  %1184 = vmatprep.subr.bf16.mxu1 %v1840_v32  ;;  %v1926_v24 = vld [vmem:[%s2542_s1 + $0x154] ss:$8 sps:$4 sm:$0xff]   ;;  %v1924_v26 = vld [vmem:[%s2542_s1 + $0x150] ss:$8 sps:$4 sm:$0xff]   ;;  %v1932_v28 = vld [vmem:[%s2542_s1 + $0x164] ss:$8 sps:$4 sm:$0xff]  }
  0x25   : > { %1290 = vmatprep.subr.bf16.mxu0 %v1842_v33  ;;  %v1929_v25 = vld [vmem:[%s2542_s1 + $0x354] ss:$8 sps:$4 sm:$0xff]   ;;  %v1927_v27 = vld [vmem:[%s2542_s1 + $0x350] ss:$8 sps:$4 sm:$0xff]   ;;  %v1982_v31 = vld [vmem:[%s2214_s13 + $0x48] ss:$36 sps:$4 sm:$0xff]  }
  0x26   : > { %v1978_v29 = vld [vmem:[%s2214_s13 + $0x4c] ss:$36 sps:$4 sm:$0xff]   ;;  %v1980_v30 = vld [vmem:[%s2214_s13 + $0x5c] ss:$36 sps:$4 sm:$0xff]  }
  0x27   : > { %1185 = vmatpush1.bf16.msra.mxu1 %v1844_v34  ;;  %v1935_v32 = vld [vmem:[%s2542_s1 + $0x364] ss:$8 sps:$4 sm:$0xff]   ;;  %v1986_v33 = vld [vmem:[%s2214_s13 + $0x58] ss:$36 sps:$4 sm:$0xff]   ;;  %v1930_v34 = vld [vmem:[%s2542_s1 + $0x160] ss:$8 sps:$4 sm:$0xff]  }
  0x28   : > { %1291 = vmatpush1.bf16.msra.mxu0 %v1845_v35  ;;  %1186 = vmatprep.subr.bf16.mxu1 %v1846_v36  ;;  %v1933_v35 = vld [vmem:[%s2542_s1 + $0x360] ss:$8 sps:$4 sm:$0xff]   ;;  %v1938_v36 = vld [vmem:[%s2542_s1 + $0x174] ss:$8 sps:$4 sm:$0xff]   ;;  %v1948_v48 = vld [vmem:[%s2542_s1 + $0x190] ss:$8 sps:$4 sm:$0xff]  }
  0x29   : > { %1292 = vmatprep.subr.bf16.mxu0 %v1848_v37  ;;  %v1941_v37 = vld [vmem:[%s2542_s1 + $0x374] ss:$8 sps:$4 sm:$0xff]   ;;  %v1959_v51 = vld [vmem:[%s2542_s1 + $0x3a4] ss:$8 sps:$4 sm:$0xff]  }
  0x2b   : > { %1187 = vmatpush1.bf16.msra.mxu1 %v1850_v38  ;;  %v1936_v38 = vld [vmem:[%s2542_s1 + $0x170] ss:$8 sps:$4 sm:$0xff]  }
  0x2c   : > { %1293 = vmatpush1.bf16.msra.mxu0 %v1851_v39  ;;  %1188 = vmatprep.subr.bf16.mxu1 %v1852_v40  ;;  %v1939_v39 = vld [vmem:[%s2542_s1 + $0x370] ss:$8 sps:$4 sm:$0xff]   ;;  %v1944_v40 = vld [vmem:[%s2542_s1 + $0x184] ss:$8 sps:$4 sm:$0xff]  }
  0x2d   : > { %1294 = vmatprep.subr.bf16.mxu0 %v1854_v41  ;;  %v1998_v41 = vld [vmem:[%s2214_s13 + $0xc] ss:$36 sps:$4 sm:$0xff]  }
  0x2f   : > { %1189 = vmatpush1.bf16.msra.mxu1 %v1856_v42  ;;  %v1947_v42 = vld [vmem:[%s2542_s1 + $0x384] ss:$8 sps:$4 sm:$0xff]  }
  0x30   : > { %1295 = vmatpush1.bf16.msra.mxu0 %v1857_v43  ;;  %1190 = vmatprep.subr.bf16.mxu1 %v1858_v44  ;;  %v2001_v43 = vld [vmem:[%s2214_s13 + $0x1c] ss:$36 sps:$4 sm:$0xff]  }
  0x31   : > { %1296 = vmatprep.subr.bf16.mxu0 %v1860_v45  ;;  %v1942_v44 = vld [vmem:[%s2542_s1 + $0x180] ss:$8 sps:$4 sm:$0xff]  }
  0x32   : > { %v1945_v45 = vld [vmem:[%s2542_s1 + $0x380] ss:$8 sps:$4 sm:$0xff]  }
  0x33   : > { %1191 = vmatpush1.bf16.msra.mxu1 %v1862_v46  ;;  %v1950_v46 = vld [vmem:[%s2542_s1 + $0x194] ss:$8 sps:$4 sm:$0xff]  }
  0x34   : > { %1297 = vmatpush1.bf16.msra.mxu0 %v1863_v47  ;;  %1192 = vmatprep.subr.bf16.mxu1 %v1864_v49  ;;  %v1953_v47 = vld [vmem:[%s2542_s1 + $0x394] ss:$8 sps:$4 sm:$0xff]   ;;  %v1951_v49 = vld [vmem:[%s2542_s1 + $0x390] ss:$8 sps:$4 sm:$0xff]  }
  0x35   : > { %1298 = vmatprep.subr.bf16.mxu0 %v1866_v50  ;;  %v1956_v50 = vld [vmem:[%s2542_s1 + $0x1a4] ss:$8 sps:$4 sm:$0xff]  }
  0x37   : > { %1193 = vmatpush1.bf16.msra.mxu1 %v1868_v52  ;;  %v1954_v52 = vld [vmem:[%s2542_s1 + $0x1a0] ss:$8 sps:$4 sm:$0xff]  }
  0x38   : > { %1299 = vmatpush1.bf16.msra.mxu0 %v1869_v53  ;;  %1194 = vmatprep.subr.bf16.mxu1 %v1870_v54  ;;  %v1957_v53 = vld [vmem:[%s2542_s1 + $0x3a0] ss:$8 sps:$4 sm:$0xff]   ;;  %v1962_v54 = vld [vmem:[%s2542_s1 + $0x1b4] ss:$8 sps:$4 sm:$0xff]  }
  0x39   : > { %1300 = vmatprep.subr.bf16.mxu0 %v1872_v55  ;;  %v1965_v55 = vld [vmem:[%s2542_s1 + $0x3b4] ss:$8 sps:$4 sm:$0xff]  }
  0x3b   : > { %1195 = vmatpush1.bf16.msra.mxu1 %v1874_v56  ;;  %v1960_v56 = vld [vmem:[%s2542_s1 + $0x1b0] ss:$8 sps:$4 sm:$0xff]  }
  0x3c   : > { %1301 = vmatpush1.bf16.msra.mxu0 %v1875_v57  ;;  %1196 = vmatprep.subr.bf16.mxu1 %v1876_v58  ;;  %v1963_v57 = vld [vmem:[%s2542_s1 + $0x3b0] ss:$8 sps:$4 sm:$0xff]   ;;  %v1968_v58 = vld [vmem:[%s2542_s1 + $0x1c4] ss:$8 sps:$4 sm:$0xff]  }
  0x3d   : > { %1302 = vmatprep.subr.bf16.mxu0 %v1878_v59  ;;  %v1971_v59 = vld [vmem:[%s2542_s1 + $0x3c4] ss:$8 sps:$4 sm:$0xff]  }
  0x3f   : > { %1197 = vmatpush1.bf16.msra.mxu1 %v1880_v60  ;;  %v1966_v60 = vld [vmem:[%s2542_s1 + $0x1c0] ss:$8 sps:$4 sm:$0xff]  }
  0x40   : > { %1303 = vmatpush1.bf16.msra.mxu0 %v1881_v61  ;;  %1198 = vmatprep.subr.bf16.mxu1 %v1882_v62  ;;  %v1969_v61 = vld [vmem:[%s2542_s1 + $0x3c0] ss:$8 sps:$4 sm:$0xff]   ;;  %v1974_v62 = vld [vmem:[%s2542_s1 + $0x1d4] ss:$8 sps:$4 sm:$0xff]  }
  0x41   : > { %1304 = vmatprep.subr.bf16.mxu0 %v1884_v63  ;;  %v1977_v63 = vld [vmem:[%s2542_s1 + $0x3d4] ss:$8 sps:$4 sm:$0xff]  }
  0x43   : > { %1199 = vmatpush1.bf16.msra.mxu1 %v1886_v0  ;;  %v1972_v0 = vld [vmem:[%s2542_s1 + $0x1d0] ss:$8 sps:$4 sm:$0xff]  }
  0x44   : > { %1305 = vmatpush1.bf16.msra.mxu0 %v1887_v1  ;;  %1221 = vmatprep.subr.bf16.mxu1 %v1893_v2  ;;  %v1975_v1 = vld [vmem:[%s2542_s1 + $0x3d0] ss:$8 sps:$4 sm:$0xff]   ;;  %v1985_v2 = vld [vmem:[%s2542_s1 + $0x1e4] ss:$8 sps:$4 sm:$0xff]  }
  0x45   : > { %1327 = vmatprep.subr.bf16.mxu0 %v1899_v3  ;;  %v1989_v3 = vld [vmem:[%s2542_s1 + $0x3e4] ss:$8 sps:$4 sm:$0xff]  }
  0x46   : > { %1201 = vmatmul.mubr.bf16.vlgmr.msra.gmra.mrb[0].mxu1 %v1888_v4  ;;  %v1983_v4 = vld [vmem:[%s2542_s1 + $0x1e0] ss:$8 sps:$4 sm:$0xff]  }
  0x47   : > { %1307 = vmatmul.mubr.bf16.vlgmr.msra.gmra.mrb[0].mxu0 %v1894_v6  ;;  %1222 = vmatpush1.bf16.msra.mxu1 %v1891_v5  ;;  %v1987_v5 = vld [vmem:[%s2542_s1 + $0x3e0] ss:$8 sps:$4 sm:$0xff]   ;;  %v1992_v6 = vld [vmem:[%s2542_s1 + $0x1f4] ss:$8 sps:$4 sm:$0xff]  }
  0x48   : > { %1328 = vmatpush1.bf16.msra.mxu0 %v1897_v7  ;;  %1223 = vmatprep.subr.bf16.mxu1 %v1902_v8  ;;  %v1995_v7 = vld [vmem:[%s2542_s1 + $0x3f4] ss:$8 sps:$4 sm:$0xff]   ;;  %v1990_v8 = vld [vmem:[%s2542_s1 + $0x1f0] ss:$8 sps:$4 sm:$0xff]  }
  0x49   : > { %1329 = vmatprep.subr.bf16.mxu0 %v1905_v9  ;;  %1210 = vmatprep.mubr.bf16.mxu1 %v1978_v29  ;;  %v1993_v9 = vld [vmem:[%s2542_s1 + $0x3f0] ss:$8 sps:$4 sm:$0xff]   ;;  %v2028_v29 = vld [vmem:[%s2542_s1 + $0x464] ss:$8 sps:$4 sm:$0xff]  }
  0x4a   : > { %1316 = vmatprep.mubr.bf16.mxu0 %v1980_v30  ;;  %v2026_v30 = vld [vmem:[%s2542_s1 + $0x460] ss:$8 sps:$4 sm:$0xff]  }
  0x4b   : > { %1224 = vmatpush1.bf16.msra.mxu1 %v1900_v10  ;;  %v2004_v10 = vld [vmem:[%s2542_s1 + $0x404] ss:$8 sps:$4 sm:$0xff]  }
  0x4c   : > { %1330 = vmatpush1.bf16.msra.mxu0 %v1903_v11  ;;  %1225 = vmatprep.subr.bf16.mxu1 %v1908_v12  ;;  %v1996_v11 = vld [vmem:[%s2214_s13 + $0x8] ss:$36 sps:$4 sm:$0xff]   ;;  %v1999_v12 = vld [vmem:[%s2214_s13 + $0x18] ss:$36 sps:$4 sm:$0xff]  }
  0x4d   : > { %1331 = vmatprep.subr.bf16.mxu0 %v1911_v13  ;;  %v2002_v13 = vld [vmem:[%s2542_s1 + $0x400] ss:$8 sps:$4 sm:$0xff]  }
  0x4e   : > { %1211 = vmatmul.mubr.bf16.gmra.mrb[4].mxu1 %v1982_v31  ;;  %v2031_v31 = vld [vmem:[%s2542_s1 + $0x474] ss:$8 sps:$4 sm:$0xff]  }
  0x4f   : > { %1226 = vmatpush1.bf16.msra.mxu1 %v1906_v14  ;;  %1317 = vmatmul.mubr.bf16.gmra.mrb[4].mxu0 %v1986_v33  ;;  %v2007_v14 = vld [vmem:[%s2542_s1 + $0x414] ss:$8 sps:$4 sm:$0xff]   ;;  %v2032_v33 = vld [vmem:[%s2214_s13 + $0x20] ss:$36 sps:$4 sm:$0xff]  }
  0x50   : > { %1332 = vmatpush1.bf16.msra.mxu0 %v1909_v15  ;;  %1227 = vmatprep.subr.bf16.mxu1 %v1914_v16  ;;  %v2008_v15 = vld [vmem:[%s2214_s13 + $0x54] ss:$36 sps:$4 sm:$0xff]   ;;  %v2010_v16 = vld [vmem:[%s2214_s13 + $0x64] ss:$36 sps:$4 sm:$0xff]  }
  0x51   : > { %1333 = vmatprep.subr.bf16.mxu0 %v1917_v17  ;;  %1253 = vmatprep.mubr.bf16.mxu1 %v1998_v41  ;;  %v2005_v17 = vld [vmem:[%s2542_s1 + $0x410] ss:$8 sps:$4 sm:$0xff]  }
  0x52   : > { %1359 = vmatprep.mubr.bf16.mxu0 %v2001_v43 }
  0x53   : > { %1228 = vmatpush1.bf16.msra.mxu1 %v1912_v18  ;;  %v2016_v18 = vld [vmem:[%s2542_s1 + $0x424] ss:$8 sps:$4 sm:$0xff]  }
  0x54   : > { %1334 = vmatpush1.bf16.msra.mxu0 %v1915_v19  ;;  %1229 = vmatprep.subr.bf16.mxu1 %v1920_v20  ;;  %v2012_v19 = vld [vmem:[%s2214_s13 + $0x50] ss:$36 sps:$4 sm:$0xff]   ;;  %v2013_v20 = vld [vmem:[%s2214_s13 + $0x60] ss:$36 sps:$4 sm:$0xff]  }
  0x55   : > { %1335 = vmatprep.subr.bf16.mxu0 %v1923_v21  ;;  %v2014_v21 = vld [vmem:[%s2542_s1 + $0x420] ss:$8 sps:$4 sm:$0xff]  }
  0x57   : > { %1230 = vmatpush1.bf16.msra.mxu1 %v1918_v22  ;;  %v2019_v22 = vld [vmem:[%s2542_s1 + $0x434] ss:$8 sps:$4 sm:$0xff]  }
  0x58   : > { %1336 = vmatpush1.bf16.msra.mxu0 %v1921_v23  ;;  %1231 = vmatprep.subr.bf16.mxu1 %v1926_v24  ;;  %v2017_v23 = vld [vmem:[%s2542_s1 + $0x430] ss:$8 sps:$4 sm:$0xff]   ;;  %v2022_v24 = vld [vmem:[%s2542_s1 + $0x444] ss:$8 sps:$4 sm:$0xff]  }
  0x59   : > { %1337 = vmatprep.subr.bf16.mxu0 %v1929_v25  ;;  %v2042_v25 = vmov 0  }
  0x5b   : > { %1232 = vmatpush1.bf16.msra.mxu1 %v1924_v26  ;;  %v2020_v26 = vld [vmem:[%s2542_s1 + $0x440] ss:$8 sps:$4 sm:$0xff]  }
  0x5c   : > { %1338 = vmatpush1.bf16.msra.mxu0 %v1927_v27  ;;  %1233 = vmatprep.subr.bf16.mxu1 %v1932_v28  ;;  %v2025_v27 = vld [vmem:[%s2542_s1 + $0x454] ss:$8 sps:$4 sm:$0xff]   ;;  %v2023_v28 = vld [vmem:[%s2542_s1 + $0x450] ss:$8 sps:$4 sm:$0xff]  }
  0x5d   : > { %1339 = vmatprep.subr.bf16.mxu0 %v1935_v32  ;;  %v2029_v32 = vld [vmem:[%s2542_s1 + $0x470] ss:$8 sps:$4 sm:$0xff]  }
  0x5f   : > { %1234 = vmatpush1.bf16.msra.mxu1 %v1930_v34  ;;  %v2033_v34 = vld [vmem:[%s2214_s13 + $0x68] ss:$36 sps:$4 sm:$0xff]   ;;  %s1721_s13 = sshll.u32 %s2546_s24, 3 }
  0x60   : > { %1340 = vmatpush1.bf16.msra.mxu0 %v1933_v35  ;;  %1235 = vmatprep.subr.bf16.mxu1 %v1938_v36  ;;  %v346_v35 = vlaneseq  ;;  %s177_s17 = scalar_lea.vmem %s2544_s3, %s1721_s13 }
  0x61   : > { %1341 = vmatprep.subr.bf16.mxu0 %v1941_v37 }
  0x62   : > { %v347_v36 = vshrl.u32 %v346_v35, 7 }
  0x63   : > { %1236 = vmatpush1.bf16.msra.mxu1 %v1936_v38 }
  0x64   : > { %1342 = vmatpush1.bf16.msra.mxu0 %v1939_v39  ;;  %1237 = vmatprep.subr.bf16.mxu1 %v1944_v40  ;;  %v348_v40 = vsub.s32 0, %v347_v36  ;;  %v352_v43 = vsub.s32 1, %v347_v36 }
  0x65   : > { %1343 = vmatprep.subr.bf16.mxu0 %v1947_v42  ;;  %v344_v42 = vld [vmem:[%s2543_s2] sm:$0x3] }
  0x67   : > { %1238 = vmatpush1.bf16.msra.mxu1 %v1942_v44  ;;  %v349_v44 = vrot.slane %v344_v42, %v348_v40 }
  0x68   : > { %1344 = vmatpush1.bf16.msra.mxu0 %v1945_v45  ;;  %1239 = vmatprep.subr.bf16.mxu1 %v1950_v46  ;;  %v353_v45 = vrot.slane %v344_v42, %v352_v43 }
  0x69   : > { %1345 = vmatprep.subr.bf16.mxu0 %v1953_v47 }
  0x6b   : > { %1240 = vmatpush1.bf16.msra.mxu1 %v1948_v48 }
  0x6c   : > { %1346 = vmatpush1.bf16.msra.mxu0 %v1951_v49  ;;  %1241 = vmatprep.subr.bf16.mxu1 %v1956_v50 }
  0x6d   : > { %1347 = vmatprep.subr.bf16.mxu0 %v1959_v51 }
  0x6f   : > { %1242 = vmatpush1.bf16.msra.mxu1 %v1954_v52 }
  0x70   : > { %1348 = vmatpush1.bf16.msra.mxu0 %v1957_v53  ;;  %1243 = vmatprep.subr.bf16.mxu1 %v1962_v54 }
  0x71   : > { %1349 = vmatprep.subr.bf16.mxu0 %v1965_v55 }
  0x73   : > { %1244 = vmatpush1.bf16.msra.mxu1 %v1960_v56 }
  0x74   : > { %1350 = vmatpush1.bf16.msra.mxu0 %v1963_v57  ;;  %1245 = vmatprep.subr.bf16.mxu1 %v1968_v58 }
  0x75   : > { %1351 = vmatprep.subr.bf16.mxu0 %v1971_v59 }
  0x77   : > { %1246 = vmatpush1.bf16.msra.mxu1 %v1966_v60 }
  0x78   : > { %1352 = vmatpush1.bf16.msra.mxu0 %v1969_v61  ;;  %1247 = vmatprep.subr.bf16.mxu1 %v1974_v62 }
  0x79   : > { %1353 = vmatprep.subr.bf16.mxu0 %v1977_v63 }
  0x7b   : > { %1248 = vmatpush1.bf16.msra.mxu1 %v1972_v0 }
  0x7c   : > { %1354 = vmatpush1.bf16.msra.mxu0 %v1975_v1  ;;  %1249 = vmatprep.subr.bf16.mxu1 %v1985_v2 }
  0x7d   : > { %1355 = vmatprep.subr.bf16.mxu0 %v1989_v3 }
  0x7f   : > { %1250 = vmatpush1.bf16.msra.mxu1 %v1983_v4 }
  0x80   : > { %1356 = vmatpush1.bf16.msra.mxu0 %v1987_v5  ;;  %1251 = vmatprep.subr.bf16.mxu1 %v1992_v6 }
  0x81   : > { %1357 = vmatprep.subr.bf16.mxu0 %v1995_v7 }
  0x83   : > { %1252 = vmatpush1.bf16.msra.mxu1 %v1990_v8 }
  0x84   : > { %1358 = vmatpush1.bf16.msra.mxu0 %v1993_v9  ;;  %1726 = vmatprep.subr.bf16.mxu1 %v2004_v10 }
  0x85   : > { %1380 = vmatprep.subr.bf16.mxu0 %v2004_v10 }
  0x86   : > { %1254 = vmatmul.mubr.bf16.vlgmr.msra.gmra.mrb[0].mxu1 %v1996_v11 }
  0x87   : > { %1360 = vmatmul.mubr.bf16.vlgmr.msra.gmra.mrb[0].mxu0 %v1999_v12  ;;  %1734 = vmatpush1.bf16.msra.mxu1 %v2002_v13 }
  0x88   : > { %1381 = vmatpush1.bf16.msra.mxu0 %v2002_v13  ;;  %1727 = vmatprep.subr.bf16.mxu1 %v2007_v14 }
  0x89   : > { %1382 = vmatprep.subr.bf16.mxu0 %v2007_v14  ;;  %1263 = vmatprep.mubr.bf16.mxu1 %v2008_v15 }
  0x8a   : > { %1369 = vmatprep.mubr.bf16.mxu0 %v2010_v16 }
  0x8b   : > { %1735 = vmatpush1.bf16.msra.mxu1 %v2005_v17 }
  0x8c   : > { %1383 = vmatpush1.bf16.msra.mxu0 %v2005_v17  ;;  %1728 = vmatprep.subr.bf16.mxu1 %v2016_v18 }
  0x8d   : > { %1384 = vmatprep.subr.bf16.mxu0 %v2016_v18 }
  0x8e   : > { %1264 = vmatmul.mubr.bf16.gmra.mrb[4].mxu1 %v2012_v19 }
  0x8f   : > { %1370 = vmatmul.mubr.bf16.gmra.mrb[4].mxu0 %v2013_v20  ;;  %1736 = vmatpush1.bf16.msra.mxu1 %v2014_v21 }
  0x90   : > { %1385 = vmatpush1.bf16.msra.mxu0 %v2014_v21  ;;  %1729 = vmatprep.subr.bf16.mxu1 %v2019_v22 }
  0x91   : > { %1386 = vmatprep.subr.bf16.mxu0 %v2019_v22  ;;  %1412 = vmatprep.mubr.bf16.mxu0 %v2042_v25 }
  0x92   : > { %1422 = vmatprep.mubr.bf16.mxu1 %v2042_v25 }
  0x93   : > { %1737 = vmatpush1.bf16.msra.mxu1 %v2017_v23 }
  0x94   : > { %1387 = vmatpush1.bf16.msra.mxu0 %v2017_v23  ;;  %1730 = vmatprep.subr.bf16.mxu1 %v2022_v24 }
  0x95   : > { %1388 = vmatprep.subr.bf16.mxu0 %v2022_v24 }
  0x97   : > { %1738 = vmatpush1.bf16.msra.mxu1 %v2020_v26 }
  0x98   : > { %1389 = vmatpush1.bf16.msra.mxu0 %v2020_v26  ;;  %1731 = vmatprep.subr.bf16.mxu1 %v2025_v27 }
  0x99   : > { %1390 = vmatprep.subr.bf16.mxu0 %v2025_v27 }
  0x9b   : > { %1739 = vmatpush1.bf16.msra.mxu1 %v2023_v28 }
  0x9c   : > { %1391 = vmatpush1.bf16.msra.mxu0 %v2023_v28  ;;  %1732 = vmatprep.subr.bf16.mxu1 %v2028_v29 }
  0x9d   : > { %1392 = vmatprep.subr.bf16.mxu0 %v2028_v29 }
  0x9f   : > { %1740 = vmatpush1.bf16.msra.mxu1 %v2026_v30 }
  0xa0   : > { %1393 = vmatpush1.bf16.msra.mxu0 %v2026_v30  ;;  %1733 = vmatprep.subr.bf16.mxu1 %v2031_v31 }
  0xa1   : > { %1394 = vmatprep.subr.bf16.mxu0 %v2031_v31 }
  0xa3   : > { %1741 = vmatpush1.bf16.msra.mxu1 %v2029_v32 }
  0xa4   : > { %1395 = vmatpush1.bf16.msra.mxu0 %v2029_v32 }
  0xa6   : > { %1423 = vmatmul.mubr.bf16.vlgmr.msra.gmra.mrb[8].mxu1 %v2033_v34 }
  0xa7   : > { %1413 = vmatmul.mubr.bf16.vlgmr.msra.gmra.mrb[0].mxu0 %v2032_v33 }
 0x159   : > { %v1255_v37 = vpop.f32.mrb[0].mxu1 }
 0x15a   : > { %v1257_v38 = vpop.f32.mrb[1].mxu1  ;;  %v1742_v62 = vadd.f32 %v1255_v37, %v349_v44 }
 0x15b   : > { %v1259_v39 = vpop.f32.mrb[2].mxu1  ;;  %v1744_v63 = vadd.f32 %v1257_v38, %v353_v45 }
 0x15c   : > { %v1261_v41 = vpop.f32.mrb[3].mxu1  ;;  %v1746_v6 = vadd.f32 %v1259_v39, %v349_v44 }
 0x15d   : > { %v1748_v7 = vadd.f32 %v1261_v41, %v353_v45 }
 0x161   : > { %v1265_v46 = vpop.f32.mrb[4].mxu1 }
 0x162   : > { %v1371_v47 = vpop.f32.mrb[4].mxu0  ;;  %v1750_v48 = vadd.f32 %v1265_v46, %v349_v44  ;;  %v1267_v49 = vpop.f32.mrb[5].mxu1 }
 0x163   : > { %v1373_v50 = vpop.f32.mrb[5].mxu0  ;;  %v1753_v51 = vadd.f32 %v1267_v49, %v353_v45  ;;  %v1269_v52 = vpop.f32.mrb[6].mxu1 }
 0x164   : > { %v1375_v53 = vpop.f32.mrb[6].mxu0  ;;  %v1751_v54 = vadd.f32 %v1750_v48, %v1371_v47  ;;  %v1756_v55 = vadd.f32 %v1269_v52, %v349_v44  ;;  %v1271_v56 = vpop.f32.mrb[7].mxu1 }
 0x165   : > { %v1377_v57 = vpop.f32.mrb[7].mxu0  ;;  %v1754_v58 = vadd.f32 %v1753_v51, %v1373_v50  ;;  %v1759_v59 = vadd.f32 %v1271_v56, %v353_v45 }
 0x166   : > { %v1757_v60 = vadd.f32 %v1756_v55, %v1375_v53 }
 0x167   : > { %v1760_v61 = vadd.f32 %v1759_v59, %v1377_v57 }
 0x179   : > { %v1424_v1 = vpop.f32.mrb[8].mxu1 }
 0x17a   : > { %v1414_v0 = vpop.f32.mrb[0].mxu0  ;;  %v1752_v3 = vadd.f32 %v1751_v54, %v1424_v1  ;;  %v1426_v5 = vpop.f32.mrb[9].mxu1 }
 0x17b   : > { %v1743_v2 = vadd.f32 %v1742_v62, %v1414_v0  ;;  %v1416_v4 = vpop.f32.mrb[1].mxu0  ;;  %v1755_v9 = vadd.f32 %v1754_v58, %v1426_v5  ;;  %v1428_v11 = vpop.f32.mrb[10].mxu1 }
 0x17c   : > { %v1745_v8 = vadd.f32 %v1744_v63, %v1416_v4  ;;  %v1418_v10 = vpop.f32.mrb[2].mxu0  ;;  %vm1437_vm1 = vcmp.ge.f32.partialorder %v1752_v3, 0.0  ;;  %v1445_v13 = vmul.f32 0.2, %v1752_v3  ;;  %v1758_v19 = vadd.f32 %v1757_v60, %v1428_v11  ;;  %v1430_v21 = vpop.f32.mrb[11].mxu1 }
 0x17d   : > { %vm1433_vm0 = vcmp.ge.f32.partialorder %v1743_v2, 0.0  ;;  %v1441_v12 = vmul.f32 0.2, %v1743_v2  ;;  %vm1438_vm3 = vcmp.ge.f32.partialorder %v1755_v9, 0.0  ;;  %v1446_v15 = vmul.f32 0.2, %v1755_v9 }
 0x17e   : > { %vm1434_vm2 = vcmp.ge.f32.partialorder %v1745_v8, 0.0  ;;  %v1442_v14 = vmul.f32 0.2, %v1745_v8  ;;  %v1453_v17 = vsel %vm1437_vm1, %v1752_v3, %v1445_v13  ;;  %v1747_v18 = vadd.f32 %v1746_v6, %v1418_v10  ;;  %v1420_v20 = vpop.f32.mrb[3].mxu0 }
 0x17f   : > { %v1449_v16 = vsel %vm1433_vm0, %v1743_v2, %v1441_v12  ;;  %v1454_v23 = vsel %vm1438_vm3, %v1755_v9, %v1446_v15  ;;  %v1749_v24 = vadd.f32 %v1748_v7, %v1420_v20  ;;  %v1761_v25 = vadd.f32 %v1760_v61, %v1430_v21 }
 0x180   : > { %v1450_v22 = vsel %vm1434_vm2, %v1745_v8, %v1442_v14  ;;  %v1724_v27 = vpack.c.bf16 %v1454_v23, %v1453_v17  ;;  %vm1435_vm4 = vcmp.ge.f32.partialorder %v1747_v18, 0.0  ;;  %v1443_v28 = vmul.f32 0.2, %v1747_v18 }
 0x181   : > { %v1722_v26 = vpack.c.bf16 %v1450_v22, %v1449_v16  ;;  %vm1439_vm5 = vcmp.ge.f32.partialorder %v1758_v19, 0.0  ;;  %v1447_v29 = vmul.f32 0.2, %v1758_v19  ;;  %vm1436_vm6 = vcmp.ge.f32.partialorder %v1749_v24, 0.0 }
 0x182   : > { %v1444_v30 = vmul.f32 0.2, %v1749_v24  ;;  %v1451_v31 = vsel %vm1435_vm4, %v1747_v18, %v1443_v28  ;;  %vm1440_vm7 = vcmp.ge.f32.partialorder %v1761_v25, 0.0  ;;  %v1448_v32 = vmul.f32 0.2, %v1761_v25  ;;  %1483 = vst [vmem:[%s177_s17 + $0x10] sm:$0xff] %v1724_v27 }
 0x183   : > { %1481 = vst [vmem:[%s177_s17] sm:$0xff] %v1722_v26  ;;  %v1455_v33 = vsel %vm1439_vm5, %v1758_v19, %v1447_v29 }
 0x184   : > { %v1452_v34 = vsel %vm1436_vm6, %v1749_v24, %v1444_v30  ;;  %v1456_v36 = vsel %vm1440_vm7, %v1761_v25, %v1448_v32 }
 0x185   : > { %v1723_v35 = vpack.c.bf16 %v1452_v34, %v1451_v31  ;;  %v1725_v37 = vpack.c.bf16 %v1456_v36, %v1455_v33 }
 0x187   : > { %1482 = vst [vmem:[%s177_s17 + $0x8] sm:$0xff] %v1723_v35  ;;  %1484 = vst [vmem:[%s177_s17 + $0x18] sm:$0xff] %v1725_v37 }
 0x188 PF: > { %s13_s12 = sadd.s32 1, %s2040_s12  }
 0x189   : > { %p10_p4 = scmp.ge.s32.totalorder %s13_s12, 4  }
 0x18b   :  { %12 = sbr.rel (!%p10_p4) target bundleno = 1 (0x1), region = 62 }

// kernel: encoder_forward.9
= control target key start
LH: loop header
LB: loop body
LE: loop exit
PB: predicated region body
PF: predicated region fallthrough
CT: control target
= control target key end

     0   :  { %v555_v28 = vlaneseq  ;;  %v3812_v36 = vmov 1983009808   ;;  %s4659_s0 = inlined_call_operand.vmem [shape: bf16[4,4096], index: 0, kind: input, shape index: {}]   ;;  %s4660_s1 = inlined_call_operand.vmem [shape: bf16[4096,128], index: 1, kind: input, shape index: {}]   ;;  %s4661_s2 = inlined_call_operand.vmem [shape: f32[1,128], index: 2, kind: input, shape index: {}]   ;;  %s4662_s3 = inlined_call_operand.hbm [shape: f32[4,128], index: 3, kind: output, shape index: {}]  }
   0x1   :  { %v3524_v0 = vld [vmem:[%s4660_s1 + $0x40] sm:$0xff]   ;;  %v3528_v4 = vld [vmem:[%s4660_s1 + $0x48] sm:$0xff]   ;;  %v3532_v8 = vld [vmem:[%s4660_s1 + $0x50] sm:$0xff]   ;;  %v553_v37 = vunpack.c.l.s4 %v3812_v36 }
   0x2   :  { %v3525_v1 = vld [vmem:[%s4660_s1 + $0xc0] sm:$0xff]   ;;  %3170 = vmatprep.subr.bf16.mxu0 %v3524_v0  ;;  %v3529_v5 = vld [vmem:[%s4660_s1 + $0xc8] sm:$0xff]   ;;  %v3533_v9 = vld [vmem:[%s4660_s1 + $0xd0] sm:$0xff]   ;;  %v556_v33 = vshrl.u32 %v555_v28, 7 }
   0x3   :  { %v3526_v2 = vld [vmem:[%s4660_s1] sm:$0xff]   ;;  %3192 = vmatprep.subr.bf16.mxu1 %v3525_v1  ;;  %v3530_v6 = vld [vmem:[%s4660_s1 + $0x8] sm:$0xff]   ;;  %v3534_v10 = vld [vmem:[%s4660_s1 + $0x10] sm:$0xff]   ;;  %v554_v39 = vunpack.c.0.s8 %v553_v37 }
   0x4   :  { %v3527_v3 = vld [vmem:[%s4660_s1 + $0x80] sm:$0xff]   ;;  %3171 = vmatpush3.bf16.msra.mxu0 %v3526_v2  ;;  %v3531_v7 = vld [vmem:[%s4660_s1 + $0x88] sm:$0xff]   ;;  %v3535_v11 = vld [vmem:[%s4660_s1 + $0x90] sm:$0xff]  }
   0x5   :  { %3193 = vmatpush3.bf16.msra.mxu1 %v3527_v3  ;;  %3172 = vmatprep.subr.bf16.mxu0 %v3528_v4  ;;  %v3536_v12 = vld [vmem:[%s4660_s1 + $0x58] sm:$0xff]   ;;  %v3540_v16 = vld [vmem:[%s4660_s1 + $0x60] sm:$0xff]   ;;  %v3544_v20 = vld [vmem:[%s4660_s1 + $0x68] sm:$0xff]   ;;  %v3939_v41 = vsub.s32 %v554_v39, %v556_v33 }
   0x6   :  { %3194 = vmatprep.subr.bf16.mxu1 %v3529_v5  ;;  %v3537_v13 = vld [vmem:[%s4660_s1 + $0xd8] sm:$0xff]   ;;  %v3541_v17 = vld [vmem:[%s4660_s1 + $0xe0] sm:$0xff]   ;;  %v3545_v21 = vld [vmem:[%s4660_s1 + $0xe8] sm:$0xff]  }
   0x7   :  { %v3538_v14 = vld [vmem:[%s4660_s1 + $0x18] sm:$0xff]   ;;  %v3542_v18 = vld [vmem:[%s4660_s1 + $0x20] sm:$0xff]   ;;  %v3546_v22 = vld [vmem:[%s4660_s1 + $0x28] sm:$0xff]  }
   0x8   :  { %3173 = vmatpush3.bf16.msra.mxu0 %v3530_v6  ;;  %v3539_v15 = vld [vmem:[%s4660_s1 + $0x98] sm:$0xff]   ;;  %v3543_v19 = vld [vmem:[%s4660_s1 + $0xa0] sm:$0xff]   ;;  %v3547_v23 = vld [vmem:[%s4660_s1 + $0xa8] sm:$0xff]  }
   0x9   :  { %3195 = vmatpush3.bf16.msra.mxu1 %v3531_v7  ;;  %3174 = vmatprep.subr.bf16.mxu0 %v3532_v8  ;;  %v3548_v24 = vld [vmem:[%s4660_s1 + $0x70] sm:$0xff]   ;;  %v3552_v29 = vld [vmem:[%s4660_s1 + $0x78] sm:$0xff]   ;;  %v16_v34 = vld [vmem:[%s4659_s0] sm:$0xff] }
   0xa   :  { %3196 = vmatprep.subr.bf16.mxu1 %v3533_v9  ;;  %v3549_v25 = vld [vmem:[%s4660_s1 + $0xf0] sm:$0xff]   ;;  %v3553_v30 = vld [vmem:[%s4660_s1 + $0xf8] sm:$0xff]   ;;  %v3557_v35 = vld [vmem:[%s4660_s1 + $0x140] sm:$0xff]   ;;  %v551_v40 = vcombine.high %v16_v34, %v16_v34  ;;  %v558_v42 = vrot.slane %v16_v34, %v3939_v41 }
   0xb   :  { %v3550_v26 = vld [vmem:[%s4660_s1 + $0x30] sm:$0xff]   ;;  %v3554_v31 = vld [vmem:[%s4660_s1 + $0x38] sm:$0xff]   ;;  %v3558_v38 = vld [vmem:[%s4660_s1 + $0x1c0] sm:$0xff]  }
   0xc   :  { %3175 = vmatpush3.bf16.msra.mxu0 %v3534_v10  ;;  %v3551_v27 = vld [vmem:[%s4660_s1 + $0xb0] sm:$0xff]   ;;  %v3555_v32 = vld [vmem:[%s4660_s1 + $0xb8] sm:$0xff]   ;;  %v565_v43 = vrot.slane %v551_v40, %v3939_v41  ;;  %v3559_v44 = vld [vmem:[%s4660_s1 + $0x100] sm:$0xff]   ;;  %v566_v46 = vcombine.high %v558_v42, %v558_v42 }
   0xd   :  { %3197 = vmatpush3.bf16.msra.mxu1 %v3535_v11  ;;  %3176 = vmatprep.subr.bf16.mxu0 %v3536_v12  ;;  %v3560_v45 = vld [vmem:[%s4660_s1 + $0x180] sm:$0xff]   ;;  %v3561_v48 = vld [vmem:[%s4660_s1 + $0x148] sm:$0xff]   ;;  %v3565_v52 = vld [vmem:[%s4660_s1 + $0x150] sm:$0xff]  }
   0xe   :  { %3198 = vmatprep.subr.bf16.mxu1 %v3537_v13  ;;  %v567_v47 = vcombine.high %v565_v43, %v565_v43  ;;  %v3562_v49 = vld [vmem:[%s4660_s1 + $0x1c8] sm:$0xff]   ;;  %2287 = vmatprep.mubr.bf16.mxu0 %v566_v46  ;;  %v3566_v53 = vld [vmem:[%s4660_s1 + $0x1d0] sm:$0xff]   ;;  %v3569_v56 = vld [vmem:[%s4660_s1 + $0x158] sm:$0xff]  }
   0xf   :  { %v3563_v50 = vld [vmem:[%s4660_s1 + $0x108] sm:$0xff]   ;;  %v3567_v54 = vld [vmem:[%s4660_s1 + $0x110] sm:$0xff]   ;;  %v3570_v57 = vld [vmem:[%s4660_s1 + $0x1d8] sm:$0xff]  }
  0x10   :  { %3177 = vmatpush3.bf16.msra.mxu0 %v3538_v14  ;;  %2327 = vmatprep.mubr.bf16.mxu1 %v567_v47  ;;  %v3564_v51 = vld [vmem:[%s4660_s1 + $0x188] sm:$0xff]   ;;  %v3568_v55 = vld [vmem:[%s4660_s1 + $0x190] sm:$0xff]   ;;  %v3571_v58 = vld [vmem:[%s4660_s1 + $0x118] sm:$0xff]  }
  0x11   :  { %3199 = vmatpush3.bf16.msra.mxu1 %v3539_v15  ;;  %3178 = vmatprep.subr.bf16.mxu0 %v3540_v16  ;;  %v3572_v59 = vld [vmem:[%s4660_s1 + $0x198] sm:$0xff]   ;;  %v3573_v60 = vld [vmem:[%s4660_s1 + $0x160] sm:$0xff]   ;;  %v3577_v0 = vld [vmem:[%s4660_s1 + $0x168] sm:$0xff]  }
  0x12   :  { %3200 = vmatprep.subr.bf16.mxu1 %v3541_v17  ;;  %v3574_v61 = vld [vmem:[%s4660_s1 + $0x1e0] sm:$0xff]   ;;  %v3578_v1 = vld [vmem:[%s4660_s1 + $0x1e8] sm:$0xff]   ;;  %v3581_v4 = vld [vmem:[%s4660_s1 + $0x170] sm:$0xff]  }
  0x13   :  { %v3575_v62 = vld [vmem:[%s4660_s1 + $0x120] sm:$0xff]   ;;  %v3579_v2 = vld [vmem:[%s4660_s1 + $0x128] sm:$0xff]   ;;  %v3582_v5 = vld [vmem:[%s4660_s1 + $0x1f0] sm:$0xff]  }
  0x14   :  { %3179 = vmatpush3.bf16.msra.mxu0 %v3542_v18  ;;  %v3576_v63 = vld [vmem:[%s4660_s1 + $0x1a0] sm:$0xff]   ;;  %v3580_v3 = vld [vmem:[%s4660_s1 + $0x1a8] sm:$0xff]   ;;  %v3583_v6 = vld [vmem:[%s4660_s1 + $0x130] sm:$0xff]  }
  0x15   :  { %3201 = vmatpush3.bf16.msra.mxu1 %v3543_v19  ;;  %3180 = vmatprep.subr.bf16.mxu0 %v3544_v20  ;;  %v3584_v7 = vld [vmem:[%s4660_s1 + $0x1b0] sm:$0xff]   ;;  %v17_v8 = vld [vmem:[%s4659_s0 + $0x8] sm:$0xff]  ;;  %v3585_v9 = vld [vmem:[%s4660_s1 + $0x178] sm:$0xff]  }
  0x16   :  { %3202 = vmatprep.subr.bf16.mxu1 %v3545_v21  ;;  %v575_v10 = vrot.slane %v17_v8, %v3939_v41  ;;  %v568_v11 = vcombine.high %v17_v8, %v17_v8  ;;  %v3586_v12 = vld [vmem:[%s4660_s1 + $0x1f8] sm:$0xff]   ;;  %v3590_v18 = vld [vmem:[%s4660_s1 + $0x240] sm:$0xff]   ;;  %v3600_v28 = vld [vmem:[%s4660_s1 + $0x210] sm:$0xff]  }
  0x17   :  { %v3587_v13 = vld [vmem:[%s4660_s1 + $0x138] sm:$0xff]   ;;  %v3591_v19 = vld [vmem:[%s4660_s1 + $0x2c0] sm:$0xff]   ;;  %v3611_v39 = vld [vmem:[%s4660_s1 + $0x2e8] sm:$0xff]  }
  0x18   :  { %3181 = vmatpush3.bf16.msra.mxu0 %v3546_v22  ;;  %v583_v14 = vcombine.high %v575_v10, %v575_v10  ;;  %v582_v15 = vrot.slane %v568_v11, %v3939_v41  ;;  %v3588_v16 = vld [vmem:[%s4660_s1 + $0x1b8] sm:$0xff]   ;;  %v3592_v20 = vld [vmem:[%s4660_s1 + $0x200] sm:$0xff]   ;;  %v3594_v22 = vld [vmem:[%s4660_s1 + $0x248] sm:$0xff]  }
  0x19   :  { %3203 = vmatpush3.bf16.msra.mxu1 %v3547_v23  ;;  %3182 = vmatprep.subr.bf16.mxu0 %v3548_v24  ;;  %v3593_v21 = vld [vmem:[%s4660_s1 + $0x280] sm:$0xff]   ;;  %v3595_v23 = vld [vmem:[%s4660_s1 + $0x2c8] sm:$0xff]   ;;  %v3605_v33 = vld [vmem:[%s4660_s1 + $0x298] sm:$0xff]  }
  0x1a   :  { %3204 = vmatprep.subr.bf16.mxu1 %v3549_v25  ;;  %v584_v17 = vcombine.high %v582_v15, %v582_v15  ;;  %v3596_v24 = vld [vmem:[%s4660_s1 + $0x208] sm:$0xff]   ;;  %v3606_v34 = vld [vmem:[%s4660_s1 + $0x260] sm:$0xff]   ;;  %v3617_v46 = vld [vmem:[%s4660_s1 + $0x2b0] sm:$0xff]  }
  0x1b   :  { %v3597_v25 = vld [vmem:[%s4660_s1 + $0x288] sm:$0xff]   ;;  %v3608_v36 = vld [vmem:[%s4660_s1 + $0x220] sm:$0xff]   ;;  %v18_v47 = vld [vmem:[%s4659_s0 + $0x10] sm:$0xff] }
  0x1c   :  { %3183 = vmatpush3.bf16.msra.mxu0 %v3550_v26  ;;  %v3598_v26 = vld [vmem:[%s4660_s1 + $0x250] sm:$0xff]   ;;  %v3609_v37 = vld [vmem:[%s4660_s1 + $0x2a0] sm:$0xff]   ;;  %v3612_v40 = vld [vmem:[%s4660_s1 + $0x228] sm:$0xff]  }
  0x1d   :  { %3205 = vmatpush3.bf16.msra.mxu1 %v3551_v27  ;;  %3184 = vmatprep.subr.bf16.mxu0 %v3552_v29  ;;  %v3599_v27 = vld [vmem:[%s4660_s1 + $0x2d0] sm:$0xff]   ;;  %v3638_v8 = vld [vmem:[%s4660_s1 + $0x398] sm:$0xff]   ;;  %v3641_v11 = vld [vmem:[%s4660_s1 + $0x320] sm:$0xff]  }
  0x1e   :  { %3206 = vmatprep.subr.bf16.mxu1 %v3553_v30  ;;  %v3601_v29 = vld [vmem:[%s4660_s1 + $0x290] sm:$0xff]   ;;  %v3602_v30 = vld [vmem:[%s4660_s1 + $0x258] sm:$0xff]  }
  0x20   :  { %3185 = vmatpush3.bf16.msra.mxu0 %v3554_v31  ;;  %v3603_v31 = vld [vmem:[%s4660_s1 + $0x2d8] sm:$0xff]  }
  0x21   :  { %3207 = vmatpush3.bf16.msra.mxu1 %v3555_v32  ;;  %3214 = vmatprep.subr.bf16.mxu0 %v3557_v35  ;;  %v3604_v32 = vld [vmem:[%s4660_s1 + $0x218] sm:$0xff]   ;;  %v3607_v35 = vld [vmem:[%s4660_s1 + $0x2e0] sm:$0xff]  }
  0x22   :  { %3236 = vmatprep.subr.bf16.mxu1 %v3558_v38  ;;  %v3610_v38 = vld [vmem:[%s4660_s1 + $0x268] sm:$0xff]  }
  0x23   :  { %2288 = vmatmul.mubr.bf16.vlgmr.msra.gmra.mrb[0].mxu0 %v558_v42  ;;  %v3613_v42 = vld [vmem:[%s4660_s1 + $0x2a8] sm:$0xff]  }
  0x24   :  { %2328 = vmatmul.mubr.bf16.vlgmr.msra.gmra.mrb[0].mxu1 %v565_v43  ;;  %3215 = vmatpush3.bf16.msra.mxu0 %v3559_v44  ;;  %v3614_v43 = vld [vmem:[%s4660_s1 + $0x270] sm:$0xff]  }
  0x25   :  { %3237 = vmatpush3.bf16.msra.mxu1 %v3560_v45  ;;  %3216 = vmatprep.subr.bf16.mxu0 %v3561_v48  ;;  %v3615_v44 = vld [vmem:[%s4660_s1 + $0x2f0] sm:$0xff]   ;;  %v3618_v48 = vld [vmem:[%s4660_s1 + $0x278] sm:$0xff]  }
  0x26   :  { %3238 = vmatprep.subr.bf16.mxu1 %v3562_v49  ;;  %2367 = vmatprep.mubr.bf16.mxu0 %v583_v14  ;;  %v3616_v45 = vld [vmem:[%s4660_s1 + $0x230] sm:$0xff]   ;;  %v592_v49 = vrot.slane %v18_v47, %v3939_v41  ;;  %v3644_v14 = vld [vmem:[%s4660_s1 + $0x3e8] sm:$0xff]  }
  0x27   :  { %2407 = vmatprep.mubr.bf16.mxu1 %v584_v17  ;;  %v3647_v17 = vld [vmem:[%s4660_s1 + $0x370] sm:$0xff]  }
  0x28   :  { %3217 = vmatpush3.bf16.msra.mxu0 %v3563_v50  ;;  %v585_v50 = vcombine.high %v18_v47, %v18_v47  ;;  %v3671_v47 = vld [vmem:[%s4660_s1 + $0x498] sm:$0xff]  }
  0x29   :  { %3239 = vmatpush3.bf16.msra.mxu1 %v3564_v51  ;;  %3218 = vmatprep.subr.bf16.mxu0 %v3565_v52  ;;  %v3619_v51 = vld [vmem:[%s4660_s1 + $0x2f8] sm:$0xff]  }
  0x2a   :  { %3240 = vmatprep.subr.bf16.mxu1 %v3566_v53  ;;  %v3620_v52 = vld [vmem:[%s4660_s1 + $0x238] sm:$0xff]   ;;  %v600_v53 = vcombine.high %v592_v49, %v592_v49 }
  0x2c   :  { %3219 = vmatpush3.bf16.msra.mxu0 %v3567_v54  ;;  %v599_v54 = vrot.slane %v585_v50, %v3939_v41  ;;  %v3674_v50 = vld [vmem:[%s4660_s1 + $0x420] sm:$0xff]  }
  0x2d   :  { %3241 = vmatpush3.bf16.msra.mxu1 %v3568_v55  ;;  %3220 = vmatprep.subr.bf16.mxu0 %v3569_v56  ;;  %v3621_v55 = vld [vmem:[%s4660_s1 + $0x2b8] sm:$0xff]  }
  0x2e   :  { %3242 = vmatprep.subr.bf16.mxu1 %v3570_v57  ;;  %v601_v56 = vcombine.high %v599_v54, %v599_v54  ;;  %v3623_v57 = vld [vmem:[%s4660_s1 + $0x340] sm:$0xff]  }
  0x30   :  { %3221 = vmatpush3.bf16.msra.mxu0 %v3571_v58  ;;  %v3624_v58 = vld [vmem:[%s4660_s1 + $0x3c0] sm:$0xff]  }
  0x31   :  { %3243 = vmatpush3.bf16.msra.mxu1 %v3572_v59  ;;  %3222 = vmatprep.subr.bf16.mxu0 %v3573_v60  ;;  %v3625_v59 = vld [vmem:[%s4660_s1 + $0x300] sm:$0xff]  }
  0x32   :  { %3244 = vmatprep.subr.bf16.mxu1 %v3574_v61  ;;  %v3626_v60 = vld [vmem:[%s4660_s1 + $0x380] sm:$0xff]   ;;  %v3627_v61 = vld [vmem:[%s4660_s1 + $0x348] sm:$0xff]  }
  0x34   :  { %3223 = vmatpush3.bf16.msra.mxu0 %v3575_v62  ;;  %v3628_v62 = vld [vmem:[%s4660_s1 + $0x3c8] sm:$0xff]  }
  0x35   :  { %3245 = vmatpush3.bf16.msra.mxu1 %v3576_v63  ;;  %3224 = vmatprep.subr.bf16.mxu0 %v3577_v0  ;;  %v3629_v63 = vld [vmem:[%s4660_s1 + $0x308] sm:$0xff]  }
  0x36   :  { %3246 = vmatprep.subr.bf16.mxu1 %v3578_v1  ;;  %v3630_v0 = vld [vmem:[%s4660_s1 + $0x388] sm:$0xff]   ;;  %v3631_v1 = vld [vmem:[%s4660_s1 + $0x350] sm:$0xff]  }
  0x38   :  { %3225 = vmatpush3.bf16.msra.mxu0 %v3579_v2  ;;  %v3632_v2 = vld [vmem:[%s4660_s1 + $0x3d0] sm:$0xff]  }
  0x39   :  { %3247 = vmatpush3.bf16.msra.mxu1 %v3580_v3  ;;  %3226 = vmatprep.subr.bf16.mxu0 %v3581_v4  ;;  %v3633_v3 = vld [vmem:[%s4660_s1 + $0x310] sm:$0xff]  }
  0x3a   :  { %3248 = vmatprep.subr.bf16.mxu1 %v3582_v5  ;;  %v3634_v4 = vld [vmem:[%s4660_s1 + $0x390] sm:$0xff]   ;;  %v3635_v5 = vld [vmem:[%s4660_s1 + $0x358] sm:$0xff]  }
  0x3c   :  { %3227 = vmatpush3.bf16.msra.mxu0 %v3583_v6  ;;  %v3636_v6 = vld [vmem:[%s4660_s1 + $0x3d8] sm:$0xff]  }
  0x3d   :  { %3249 = vmatpush3.bf16.msra.mxu1 %v3584_v7  ;;  %3228 = vmatprep.subr.bf16.mxu0 %v3585_v9  ;;  %v3637_v7 = vld [vmem:[%s4660_s1 + $0x318] sm:$0xff]   ;;  %v3639_v9 = vld [vmem:[%s4660_s1 + $0x360] sm:$0xff]  }
  0x3e   :  { %3250 = vmatprep.subr.bf16.mxu1 %v3586_v12  ;;  %v3642_v12 = vld [vmem:[%s4660_s1 + $0x3a0] sm:$0xff]  }
  0x40   :  { %3229 = vmatpush3.bf16.msra.mxu0 %v3587_v13  ;;  %v3643_v13 = vld [vmem:[%s4660_s1 + $0x368] sm:$0xff]  }
  0x41   :  { %3251 = vmatpush3.bf16.msra.mxu1 %v3588_v16  ;;  %3258 = vmatprep.subr.bf16.mxu0 %v3590_v18  ;;  %v3646_v16 = vld [vmem:[%s4660_s1 + $0x3a8] sm:$0xff]   ;;  %v3648_v18 = vld [vmem:[%s4660_s1 + $0x3f0] sm:$0xff]  }
  0x42   :  { %3280 = vmatprep.subr.bf16.mxu1 %v3591_v19  ;;  %v3649_v19 = vld [vmem:[%s4660_s1 + $0x330] sm:$0xff]  }
  0x43   :  { %2368 = vmatmul.mubr.bf16.vlgmr.msra.gmra.mrb[4].mxu0 %v575_v10  ;;  %v3640_v10 = vld [vmem:[%s4660_s1 + $0x3e0] sm:$0xff]  }
  0x44   :  { %2408 = vmatmul.mubr.bf16.vlgmr.msra.gmra.mrb[4].mxu1 %v582_v15  ;;  %3259 = vmatpush3.bf16.msra.mxu0 %v3592_v20  ;;  %v3645_v15 = vld [vmem:[%s4660_s1 + $0x328] sm:$0xff]   ;;  %v3650_v20 = vld [vmem:[%s4660_s1 + $0x3b0] sm:$0xff]  }
  0x45   :  { %3281 = vmatpush3.bf16.msra.mxu1 %v3593_v21  ;;  %3260 = vmatprep.subr.bf16.mxu0 %v3594_v22  ;;  %v3651_v21 = vld [vmem:[%s4660_s1 + $0x378] sm:$0xff]  }
  0x46   :  { %3282 = vmatprep.subr.bf16.mxu1 %v3595_v23  ;;  %2447 = vmatprep.mubr.bf16.mxu0 %v600_v53  ;;  %v19_v22 = vld [vmem:[%s4659_s0 + $0x18] sm:$0xff]  ;;  %v3677_v53 = vld [vmem:[%s4660_s1 + $0x4e8] sm:$0xff]  }
  0x47   :  { %2487 = vmatprep.mubr.bf16.mxu1 %v601_v56  ;;  %v3652_v23 = vld [vmem:[%s4660_s1 + $0x3f8] sm:$0xff]   ;;  %v3680_v56 = vld [vmem:[%s4660_s1 + $0x470] sm:$0xff]  }
  0x48   :  { %3261 = vmatpush3.bf16.msra.mxu0 %v3596_v24  ;;  %v609_v24 = vrot.slane %v19_v22, %v3939_v41 }
  0x49   :  { %3283 = vmatpush3.bf16.msra.mxu1 %v3597_v25  ;;  %3262 = vmatprep.subr.bf16.mxu0 %v3598_v26  ;;  %v602_v25 = vcombine.high %v19_v22, %v19_v22  ;;  %v3653_v26 = vld [vmem:[%s4660_s1 + $0x338] sm:$0xff]   ;;  %v3705_v22 = vld [vmem:[%s4660_s1 + $0x560] sm:$0xff]  }
  0x4a   :  { %3284 = vmatprep.subr.bf16.mxu1 %v3599_v27  ;;  %v3654_v27 = vld [vmem:[%s4660_s1 + $0x3b8] sm:$0xff]  }
  0x4c   :  { %3263 = vmatpush3.bf16.msra.mxu0 %v3600_v28  ;;  %v617_v28 = vcombine.high %v609_v24, %v609_v24 }
  0x4d   :  { %3285 = vmatpush3.bf16.msra.mxu1 %v3601_v29  ;;  %3264 = vmatprep.subr.bf16.mxu0 %v3602_v30  ;;  %v616_v29 = vrot.slane %v602_v25, %v3939_v41  ;;  %v3656_v30 = vld [vmem:[%s4660_s1 + $0x440] sm:$0xff]  }
  0x4e   :  { %3286 = vmatprep.subr.bf16.mxu1 %v3603_v31  ;;  %v3708_v25 = vld [vmem:[%s4660_s1 + $0x5a0] sm:$0xff]  }
  0x4f   :  { %v618_v31 = vcombine.high %v616_v29, %v616_v29 }
  0x50   :  { %3265 = vmatpush3.bf16.msra.mxu0 %v3604_v32  ;;  %v3657_v32 = vld [vmem:[%s4660_s1 + $0x4c0] sm:$0xff]  }
  0x51   :  { %3287 = vmatpush3.bf16.msra.mxu1 %v3605_v33  ;;  %3266 = vmatprep.subr.bf16.mxu0 %v3606_v34  ;;  %v3658_v33 = vld [vmem:[%s4660_s1 + $0x400] sm:$0xff]  }
  0x52   :  { %3288 = vmatprep.subr.bf16.mxu1 %v3607_v35  ;;  %v3659_v34 = vld [vmem:[%s4660_s1 + $0x480] sm:$0xff]   ;;  %v3660_v35 = vld [vmem:[%s4660_s1 + $0x448] sm:$0xff]  }
  0x54   :  { %3267 = vmatpush3.bf16.msra.mxu0 %v3608_v36  ;;  %v3661_v36 = vld [vmem:[%s4660_s1 + $0x4c8] sm:$0xff]  }
  0x55   :  { %3289 = vmatpush3.bf16.msra.mxu1 %v3609_v37  ;;  %3268 = vmatprep.subr.bf16.mxu0 %v3610_v38  ;;  %v3662_v37 = vld [vmem:[%s4660_s1 + $0x408] sm:$0xff]  }
  0x56   :  { %3290 = vmatprep.subr.bf16.mxu1 %v3611_v39  ;;  %v3663_v38 = vld [vmem:[%s4660_s1 + $0x488] sm:$0xff]   ;;  %v3664_v39 = vld [vmem:[%s4660_s1 + $0x450] sm:$0xff]  }
  0x58   :  { %3269 = vmatpush3.bf16.msra.mxu0 %v3612_v40  ;;  %v3665_v40 = vld [vmem:[%s4660_s1 + $0x4d0] sm:$0xff]  }
  0x59   :  { %3291 = vmatpush3.bf16.msra.mxu1 %v3613_v42  ;;  %3270 = vmatprep.subr.bf16.mxu0 %v3614_v43  ;;  %v3666_v42 = vld [vmem:[%s4660_s1 + $0x410] sm:$0xff]  }
  0x5a   :  { %3292 = vmatprep.subr.bf16.mxu1 %v3615_v44  ;;  %v3667_v43 = vld [vmem:[%s4660_s1 + $0x490] sm:$0xff]   ;;  %v3668_v44 = vld [vmem:[%s4660_s1 + $0x458] sm:$0xff]  }
  0x5c   :  { %3271 = vmatpush3.bf16.msra.mxu0 %v3616_v45  ;;  %v3669_v45 = vld [vmem:[%s4660_s1 + $0x4d8] sm:$0xff]  }
  0x5d   :  { %3293 = vmatpush3.bf16.msra.mxu1 %v3617_v46  ;;  %3272 = vmatprep.subr.bf16.mxu0 %v3618_v48  ;;  %v3670_v46 = vld [vmem:[%s4660_s1 + $0x418] sm:$0xff]   ;;  %v3672_v48 = vld [vmem:[%s4660_s1 + $0x460] sm:$0xff]  }
  0x5e   :  { %3294 = vmatprep.subr.bf16.mxu1 %v3619_v51  ;;  %v3675_v51 = vld [vmem:[%s4660_s1 + $0x4a0] sm:$0xff]  }
  0x60   :  { %3273 = vmatpush3.bf16.msra.mxu0 %v3620_v52  ;;  %v3676_v52 = vld [vmem:[%s4660_s1 + $0x468] sm:$0xff]  }
  0x61   :  { %3295 = vmatpush3.bf16.msra.mxu1 %v3621_v55  ;;  %3302 = vmatprep.subr.bf16.mxu0 %v3623_v57  ;;  %v3679_v55 = vld [vmem:[%s4660_s1 + $0x4a8] sm:$0xff]   ;;  %v3681_v57 = vld [vmem:[%s4660_s1 + $0x4f0] sm:$0xff]  }
  0x62   :  { %3324 = vmatprep.subr.bf16.mxu1 %v3624_v58  ;;  %v3682_v58 = vld [vmem:[%s4660_s1 + $0x430] sm:$0xff]  }
  0x63   :  { %2448 = vmatmul.mubr.bf16.vlgmr.msra.gmra.mrb[8].mxu0 %v592_v49  ;;  %v3673_v49 = vld [vmem:[%s4660_s1 + $0x4e0] sm:$0xff]  }
  0x64   :  { %2488 = vmatmul.mubr.bf16.vlgmr.msra.gmra.mrb[8].mxu1 %v599_v54  ;;  %3303 = vmatpush3.bf16.msra.mxu0 %v3625_v59  ;;  %v3678_v54 = vld [vmem:[%s4660_s1 + $0x428] sm:$0xff]   ;;  %v3683_v59 = vld [vmem:[%s4660_s1 + $0x4b0] sm:$0xff]  }
  0x65   :  { %3325 = vmatpush3.bf16.msra.mxu1 %v3626_v60  ;;  %3304 = vmatprep.subr.bf16.mxu0 %v3627_v61  ;;  %v3684_v60 = vld [vmem:[%s4660_s1 + $0x478] sm:$0xff]   ;;  %v20_v61 = vld [vmem:[%s4659_s0 + $0x20] sm:$0xff] }
  0x66   :  { %3326 = vmatprep.subr.bf16.mxu1 %v3628_v62  ;;  %2527 = vmatprep.mubr.bf16.mxu0 %v617_v28  ;;  %v3685_v62 = vld [vmem:[%s4660_s1 + $0x4f8] sm:$0xff]   ;;  %v3711_v28 = vld [vmem:[%s4660_s1 + $0x528] sm:$0xff]  }
  0x67   :  { %2567 = vmatprep.mubr.bf16.mxu1 %v618_v31  ;;  %v3714_v31 = vld [vmem:[%s4660_s1 + $0x5f0] sm:$0xff]  }
  0x68   :  { %3305 = vmatpush3.bf16.msra.mxu0 %v3629_v63  ;;  %v626_v63 = vrot.slane %v20_v61, %v3939_v41 }
  0x69   :  { %3327 = vmatpush3.bf16.msra.mxu1 %v3630_v0  ;;  %3306 = vmatprep.subr.bf16.mxu0 %v3631_v1  ;;  %v619_v0 = vcombine.high %v20_v61, %v20_v61  ;;  %v3686_v1 = vld [vmem:[%s4660_s1 + $0x438] sm:$0xff]   ;;  %v3738_v61 = vld [vmem:[%s4660_s1 + $0x660] sm:$0xff]  }
  0x6a   :  { %3328 = vmatprep.subr.bf16.mxu1 %v3632_v2  ;;  %v3687_v2 = vld [vmem:[%s4660_s1 + $0x4b8] sm:$0xff]  }
  0x6c   :  { %3307 = vmatpush3.bf16.msra.mxu0 %v3633_v3  ;;  %v634_v3 = vcombine.high %v626_v63, %v626_v63 }
  0x6d   :  { %3329 = vmatpush3.bf16.msra.mxu1 %v3634_v4  ;;  %3308 = vmatprep.subr.bf16.mxu0 %v3635_v5  ;;  %v633_v4 = vrot.slane %v619_v0, %v3939_v41  ;;  %v3689_v5 = vld [vmem:[%s4660_s1 + $0x540] sm:$0xff]  }
  0x6e   :  { %3330 = vmatprep.subr.bf16.mxu1 %v3636_v6  ;;  %v3741_v0 = vld [vmem:[%s4660_s1 + $0x6a0] sm:$0xff]  }
  0x6f   :  { %v635_v6 = vcombine.high %v633_v4, %v633_v4 }
  0x70   :  { %3309 = vmatpush3.bf16.msra.mxu0 %v3637_v7  ;;  %v3690_v7 = vld [vmem:[%s4660_s1 + $0x5c0] sm:$0xff]  }
  0x71   :  { %3331 = vmatpush3.bf16.msra.mxu1 %v3638_v8  ;;  %3310 = vmatprep.subr.bf16.mxu0 %v3639_v9  ;;  %v3691_v8 = vld [vmem:[%s4660_s1 + $0x500] sm:$0xff]  }
  0x72   :  { %3332 = vmatprep.subr.bf16.mxu1 %v3640_v10  ;;  %v3692_v9 = vld [vmem:[%s4660_s1 + $0x580] sm:$0xff]   ;;  %v3693_v10 = vld [vmem:[%s4660_s1 + $0x548] sm:$0xff]  }
  0x74   :  { %3311 = vmatpush3.bf16.msra.mxu0 %v3641_v11  ;;  %v3694_v11 = vld [vmem:[%s4660_s1 + $0x5c8] sm:$0xff]  }
  0x75   :  { %3333 = vmatpush3.bf16.msra.mxu1 %v3642_v12  ;;  %3312 = vmatprep.subr.bf16.mxu0 %v3643_v13  ;;  %v3695_v12 = vld [vmem:[%s4660_s1 + $0x508] sm:$0xff]  }
  0x76   :  { %3334 = vmatprep.subr.bf16.mxu1 %v3644_v14  ;;  %v3696_v13 = vld [vmem:[%s4660_s1 + $0x588] sm:$0xff]   ;;  %v3697_v14 = vld [vmem:[%s4660_s1 + $0x550] sm:$0xff]  }
  0x78   :  { %3313 = vmatpush3.bf16.msra.mxu0 %v3645_v15  ;;  %v3698_v15 = vld [vmem:[%s4660_s1 + $0x5d0] sm:$0xff]  }
  0x79   :  { %3335 = vmatpush3.bf16.msra.mxu1 %v3646_v16  ;;  %3314 = vmatprep.subr.bf16.mxu0 %v3647_v17  ;;  %v3699_v16 = vld [vmem:[%s4660_s1 + $0x510] sm:$0xff]  }
  0x7a   :  { %3336 = vmatprep.subr.bf16.mxu1 %v3648_v18  ;;  %v3700_v17 = vld [vmem:[%s4660_s1 + $0x590] sm:$0xff]   ;;  %v3701_v18 = vld [vmem:[%s4660_s1 + $0x558] sm:$0xff]  }
  0x7c   :  { %3315 = vmatpush3.bf16.msra.mxu0 %v3649_v19  ;;  %v3702_v19 = vld [vmem:[%s4660_s1 + $0x5d8] sm:$0xff]  }
  0x7d   :  { %3337 = vmatpush3.bf16.msra.mxu1 %v3650_v20  ;;  %3316 = vmatprep.subr.bf16.mxu0 %v3651_v21  ;;  %v3703_v20 = vld [vmem:[%s4660_s1 + $0x518] sm:$0xff]  }
  0x7e   :  { %3338 = vmatprep.subr.bf16.mxu1 %v3652_v23  ;;  %v3704_v21 = vld [vmem:[%s4660_s1 + $0x598] sm:$0xff]   ;;  %v3706_v23 = vld [vmem:[%s4660_s1 + $0x5e0] sm:$0xff]  }
  0x80   :  { %3317 = vmatpush3.bf16.msra.mxu0 %v3653_v26  ;;  %v3709_v26 = vld [vmem:[%s4660_s1 + $0x568] sm:$0xff]  }
  0x81   :  { %3339 = vmatpush3.bf16.msra.mxu1 %v3654_v27  ;;  %3346 = vmatprep.subr.bf16.mxu0 %v3656_v30  ;;  %v3710_v27 = vld [vmem:[%s4660_s1 + $0x5e8] sm:$0xff]   ;;  %v3713_v30 = vld [vmem:[%s4660_s1 + $0x570] sm:$0xff]  }
  0x82   :  { %3368 = vmatprep.subr.bf16.mxu1 %v3657_v32  ;;  %v3715_v32 = vld [vmem:[%s4660_s1 + $0x530] sm:$0xff]  }
  0x83   :  { %2528 = vmatmul.mubr.bf16.vlgmr.msra.gmra.mrb[12].mxu0 %v609_v24  ;;  %v3707_v24 = vld [vmem:[%s4660_s1 + $0x520] sm:$0xff]  }
  0x84   :  { %2568 = vmatmul.mubr.bf16.vlgmr.msra.gmra.mrb[12].mxu1 %v616_v29  ;;  %3347 = vmatpush3.bf16.msra.mxu0 %v3658_v33  ;;  %v3712_v29 = vld [vmem:[%s4660_s1 + $0x5a8] sm:$0xff]   ;;  %v3716_v33 = vld [vmem:[%s4660_s1 + $0x5b0] sm:$0xff]  }
  0x85   :  { %3369 = vmatpush3.bf16.msra.mxu1 %v3659_v34  ;;  %3348 = vmatprep.subr.bf16.mxu0 %v3660_v35  ;;  %v3717_v34 = vld [vmem:[%s4660_s1 + $0x578] sm:$0xff]   ;;  %v21_v35 = vld [vmem:[%s4659_s0 + $0x28] sm:$0xff] }
  0x86   :  { %3370 = vmatprep.subr.bf16.mxu1 %v3661_v36  ;;  %2607 = vmatprep.mubr.bf16.mxu0 %v634_v3  ;;  %v3718_v36 = vld [vmem:[%s4660_s1 + $0x5f8] sm:$0xff]   ;;  %v3744_v3 = vld [vmem:[%s4660_s1 + $0x628] sm:$0xff]  }
  0x87   :  { %2647 = vmatprep.mubr.bf16.mxu1 %v635_v6  ;;  %v3747_v6 = vld [vmem:[%s4660_s1 + $0x6f0] sm:$0xff]  }
  0x88   :  { %3349 = vmatpush3.bf16.msra.mxu0 %v3662_v37  ;;  %v643_v37 = vrot.slane %v21_v35, %v3939_v41 }
  0x89   :  { %3371 = vmatpush3.bf16.msra.mxu1 %v3663_v38  ;;  %3350 = vmatprep.subr.bf16.mxu0 %v3664_v39  ;;  %v636_v38 = vcombine.high %v21_v35, %v21_v35  ;;  %v3719_v39 = vld [vmem:[%s4660_s1 + $0x538] sm:$0xff]   ;;  %v3771_v35 = vld [vmem:[%s4660_s1 + $0x760] sm:$0xff]  }
  0x8a   :  { %3372 = vmatprep.subr.bf16.mxu1 %v3665_v40  ;;  %v3720_v40 = vld [vmem:[%s4660_s1 + $0x5b8] sm:$0xff]  }
  0x8c   :  { %3351 = vmatpush3.bf16.msra.mxu0 %v3666_v42  ;;  %v651_v42 = vcombine.high %v643_v37, %v643_v37 }
  0x8d   :  { %3373 = vmatpush3.bf16.msra.mxu1 %v3667_v43  ;;  %3352 = vmatprep.subr.bf16.mxu0 %v3668_v44  ;;  %v650_v43 = vrot.slane %v636_v38, %v3939_v41  ;;  %v3722_v44 = vld [vmem:[%s4660_s1 + $0x640] sm:$0xff]  }
  0x8e   :  { %3374 = vmatprep.subr.bf16.mxu1 %v3669_v45  ;;  %v3774_v38 = vld [vmem:[%s4660_s1 + $0x7a0] sm:$0xff]  }
  0x8f   :  { %v652_v45 = vcombine.high %v650_v43, %v650_v43 }
  0x90   :  { %3353 = vmatpush3.bf16.msra.mxu0 %v3670_v46  ;;  %v3723_v46 = vld [vmem:[%s4660_s1 + $0x6c0] sm:$0xff]  }
  0x91   :  { %3375 = vmatpush3.bf16.msra.mxu1 %v3671_v47  ;;  %3354 = vmatprep.subr.bf16.mxu0 %v3672_v48  ;;  %v3724_v47 = vld [vmem:[%s4660_s1 + $0x600] sm:$0xff]  }
  0x92   :  { %3376 = vmatprep.subr.bf16.mxu1 %v3673_v49  ;;  %v3725_v48 = vld [vmem:[%s4660_s1 + $0x680] sm:$0xff]   ;;  %v3726_v49 = vld [vmem:[%s4660_s1 + $0x648] sm:$0xff]  }
  0x94   :  { %3355 = vmatpush3.bf16.msra.mxu0 %v3674_v50  ;;  %v3727_v50 = vld [vmem:[%s4660_s1 + $0x6c8] sm:$0xff]  }
  0x95   :  { %3377 = vmatpush3.bf16.msra.mxu1 %v3675_v51  ;;  %3356 = vmatprep.subr.bf16.mxu0 %v3676_v52  ;;  %v3728_v51 = vld [vmem:[%s4660_s1 + $0x608] sm:$0xff]  }
  0x96   :  { %3378 = vmatprep.subr.bf16.mxu1 %v3677_v53  ;;  %v3729_v52 = vld [vmem:[%s4660_s1 + $0x688] sm:$0xff]   ;;  %v3730_v53 = vld [vmem:[%s4660_s1 + $0x650] sm:$0xff]  }
  0x98   :  { %3357 = vmatpush3.bf16.msra.mxu0 %v3678_v54  ;;  %v3731_v54 = vld [vmem:[%s4660_s1 + $0x6d0] sm:$0xff]  }
  0x99   :  { %3379 = vmatpush3.bf16.msra.mxu1 %v3679_v55  ;;  %3358 = vmatprep.subr.bf16.mxu0 %v3680_v56  ;;  %v3732_v55 = vld [vmem:[%s4660_s1 + $0x610] sm:$0xff]  }
  0x9a   :  { %3380 = vmatprep.subr.bf16.mxu1 %v3681_v57  ;;  %v3733_v56 = vld [vmem:[%s4660_s1 + $0x690] sm:$0xff]   ;;  %v3734_v57 = vld [vmem:[%s4660_s1 + $0x658] sm:$0xff]  }
  0x9c   :  { %3359 = vmatpush3.bf16.msra.mxu0 %v3682_v58  ;;  %v3735_v58 = vld [vmem:[%s4660_s1 + $0x6d8] sm:$0xff]  }
  0x9d   :  { %3381 = vmatpush3.bf16.msra.mxu1 %v3683_v59  ;;  %3360 = vmatprep.subr.bf16.mxu0 %v3684_v60  ;;  %v3736_v59 = vld [vmem:[%s4660_s1 + $0x618] sm:$0xff]  }
  0x9e   :  { %3382 = vmatprep.subr.bf16.mxu1 %v3685_v62  ;;  %v3737_v60 = vld [vmem:[%s4660_s1 + $0x698] sm:$0xff]   ;;  %v3739_v62 = vld [vmem:[%s4660_s1 + $0x6e0] sm:$0xff]  }
  0xa0   :  { %3361 = vmatpush3.bf16.msra.mxu0 %v3686_v1  ;;  %v3742_v1 = vld [vmem:[%s4660_s1 + $0x668] sm:$0xff]  }
  0xa1   :  { %3383 = vmatpush3.bf16.msra.mxu1 %v3687_v2  ;;  %3390 = vmatprep.subr.bf16.mxu0 %v3689_v5  ;;  %v3743_v2 = vld [vmem:[%s4660_s1 + $0x6e8] sm:$0xff]   ;;  %v3746_v5 = vld [vmem:[%s4660_s1 + $0x670] sm:$0xff]  }
  0xa2   :  { %3412 = vmatprep.subr.bf16.mxu1 %v3690_v7  ;;  %v3748_v7 = vld [vmem:[%s4660_s1 + $0x630] sm:$0xff]  }
  0xa3   :  { %2608 = vmatmul.mubr.bf16.vlgmr.msra.gmra.mrb[16].mxu0 %v626_v63  ;;  %v3740_v63 = vld [vmem:[%s4660_s1 + $0x620] sm:$0xff]  }
  0xa4   :  { %2648 = vmatmul.mubr.bf16.vlgmr.msra.gmra.mrb[16].mxu1 %v633_v4  ;;  %3391 = vmatpush3.bf16.msra.mxu0 %v3691_v8  ;;  %v3745_v4 = vld [vmem:[%s4660_s1 + $0x6a8] sm:$0xff]   ;;  %v3749_v8 = vld [vmem:[%s4660_s1 + $0x6b0] sm:$0xff]  }
  0xa5   :  { %3413 = vmatpush3.bf16.msra.mxu1 %v3692_v9  ;;  %3392 = vmatprep.subr.bf16.mxu0 %v3693_v10  ;;  %v3750_v9 = vld [vmem:[%s4660_s1 + $0x678] sm:$0xff]  }
  0xa6   :  { %3414 = vmatprep.subr.bf16.mxu1 %v3694_v11  ;;  %2687 = vmatprep.mubr.bf16.mxu0 %v651_v42  ;;  %v3751_v10 = vld [vmem:[%s4660_s1 + $0x6f8] sm:$0xff]   ;;  %v22_v11 = vld [vmem:[%s4659_s0 + $0x30] sm:$0xff]  ;;  %v3777_v42 = vld [vmem:[%s4660_s1 + $0x728] sm:$0xff]  }
  0xa7   :  { %2727 = vmatprep.mubr.bf16.mxu1 %v652_v45  ;;  %v2913_v45 = vld [vmem:[%s4661_s2] ss:$0 sm:$0xff] }
  0xa8   :  { %3393 = vmatpush3.bf16.msra.mxu0 %v3695_v12  ;;  %v3752_v12 = vld [vmem:[%s4660_s1 + $0x638] sm:$0xff]  }
  0xa9   :  { %3415 = vmatpush3.bf16.msra.mxu1 %v3696_v13  ;;  %3394 = vmatprep.subr.bf16.mxu0 %v3697_v14  ;;  %v660_v13 = vrot.slane %v22_v11, %v3939_v41  ;;  %v653_v14 = vcombine.high %v22_v11, %v22_v11 }
  0xaa   :  { %3416 = vmatprep.subr.bf16.mxu1 %v3698_v15  ;;  %v3753_v15 = vld [vmem:[%s4660_s1 + $0x6b8] sm:$0xff]  }
  0xac   :  { %3395 = vmatpush3.bf16.msra.mxu0 %v3699_v16  ;;  %v668_v16 = vcombine.high %v660_v13, %v660_v13 }
  0xad   :  { %3417 = vmatpush3.bf16.msra.mxu1 %v3700_v17  ;;  %3396 = vmatprep.subr.bf16.mxu0 %v3701_v18  ;;  %v667_v17 = vrot.slane %v653_v14, %v3939_v41  ;;  %v3755_v18 = vld [vmem:[%s4660_s1 + $0x740] sm:$0xff]  }
  0xae   :  { %3418 = vmatprep.subr.bf16.mxu1 %v3702_v19  ;;  %v3756_v19 = vld [vmem:[%s4660_s1 + $0x7c0] sm:$0xff]  }
  0xb0   :  { %3397 = vmatpush3.bf16.msra.mxu0 %v3703_v20  ;;  %v669_v20 = vcombine.high %v667_v17, %v667_v17 }
  0xb1   :  { %3419 = vmatpush3.bf16.msra.mxu1 %v3704_v21  ;;  %3398 = vmatprep.subr.bf16.mxu0 %v3705_v22  ;;  %v3757_v21 = vld [vmem:[%s4660_s1 + $0x700] sm:$0xff]  }
  0xb2   :  { %3420 = vmatprep.subr.bf16.mxu1 %v3706_v23  ;;  %v3758_v22 = vld [vmem:[%s4660_s1 + $0x780] sm:$0xff]   ;;  %v3759_v23 = vld [vmem:[%s4660_s1 + $0x748] sm:$0xff]  }
  0xb4   :  { %3399 = vmatpush3.bf16.msra.mxu0 %v3707_v24  ;;  %v3760_v24 = vld [vmem:[%s4660_s1 + $0x7c8] sm:$0xff]  }
  0xb5   :  { %3421 = vmatpush3.bf16.msra.mxu1 %v3708_v25  ;;  %3400 = vmatprep.subr.bf16.mxu0 %v3709_v26  ;;  %v3761_v25 = vld [vmem:[%s4660_s1 + $0x708] sm:$0xff]  }
  0xb6   :  { %3422 = vmatprep.subr.bf16.mxu1 %v3710_v27  ;;  %v3762_v26 = vld [vmem:[%s4660_s1 + $0x788] sm:$0xff]   ;;  %v3763_v27 = vld [vmem:[%s4660_s1 + $0x750] sm:$0xff]  }
  0xb8   :  { %3401 = vmatpush3.bf16.msra.mxu0 %v3711_v28  ;;  %v3764_v28 = vld [vmem:[%s4660_s1 + $0x7d0] sm:$0xff]  }
  0xb9   :  { %3423 = vmatpush3.bf16.msra.mxu1 %v3712_v29  ;;  %3402 = vmatprep.subr.bf16.mxu0 %v3713_v30  ;;  %v3765_v29 = vld [vmem:[%s4660_s1 + $0x710] sm:$0xff]  }
  0xba   :  { %3424 = vmatprep.subr.bf16.mxu1 %v3714_v31  ;;  %v3766_v30 = vld [vmem:[%s4660_s1 + $0x790] sm:$0xff]   ;;  %v3767_v31 = vld [vmem:[%s4660_s1 + $0x758] sm:$0xff]  }
  0xbc   :  { %3403 = vmatpush3.bf16.msra.mxu0 %v3715_v32  ;;  %v3768_v32 = vld [vmem:[%s4660_s1 + $0x7d8] sm:$0xff]  }
  0xbd   :  { %3425 = vmatpush3.bf16.msra.mxu1 %v3716_v33  ;;  %3404 = vmatprep.subr.bf16.mxu0 %v3717_v34  ;;  %v3769_v33 = vld [vmem:[%s4660_s1 + $0x718] sm:$0xff]  }
  0xbe   :  { %3426 = vmatprep.subr.bf16.mxu1 %v3718_v36  ;;  %v3770_v34 = vld [vmem:[%s4660_s1 + $0x798] sm:$0xff]   ;;  %v3772_v36 = vld [vmem:[%s4660_s1 + $0x7e0] sm:$0xff]  }
  0xc0   :  { %3405 = vmatpush3.bf16.msra.mxu0 %v3719_v39  ;;  %v3775_v39 = vld [vmem:[%s4660_s1 + $0x768] sm:$0xff]  }
  0xc1   :  { %3427 = vmatpush3.bf16.msra.mxu1 %v3720_v40  ;;  %3434 = vmatprep.subr.bf16.mxu0 %v3722_v44  ;;  %v3776_v40 = vld [vmem:[%s4660_s1 + $0x7e8] sm:$0xff]   ;;  %v3779_v44 = vld [vmem:[%s4660_s1 + $0x770] sm:$0xff]  }
  0xc2   :  { %3456 = vmatprep.subr.bf16.mxu1 %v3723_v46  ;;  %v3780_v46 = vld [vmem:[%s4660_s1 + $0x7f0] sm:$0xff]  }
  0xc3   :  { %2688 = vmatmul.mubr.bf16.vlgmr.msra.gmra.mrb[20].mxu0 %v643_v37  ;;  %v3773_v37 = vld [vmem:[%s4660_s1 + $0x720] sm:$0xff]  }
  0xc4   :  { %2728 = vmatmul.mubr.bf16.vlgmr.msra.gmra.mrb[20].mxu1 %v650_v43  ;;  %3435 = vmatpush3.bf16.msra.mxu0 %v3724_v47  ;;  %v3778_v43 = vld [vmem:[%s4660_s1 + $0x7a8] sm:$0xff]  }
  0xc5   :  { %3457 = vmatpush3.bf16.msra.mxu1 %v3725_v48  ;;  %3436 = vmatprep.subr.bf16.mxu0 %v3726_v49  ;;  %v3781_v49 = vld [vmem:[%s4660_s1 + $0x730] sm:$0xff]  }
  0xc6   :  { %3458 = vmatprep.subr.bf16.mxu1 %v3727_v50  ;;  %2767 = vmatprep.mubr.bf16.mxu0 %v668_v16  ;;  %v3782_v50 = vld [vmem:[%s4660_s1 + $0x7b0] sm:$0xff]  }
  0xc7   :  { %2807 = vmatprep.mubr.bf16.mxu1 %v669_v20 }
  0xc8   :  { %3437 = vmatpush3.bf16.msra.mxu0 %v3728_v51 }
  0xc9   :  { %3459 = vmatpush3.bf16.msra.mxu1 %v3729_v52  ;;  %3438 = vmatprep.subr.bf16.mxu0 %v3730_v53 }
  0xca   :  { %3460 = vmatprep.subr.bf16.mxu1 %v3731_v54 }
  0xcc   :  { %3439 = vmatpush3.bf16.msra.mxu0 %v3732_v55 }
  0xcd   :  { %3461 = vmatpush3.bf16.msra.mxu1 %v3733_v56  ;;  %3440 = vmatprep.subr.bf16.mxu0 %v3734_v57 }
  0xce   :  { %3462 = vmatprep.subr.bf16.mxu1 %v3735_v58 }
  0xd0   :  { %3441 = vmatpush3.bf16.msra.mxu0 %v3736_v59  ;;  %v3783_v59 = vld [vmem:[%s4660_s1 + $0x778] sm:$0xff]  }
  0xd1   :  { %3463 = vmatpush3.bf16.msra.mxu1 %v3737_v60  ;;  %3442 = vmatprep.subr.bf16.mxu0 %v3738_v61  ;;  %v3784_v60 = vld [vmem:[%s4660_s1 + $0x7f8] sm:$0xff]  }
  0xd2   :  { %3464 = vmatprep.subr.bf16.mxu1 %v3739_v62  ;;  %v23_v62 = vld [vmem:[%s4659_s0 + $0x38] sm:$0xff] }
  0xd4   :  { %3443 = vmatpush3.bf16.msra.mxu0 %v3740_v63 }
  0xd5   :  { %3465 = vmatpush3.bf16.msra.mxu1 %v3741_v0  ;;  %3444 = vmatprep.subr.bf16.mxu0 %v3742_v1 }
  0xd6   :  { %3466 = vmatprep.subr.bf16.mxu1 %v3743_v2 }
  0xd8   :  { %3445 = vmatpush3.bf16.msra.mxu0 %v3744_v3 }
  0xd9   :  { %3467 = vmatpush3.bf16.msra.mxu1 %v3745_v4  ;;  %3446 = vmatprep.subr.bf16.mxu0 %v3746_v5 }
  0xda   :  { %3468 = vmatprep.subr.bf16.mxu1 %v3747_v6 }
  0xdc   :  { %3447 = vmatpush3.bf16.msra.mxu0 %v3748_v7 }
  0xdd   :  { %3469 = vmatpush3.bf16.msra.mxu1 %v3749_v8  ;;  %3448 = vmatprep.subr.bf16.mxu0 %v3750_v9 }
  0xde   :  { %3470 = vmatprep.subr.bf16.mxu1 %v3751_v10 }
  0xe0   :  { %3449 = vmatpush3.bf16.msra.mxu0 %v3752_v12 }
  0xe1   :  { %3471 = vmatpush3.bf16.msra.mxu1 %v3753_v15  ;;  %3478 = vmatprep.subr.bf16.mxu0 %v3755_v18 }
  0xe2   :  { %3500 = vmatprep.subr.bf16.mxu1 %v3756_v19 }
  0xe3   :  { %2768 = vmatmul.mubr.bf16.vlgmr.msra.gmra.mrb[24].mxu0 %v660_v13 }
  0xe4   :  { %2808 = vmatmul.mubr.bf16.vlgmr.msra.gmra.mrb[24].mxu1 %v667_v17  ;;  %3479 = vmatpush3.bf16.msra.mxu0 %v3757_v21 }
  0xe5   :  { %3501 = vmatpush3.bf16.msra.mxu1 %v3758_v22  ;;  %3480 = vmatprep.subr.bf16.mxu0 %v3759_v23 }
  0xe6   :  { %3502 = vmatprep.subr.bf16.mxu1 %v3760_v24 }
  0xe8   :  { %3481 = vmatpush3.bf16.msra.mxu0 %v3761_v25 }
  0xe9   :  { %3503 = vmatpush3.bf16.msra.mxu1 %v3762_v26  ;;  %3482 = vmatprep.subr.bf16.mxu0 %v3763_v27 }
  0xea   :  { %3504 = vmatprep.subr.bf16.mxu1 %v3764_v28 }
  0xec   :  { %3483 = vmatpush3.bf16.msra.mxu0 %v3765_v29 }
  0xed   :  { %3505 = vmatpush3.bf16.msra.mxu1 %v3766_v30  ;;  %3484 = vmatprep.subr.bf16.mxu0 %v3767_v31 }
  0xee   :  { %3506 = vmatprep.subr.bf16.mxu1 %v3768_v32 }
  0xf0   :  { %3485 = vmatpush3.bf16.msra.mxu0 %v3769_v33 }
  0xf1   :  { %3507 = vmatpush3.bf16.msra.mxu1 %v3770_v34  ;;  %3486 = vmatprep.subr.bf16.mxu0 %v3771_v35 }
  0xf2   :  { %3508 = vmatprep.subr.bf16.mxu1 %v3772_v36 }
  0xf4   :  { %3487 = vmatpush3.bf16.msra.mxu0 %v3773_v37 }
  0xf5   :  { %3509 = vmatpush3.bf16.msra.mxu1 %v3774_v38  ;;  %3488 = vmatprep.subr.bf16.mxu0 %v3775_v39 }
  0xf6   :  { %3510 = vmatprep.subr.bf16.mxu1 %v3776_v40  ;;  %v3186_v47 = vpop.f32.mrb[0].mxu0 }
  0xf7   :  { %v3208_v48 = vpop.f32.mrb[0].mxu1  ;;  %v3187_v51 = vpop.f32.mrb[1].mxu0 }
  0xf8   :  { %v3209_v52 = vpop.f32.mrb[1].mxu1  ;;  %v3188_v53 = vadd.f32 %v3187_v51, %v3186_v47  ;;  %v3189_v55 = vpop.f32.mrb[2].mxu0  ;;  %3489 = vmatpush3.bf16.msra.mxu0 %v3777_v42 }
  0xf9   :  { %v3210_v54 = vadd.f32 %v3209_v52, %v3208_v48  ;;  %v3211_v56 = vpop.f32.mrb[2].mxu1  ;;  %3511 = vmatpush3.bf16.msra.mxu1 %v3778_v43  ;;  %v3190_v57 = vpop.f32.mrb[3].mxu0  ;;  %3490 = vmatprep.subr.bf16.mxu0 %v3779_v44 }
  0xfa   :  { %v3212_v58 = vpop.f32.mrb[3].mxu1  ;;  %3512 = vmatprep.subr.bf16.mxu1 %v3780_v46  ;;  %v2290_v61 = vadd.f32 %v3188_v53, %v2913_v45 }
  0xfb   :  { %8 = vsyncpa [#allocation3], 0  ;;  %v677_v63 = vrot.slane %v23_v62, %v3939_v41  ;;  %v670_v0 = vcombine.high %v23_v62, %v23_v62  ;;  %v3785_v2 = vld [vmem:[%s4660_s1 + $0x738] sm:$0xff]   ;;  %s3813_s0 = smov [#allocation2]  }
  0xfc   :  { %v2330_v1 = vadd.f32 %v3210_v54, %v2290_v61  ;;  %3491 = vmatpush3.bf16.msra.mxu0 %v3781_v49  ;;  %v3786_v3 = vld [vmem:[%s4660_s1 + $0x7b8] sm:$0xff]   ;;  %s2905_s1 = sshll.u32 %s3813_s0, 4  ;;  %s2906_s1 = int_to_ptr.vmem [resolvable:$true] %s2905_s1 }
  0xfd   :  { %3513 = vmatpush3.bf16.msra.mxu1 %v3782_v50  ;;  %3492 = vmatprep.subr.bf16.mxu0 %v3783_v59  ;;  %v685_v4 = vcombine.high %v677_v63, %v677_v63  ;;  %v684_v5 = vrot.slane %v670_v0, %v3939_v41  ;;  %s3788_s28 = scalar_lea.vmem %s2906_s1, 64  ;;  %p3793_p1 = scmp.lt.s32.totalorder %s2906_s1, %s2906_s1 }
  0xfe   :  { %3514 = vmatprep.subr.bf16.mxu1 %v3784_v60  ;;  %p3789_p0 = scmp.ne.s32.totalorder %s2906_s1, %s3788_s28  ;;  %p3794_p2 = scmp.lt.s32.totalorder %s3788_s28, %s3788_s28 }
  0xff   :  { %2847 = vmatprep.mubr.bf16.mxu0 %v685_v4  ;;  %v686_v6 = vcombine.high %v684_v5, %v684_v5 }
 0x100   :  { %3493 = vmatpush3.bf16.msra.mxu0 %v3785_v2  ;;  %p3795_p3 = por %p3794_p2, %p3793_p1 }
 0x101   :  { %3515 = vmatpush3.bf16.msra.mxu1 %v3786_v3  ;;  %2887 = vmatprep.mubr.bf16.mxu1 %v686_v6 }
 0x102   :  { %p3796_p4 = pnand %p3795_p3, %p3789_p0 }
 0x103   :  { %2848 = vmatmul.mubr.bf16.vlgmr.msra.gmra.mrb[28].mxu0 %v677_v63 }
 0x104   :  { %2888 = vmatmul.mubr.bf16.vlgmr.msra.gmra.mrb[28].mxu1 %v684_v5 }
 0x116   :  { %v3230_v7 = vpop.f32.mrb[4].mxu0 }
 0x117   :  { %v3252_v8 = vpop.f32.mrb[4].mxu1  ;;  %v3231_v9 = vpop.f32.mrb[5].mxu0 }
 0x118   :  { %v3253_v10 = vpop.f32.mrb[5].mxu1  ;;  %v3232_v11 = vadd.f32 %v3231_v9, %v3230_v7  ;;  %v3233_v13 = vpop.f32.mrb[6].mxu0 }
 0x119   :  { %v3254_v12 = vadd.f32 %v3253_v10, %v3252_v8  ;;  %v3255_v14 = vpop.f32.mrb[6].mxu1  ;;  %v3234_v15 = vpop.f32.mrb[7].mxu0 }
 0x11a   :  { %v3256_v16 = vpop.f32.mrb[7].mxu1  ;;  %v2370_v17 = vadd.f32 %v3232_v11, %v2330_v1 }
 0x11c   :  { %v2410_v18 = vadd.f32 %v3254_v12, %v2370_v17 }
 0x136   :  { %v3274_v41 = vpop.f32.mrb[8].mxu0 }
 0x137   :  { %v3296_v19 = vpop.f32.mrb[8].mxu1  ;;  %v3275_v20 = vpop.f32.mrb[9].mxu0 }
 0x138   :  { %v3297_v21 = vpop.f32.mrb[9].mxu1  ;;  %v3276_v22 = vadd.f32 %v3275_v20, %v3274_v41  ;;  %v3277_v24 = vpop.f32.mrb[10].mxu0 }
 0x139   :  { %v3298_v23 = vadd.f32 %v3297_v21, %v3296_v19  ;;  %v3299_v25 = vpop.f32.mrb[10].mxu1  ;;  %v3278_v26 = vpop.f32.mrb[11].mxu0 }
 0x13a   :  { %v3300_v27 = vpop.f32.mrb[11].mxu1  ;;  %v2450_v28 = vadd.f32 %v3276_v22, %v2410_v18 }
 0x13c   :  { %v2490_v29 = vadd.f32 %v3298_v23, %v2450_v28 }
 0x156   :  { %v3318_v30 = vpop.f32.mrb[12].mxu0 }
 0x157   :  { %v3340_v31 = vpop.f32.mrb[12].mxu1  ;;  %v3319_v32 = vpop.f32.mrb[13].mxu0 }
 0x158   :  { %v3341_v33 = vpop.f32.mrb[13].mxu1  ;;  %v3320_v34 = vadd.f32 %v3319_v32, %v3318_v30  ;;  %v3321_v36 = vpop.f32.mrb[14].mxu0 }
 0x159   :  { %v3342_v35 = vadd.f32 %v3341_v33, %v3340_v31  ;;  %v3343_v37 = vpop.f32.mrb[14].mxu1  ;;  %v3322_v38 = vpop.f32.mrb[15].mxu0 }
 0x15a   :  { %v3344_v39 = vpop.f32.mrb[15].mxu1  ;;  %v2530_v40 = vadd.f32 %v3320_v34, %v2490_v29 }
 0x15c   :  { %v2570_v42 = vadd.f32 %v3342_v35, %v2530_v40 }
 0x176   :  { %v3362_v43 = vpop.f32.mrb[16].mxu0 }
 0x177   :  { %v3384_v44 = vpop.f32.mrb[16].mxu1  ;;  %v3363_v45 = vpop.f32.mrb[17].mxu0 }
 0x178   :  { %v3385_v46 = vpop.f32.mrb[17].mxu1  ;;  %v3364_v47 = vadd.f32 %v3363_v45, %v3362_v43  ;;  %v3365_v49 = vpop.f32.mrb[18].mxu0 }
 0x179   :  { %v3386_v48 = vadd.f32 %v3385_v46, %v3384_v44  ;;  %v3387_v50 = vpop.f32.mrb[18].mxu1  ;;  %v3366_v51 = vpop.f32.mrb[19].mxu0 }
 0x17a   :  { %v3388_v52 = vpop.f32.mrb[19].mxu1  ;;  %v2610_v53 = vadd.f32 %v3364_v47, %v2570_v42 }
 0x17c   :  { %v2650_v54 = vadd.f32 %v3386_v48, %v2610_v53 }
 0x196   :  { %v3406_v55 = vpop.f32.mrb[20].mxu0 }
 0x197   :  { %v3428_v56 = vpop.f32.mrb[20].mxu1  ;;  %v3407_v57 = vpop.f32.mrb[21].mxu0 }
 0x198   :  { %v3429_v58 = vpop.f32.mrb[21].mxu1  ;;  %v3408_v59 = vadd.f32 %v3407_v57, %v3406_v55  ;;  %v3409_v61 = vpop.f32.mrb[22].mxu0 }
 0x199   :  { %v3430_v60 = vadd.f32 %v3429_v58, %v3428_v56  ;;  %v3431_v62 = vpop.f32.mrb[22].mxu1  ;;  %v3410_v63 = vpop.f32.mrb[23].mxu0 }
 0x19a   :  { %v3432_v0 = vpop.f32.mrb[23].mxu1  ;;  %v2690_v1 = vadd.f32 %v3408_v59, %v2650_v54 }
 0x19c   :  { %v2730_v2 = vadd.f32 %v3430_v60, %v2690_v1 }
 0x1b6   :  { %v3450_v3 = vpop.f32.mrb[24].mxu0 }
 0x1b7   :  { %v3472_v4 = vpop.f32.mrb[24].mxu1  ;;  %v3451_v5 = vpop.f32.mrb[25].mxu0 }
 0x1b8   :  { %v3473_v6 = vpop.f32.mrb[25].mxu1  ;;  %v3452_v7 = vadd.f32 %v3451_v5, %v3450_v3  ;;  %v3453_v9 = vpop.f32.mrb[26].mxu0 }
 0x1b9   :  { %v3474_v8 = vadd.f32 %v3473_v6, %v3472_v4  ;;  %v3475_v10 = vpop.f32.mrb[26].mxu1  ;;  %v3454_v11 = vpop.f32.mrb[27].mxu0 }
 0x1ba   :  { %v3476_v12 = vpop.f32.mrb[27].mxu1  ;;  %v2770_v13 = vadd.f32 %v3452_v7, %v2730_v2 }
 0x1bc   :  { %v2810_v14 = vadd.f32 %v3474_v8, %v2770_v13 }
 0x1d6   :  { %v3494_v15 = vpop.f32.mrb[28].mxu0 }
 0x1d7   :  { %v3516_v16 = vpop.f32.mrb[28].mxu1  ;;  %v3495_v17 = vpop.f32.mrb[29].mxu0 }
 0x1d8   :  { %v3517_v18 = vpop.f32.mrb[29].mxu1  ;;  %v3496_v41 = vadd.f32 %v3495_v17, %v3494_v15  ;;  %v3497_v20 = vpop.f32.mrb[30].mxu0 }
 0x1d9   :  { %v3518_v19 = vadd.f32 %v3517_v18, %v3516_v16  ;;  %v3519_v21 = vpop.f32.mrb[30].mxu1  ;;  %v3498_v22 = vpop.f32.mrb[31].mxu0 }
 0x1da   :  { %v3520_v23 = vpop.f32.mrb[31].mxu1  ;;  %v2850_v24 = vadd.f32 %v3496_v41, %v2810_v14 }
 0x1dc   :  { %v2890_v25 = vadd.f32 %v3518_v19, %v2850_v24 }
 0x1de   :  { %vm2895_vm0 = vcmp.ge.f32.partialorder %v2890_v25, 0.0  ;;  %v2896_v26 = vmul.f32 0.2, %v2890_v25 }
 0x1e0   :  { %v2897_v27 = vsel %vm2895_vm0, %v2890_v25, %v2896_v26 }
 0x1e1   :  { %2898 = vst [vmem:[#allocation2] sm:$0xf] %v2897_v27 }
 0x1e2   :  { %3799 = shalt.err (!%p3796_p4)
}
 0x1e3   :  { %s3800_s4 = scalar_lea.hbm %s4662_s3, 64 }
 0x1e4   :  { %p3801_p5 = scmp.ne.s32.totalorder %s4662_s3, %s3800_s4  ;;  %p3804_p6 = scmp.lt.u32.totalorder %s3800_s4, %s4662_s3 }
 0x1e6   :  { %p3806_p7 = pnand %p3804_p6, %p3801_p5 }
 0x1e8   :  { %3809 = shalt.err (!%p3806_p7)
}
 0x1e9   :  { %2908 = dma.vmem_to_hbm [thread:$0]  %s2906_s1, 64, %s4662_s3, [#allocation3]  }
 0x1ea   :  { %3810 = dma.done.wait [#allocation3], 64  }
 0x1eb   :  { %3811 = vsyncadd [#allocation3], 4294967232 }
 0x1ec   :  { %2912 = vsyncpa [#allocation3], 1 }

</bundles_post_ra>
